<compile_context>
chip_gen: v7x
topology: tpu7x:2x2x1
jax: 0.10.0
libtpu: 0.0.40
codegen_flags: <defaults>
</compile_context>

<pallas_src>
import functools

import jax
import jax.numpy as jnp
from jax.experimental import pallas as pl
from jax.experimental.pallas import tpu as pltpu

BN_EPS = 1e-5
K = 5                      # ConvTranspose1d kernel size
P = (K - 1) // 2           # "same" padding at stride 1


def _decoder_kernel(zc_ref, w1_ref, b1_ref, w2_ref, b2_ref,
                    wd1_ref, bd1_ref, g1_ref, be1_ref,
                    wd2_ref, bd2_ref, g2_ref, be2_ref,
                    wd3_ref, bd3_ref,
                    out_ref,
                    xp1_ref, xp2_ref, xp3_ref):
    B = zc_ref.shape[0]
    LB = out_ref.shape[0]          # L * B rows (t-major, batch-minor)
    L = LB // B
    PB = P * B                     # zero-padding rows at each end

    # Zero only the conv-padding edge rows; interiors are fully overwritten.
    for ref in (xp1_ref, xp2_ref, xp3_ref):
        c = ref.shape[1]
        ref[0:PB, :] = jnp.zeros((PB, c), jnp.float32)
        ref[PB + LB:, :] = jnp.zeros((PB, c), jnp.float32)

    # ---- fc1 + relu -------------------------------------------------------
    h1 = jnp.maximum(
        jnp.dot(zc_ref[...], w1_ref[...], preferred_element_type=jnp.float32)
        + b1_ref[...], 0.0)                                    # (B, 256)

    # ---- fc2 + relu: ONE matmul, columns packed t-major / channel-minor ----
    h2 = jnp.maximum(
        jnp.dot(h1, w2_ref[...], preferred_element_type=jnp.float32)
        + b2_ref[...], 0.0)                                    # (B, L*128)

    # Scatter into the padded activation slab (rows t*B + b).  This is the
    # unavoidable fc2 -> conv layout transform (PyTorch's view(B,128,L)); each
    # store is lane-dense (128 lanes), only B sublanes wide.
    for t in range(L):
        xp1_ref[PB + t * B: PB + (t + 1) * B, :] = h2[:, t * 128:(t + 1) * 128]

    def deconv(xp_ref, wd_ref, bd_ref):
        # xp_ref: ((L+2P)*B, Cin) padded slab; wd_ref: (K, Cin, Cout)
        # tap k reads rows [k*B, k*B + L*B) -> matmul with M = B*L rows.
        acc = jnp.dot(xp_ref[0:LB, :], wd_ref[0],
                      preferred_element_type=jnp.float32)
        for k in range(1, K):
            acc = acc + jnp.dot(xp_ref[k * B: k * B + LB, :], wd_ref[k],
                                preferred_element_type=jnp.float32)
        return acc + bd_ref[...]                               # (L*B, Cout)

    def bn_relu(y, g_ref, be_ref):
        # training-mode BatchNorm1d: stats over (batch, length), biased var,
        # two-pass centered variance in f32.
        n = float(LB)
        mean = jnp.sum(y, axis=0, keepdims=True) / n
        d = y - mean
        var = jnp.sum(d * d, axis=0, keepdims=True) / n
        return jnp.maximum(
            d * jax.lax.rsqrt(var + BN_EPS) * g_ref[...] + be_ref[...], 0.0)

    # ---- deconv1 + bn1 + relu --------------------------------------------
    y1 = bn_relu(deconv(xp1_ref, wd1_ref, bd1_ref), g1_ref, be1_ref)  # (LB,64)
    xp2_ref[PB:PB + LB, :] = y1

    # ---- deconv2 + bn2 + relu --------------------------------------------
    y2 = bn_relu(deconv(xp2_ref, wd2_ref, bd2_ref), g2_ref, be2_ref)  # (LB,32)
    xp3_ref[PB:PB + LB, :] = y2

    # ---- deconv3: out channels zero-padded to 128 -> lane-dense bulk store -
    out_ref[...] = deconv(xp3_ref, wd3_ref, bd3_ref)                  # (LB,128)


def init_params(key, input_size, condition_size, latent_size):
    L = input_size
    din = latent_size + condition_size

    def uniform(k, shape, fan_in):
        bound = 1.0 / (fan_in ** 0.5)
        return jax.random.uniform(k, shape, jnp.float32, -bound, bound)

    ks = jax.random.split(key, 10)
    p = {}
    p['fc1_w'] = uniform(ks[0], (256, din), din)
    p['fc1_b'] = uniform(ks[1], (256,), din)
    p['fc2_w'] = uniform(ks[2], (128 * L, 256), 256)
    p['fc2_b'] = uniform(ks[3], (128 * L,), 256)
    p['deconv1_w'] = uniform(ks[4], (128, 64, 5), 64 * 5)
    p['deconv1_b'] = uniform(ks[5], (64,), 64 * 5)
    p['deconv2_w'] = uniform(ks[6], (64, 32, 5), 32 * 5)
    p['deconv2_b'] = uniform(ks[7], (32,), 32 * 5)
    p['deconv3_w'] = uniform(ks[8], (32, 1, 5), 1 * 5)
    p['deconv3_b'] = uniform(ks[9], (1,), 1 * 5)
    p['bn1_g'] = jnp.ones((64,), jnp.float32)
    p['bn1_b'] = jnp.zeros((64,), jnp.float32)
    p['bn2_g'] = jnp.ones((32,), jnp.float32)
    p['bn2_b'] = jnp.zeros((32,), jnp.float32)
    return p


@functools.partial(jax.jit, static_argnames=("input_size",))
def decoder_cnn_forward(z, c, params, input_size):
    B = z.shape[0]
    L = input_size
    LB = L * B
    zc = jnp.concatenate([z, c], axis=1).astype(jnp.float32)

    # --- repack PyTorch-shaped params into kernel layout (plain-JAX glue) ---
    w1 = params['fc1_w'].T                                       # (Din, 256)
    b1 = params['fc1_b'][None, :]                                # (1, 256)
    # fc2 row index = ch*L + t (because of x.view(B,128,L)); pack columns
    # t-major / channel-minor so column t*128+ch = weight row ch*L+t.
    w2 = (params['fc2_w'].reshape(128, L, 256)
          .transpose(1, 0, 2).reshape(L * 128, 256).T)           # (256, L*128)
    b2 = params['fc2_b'].reshape(128, L).T.reshape(1, L * 128)   # (1, L*128)

    def tconv_w(w):  # (Cin, Cout, K) -> (K, Cin, Cout), spatially flipped
        return jnp.flip(w, axis=2).transpose(2, 0, 1)

    wd1 = tconv_w(params['deconv1_w'])                           # (5, 128, 64)
    bd1 = params['deconv1_b'][None, :]
    wd2 = tconv_w(params['deconv2_w'])                           # (5, 64, 32)
    bd2 = params['deconv2_b'][None, :]
    # pad deconv3's single output channel to 128 lanes (zeros) so the final
    # matmul + output store are lane-dense; column 0 is the real channel.
    wd3 = jnp.pad(tconv_w(params['deconv3_w']), ((0, 0), (0, 0), (0, 127)))
    bd3 = jnp.pad(params['deconv3_b'][None, :], ((0, 0), (0, 127)))
    g1 = params['bn1_g'][None, :]
    be1 = params['bn1_b'][None, :]
    g2 = params['bn2_g'][None, :]
    be2 = params['bn2_b'][None, :]

    vmem = pl.BlockSpec(memory_space=pltpu.MemorySpace.VMEM)
    rows = (L + 2 * P) * B
    out_flat = pl.pallas_call(
        _decoder_kernel,
        out_shape=jax.ShapeDtypeStruct((LB, 128), jnp.float32),
        in_specs=[vmem] * 15,
        out_specs=vmem,
        scratch_shapes=[
            pltpu.VMEM((rows, 128), jnp.float32),
            pltpu.VMEM((rows, 64), jnp.float32),
            pltpu.VMEM((rows, 32), jnp.float32),
        ],
    )(zc, w1, b1, w2, b2, wd1, bd1, g1, be1, wd2, bd2, g2, be2, wd3, bd3)

    # rows are t-major / batch-minor; real channel is column 0.
    return out_flat[:, 0].reshape(L, B).T                        # (B, L)


def ref_forward(z, c, p, input_size):
    """Pure-JAX reference with PyTorch NCL conventions."""
    B = z.shape[0]
    L = input_size
    zc = jnp.concatenate([z, c], axis=1)
    x = jax.nn.relu(zc @ p['fc1_w'].T + p['fc1_b'])
    x = jax.nn.relu(x @ p['fc2_w'].T + p['fc2_b'])
    x = x.reshape(B, 128, L)

    def tconv1d(x, w, b, pad=2):
        Kk = w.shape[2]
        xp = jnp.pad(x, ((0, 0), (0, 0), (Kk - 1 - pad, Kk - 1 - pad)))
        out = jnp.zeros((x.shape[0], w.shape[1], L), jnp.float32)
        for k in range(Kk):
            s = Kk - 1 - k
            out = out + jnp.einsum('bil,io->bol', xp[:, :, s:s + L], w[:, :, k])
        return out + b[None, :, None]

    def bn_train(x, g, be):
        mean = x.mean(axis=(0, 2), keepdims=True)
        var = ((x - mean) ** 2).mean(axis=(0, 2), keepdims=True)
        xn = (x - mean) * jax.lax.rsqrt(var + BN_EPS)
        return xn * g[None, :, None] + be[None, :, None]

    x = jax.nn.relu(bn_train(tconv1d(x, p['deconv1_w'], p['deconv1_b']),
                             p['bn1_g'], p['bn1_b']))
    x = jax.nn.relu(bn_train(tconv1d(x, p['deconv2_w'], p['deconv2_b']),
                             p['bn2_g'], p['bn2_b']))
    x = tconv1d(x, p['deconv3_w'], p['deconv3_b'])
    return x[:, 0, :]                                            # squeeze(1)


if __name__ == "__main__":
    B, INPUT_SIZE, COND, LATENT = 2, 16, 4, 8
    key = jax.random.PRNGKey(0)
    kp, kz, kc = jax.random.split(key, 3)
    params = init_params(kp, INPUT_SIZE, COND, LATENT)
    z = jax.random.normal(kz, (B, LATENT), jnp.float32)
    c = jax.random.normal(kc, (B, COND), jnp.float32)

    out = decoder_cnn_forward(z, c, params, INPUT_SIZE)
    out = jax.block_until_ready(out)
    ref = jax.block_until_ready(ref_forward(z, c, params, INPUT_SIZE))

    assert out.shape == (B, INPUT_SIZE), out.shape
    if not jnp.allclose(out, ref, atol=2e-3, rtol=2e-3):
        raise AssertionError(
            f"mismatch: max abs err = {float(jnp.max(jnp.abs(out - ref)))}")
    print("KERNEL_OK")
</pallas_src>

<mosaic_0001>
module attributes {stable_mosaic.version = 11 : i64} {
  func.func @_decoder_kernel(%arg0: memref<2x12xf32, #tpu.memory_space<vmem>>, %arg1: memref<12x256xf32, #tpu.memory_space<vmem>>, %arg2: memref<1x256xf32, #tpu.memory_space<vmem>>, %arg3: memref<256x2048xf32, #tpu.memory_space<vmem>>, %arg4: memref<1x2048xf32, #tpu.memory_space<vmem>>, %arg5: memref<5x128x64xf32, #tpu.memory_space<vmem>>, %arg6: memref<1x64xf32, #tpu.memory_space<vmem>>, %arg7: memref<1x64xf32, #tpu.memory_space<vmem>>, %arg8: memref<1x64xf32, #tpu.memory_space<vmem>>, %arg9: memref<5x64x32xf32, #tpu.memory_space<vmem>>, %arg10: memref<1x32xf32, #tpu.memory_space<vmem>>, %arg11: memref<1x32xf32, #tpu.memory_space<vmem>>, %arg12: memref<1x32xf32, #tpu.memory_space<vmem>>, %arg13: memref<5x32x128xf32, #tpu.memory_space<vmem>>, %arg14: memref<1x128xf32, #tpu.memory_space<vmem>>, %arg15: memref<32x128xf32, #tpu.memory_space<vmem>>, %arg16: memref<40x128xf32, #tpu.memory_space<vmem>>, %arg17: memref<40x64xf32, #tpu.memory_space<vmem>>, %arg18: memref<40x32xf32, #tpu.memory_space<vmem>>) attributes {dimension_semantics = [], scalar_prefetch = 0 : i64, scratch_operands = 3 : i64, tpu.core_type = #tpu.core_type<tc>} {
    %cst = arith.constant 0.000000e+00 : f32
    %0 = vector.broadcast %cst : f32 to vector<4x128xf32>
    %c0 = arith.constant 0 : index
    %c0_0 = arith.constant 0 : index
    %1 = vector.load %arg16[%c0, %c0_0] : memref<40x128xf32, #tpu.memory_space<vmem>>, vector<4x128xf32>
    tpu.vector_store %arg16[%c0, %c0_0], %0 {strides = array<i32>} : memref<40x128xf32, #tpu.memory_space<vmem>>, vector<4x128xf32>,
    %cst_1 = arith.constant 0.000000e+00 : f32
    %2 = vector.broadcast %cst_1 : f32 to vector<4x128xf32>
    %c36 = arith.constant 36 : index
    %c0_2 = arith.constant 0 : index
    %3 = vector.load %arg16[%c36, %c0_2] : memref<40x128xf32, #tpu.memory_space<vmem>>, vector<4x128xf32>
    tpu.vector_store %arg16[%c36, %c0_2], %2 {strides = array<i32>} : memref<40x128xf32, #tpu.memory_space<vmem>>, vector<4x128xf32>,
    %cst_3 = arith.constant 0.000000e+00 : f32
    %4 = vector.broadcast %cst_3 : f32 to vector<4x64xf32>
    %c0_4 = arith.constant 0 : index
    %c0_5 = arith.constant 0 : index
    %5 = vector.load %arg17[%c0_4, %c0_5] : memref<40x64xf32, #tpu.memory_space<vmem>>, vector<4x64xf32>
    tpu.vector_store %arg17[%c0_4, %c0_5], %4 {strides = array<i32>} : memref<40x64xf32, #tpu.memory_space<vmem>>, vector<4x64xf32>,
    %cst_6 = arith.constant 0.000000e+00 : f32
    %6 = vector.broadcast %cst_6 : f32 to vector<4x64xf32>
    %c36_7 = arith.constant 36 : index
    %c0_8 = arith.constant 0 : index
    %7 = vector.load %arg17[%c36_7, %c0_8] : memref<40x64xf32, #tpu.memory_space<vmem>>, vector<4x64xf32>
    tpu.vector_store %arg17[%c36_7, %c0_8], %6 {strides = array<i32>} : memref<40x64xf32, #tpu.memory_space<vmem>>, vector<4x64xf32>,
    %cst_9 = arith.constant 0.000000e+00 : f32
    %8 = vector.broadcast %cst_9 : f32 to vector<4x32xf32>
    %c0_10 = arith.constant 0 : index
    %c0_11 = arith.constant 0 : index
    %9 = vector.load %arg18[%c0_10, %c0_11] : memref<40x32xf32, #tpu.memory_space<vmem>>, vector<4x32xf32>
    tpu.vector_store %arg18[%c0_10, %c0_11], %8 {strides = array<i32>} : memref<40x32xf32, #tpu.memory_space<vmem>>, vector<4x32xf32>,
    %cst_12 = arith.constant 0.000000e+00 : f32
    %10 = vector.broadcast %cst_12 : f32 to vector<4x32xf32>
    %c36_13 = arith.constant 36 : index
    %c0_14 = arith.constant 0 : index
    %11 = vector.load %arg18[%c36_13, %c0_14] : memref<40x32xf32, #tpu.memory_space<vmem>>, vector<4x32xf32>
    tpu.vector_store %arg18[%c36_13, %c0_14], %10 {strides = array<i32>} : memref<40x32xf32, #tpu.memory_space<vmem>>, vector<4x32xf32>,
    %c0_15 = arith.constant 0 : index
    %c0_16 = arith.constant 0 : index
    %12 = vector.load %arg0[%c0_15, %c0_16] : memref<2x12xf32, #tpu.memory_space<vmem>>, vector<2x12xf32>
    %c0_17 = arith.constant 0 : index
    %c0_18 = arith.constant 0 : index
    %13 = vector.load %arg1[%c0_17, %c0_18] : memref<12x256xf32, #tpu.memory_space<vmem>>, vector<12x256xf32>
    %cst_19 = arith.constant dense<0.000000e+00> : vector<2x256xf32>
    %14 = tpu.matmul %12, %13, %cst_19 {dimension_numbers = #tpu.dot_dimension_numbers<[1], [0], [0], [1], [0, 0, 1, 1], [], []>} : vector<2x12xf32>, vector<12x256xf32>, vector<2x256xf32> -> vector<2x256xf32>
    %c0_20 = arith.constant 0 : index
    %c0_21 = arith.constant 0 : index
    %15 = vector.load %arg2[%c0_20, %c0_21] : memref<1x256xf32, #tpu.memory_space<vmem>>, vector<1x256xf32>
    %16 = vector.broadcast %15 : vector<1x256xf32> to vector<2x256xf32>
    %17 = arith.addf %14, %16 : vector<2x256xf32>
    %cst_22 = arith.constant 0.000000e+00 : f32
    %18 = vector.broadcast %cst_22 : f32 to vector<2x256xf32>
    %19 = arith.maximumf %17, %18 : vector<2x256xf32>
    %c0_23 = arith.constant 0 : index
    %c0_24 = arith.constant 0 : index
    %20 = vector.load %arg3[%c0_23, %c0_24] : memref<256x2048xf32, #tpu.memory_space<vmem>>, vector<256x2048xf32>
    %cst_25 = arith.constant dense<0.000000e+00> : vector<2x2048xf32>
    %21 = tpu.matmul %19, %20, %cst_25 {dimension_numbers = #tpu.dot_dimension_numbers<[1], [0], [0], [1], [0, 0, 1, 1], [], []>} : vector<2x256xf32>, vector<256x2048xf32>, vector<2x2048xf32> -> vector<2x2048xf32>
    %c0_26 = arith.constant 0 : index
    %c0_27 = arith.constant 0 : index
    %22 = vector.load %arg4[%c0_26, %c0_27] : memref<1x2048xf32, #tpu.memory_space<vmem>>, vector<1x2048xf32>
    %23 = vector.broadcast %22 : vector<1x2048xf32> to vector<2x2048xf32>
    %24 = arith.addf %21, %23 : vector<2x2048xf32>
    %cst_28 = arith.constant 0.000000e+00 : f32
    %25 = vector.broadcast %cst_28 : f32 to vector<2x2048xf32>
    %26 = arith.maximumf %24, %25 : vector<2x2048xf32>
    %27 = vector.extract_strided_slice %26 {offsets = [0, 0], sizes = [2, 128], strides = [1, 1]} : vector<2x2048xf32> to vector<2x128xf32>
    %c4 = arith.constant 4 : index
    %c0_29 = arith.constant 0 : index
    %28 = vector.load %arg16[%c4, %c0_29] : memref<40x128xf32, #tpu.memory_space<vmem>>, vector<2x128xf32>
    tpu.vector_store %arg16[%c4, %c0_29], %27 {strides = array<i32>} : memref<40x128xf32, #tpu.memory_space<vmem>>, vector<2x128xf32>,
    %29 = vector.extract_strided_slice %26 {offsets = [0, 128], sizes = [2, 128], strides = [1, 1]} : vector<2x2048xf32> to vector<2x128xf32>
    %c6 = arith.constant 6 : index
    %c0_30 = arith.constant 0 : index
    %30 = vector.load %arg16[%c6, %c0_30] : memref<40x128xf32, #tpu.memory_space<vmem>>, vector<2x128xf32>
    tpu.vector_store %arg16[%c6, %c0_30], %29 {strides = array<i32>} : memref<40x128xf32, #tpu.memory_space<vmem>>, vector<2x128xf32>,
    %31 = vector.extract_strided_slice %26 {offsets = [0, 256], sizes = [2, 128], strides = [1, 1]} : vector<2x2048xf32> to vector<2x128xf32>
    %c8 = arith.constant 8 : index
    %c0_31 = arith.constant 0 : index
    %32 = vector.load %arg16[%c8, %c0_31] : memref<40x128xf32, #tpu.memory_space<vmem>>, vector<2x128xf32>
    tpu.vector_store %arg16[%c8, %c0_31], %31 {strides = array<i32>} : memref<40x128xf32, #tpu.memory_space<vmem>>, vector<2x128xf32>,
    %33 = vector.extract_strided_slice %26 {offsets = [0, 384], sizes = [2, 128], strides = [1, 1]} : vector<2x2048xf32> to vector<2x128xf32>
    %c10 = arith.constant 10 : index
    %c0_32 = arith.constant 0 : index
    %34 = vector.load %arg16[%c10, %c0_32] : memref<40x128xf32, #tpu.memory_space<vmem>>, vector<2x128xf32>
    tpu.vector_store %arg16[%c10, %c0_32], %33 {strides = array<i32>} : memref<40x128xf32, #tpu.memory_space<vmem>>, vector<2x128xf32>,
    %35 = vector.extract_strided_slice %26 {offsets = [0, 512], sizes = [2, 128], strides = [1, 1]} : vector<2x2048xf32> to vector<2x128xf32>
    %c12 = arith.constant 12 : index
    %c0_33 = arith.constant 0 : index
    %36 = vector.load %arg16[%c12, %c0_33] : memref<40x128xf32, #tpu.memory_space<vmem>>, vector<2x128xf32>
    tpu.vector_store %arg16[%c12, %c0_33], %35 {strides = array<i32>} : memref<40x128xf32, #tpu.memory_space<vmem>>, vector<2x128xf32>,
    %37 = vector.extract_strided_slice %26 {offsets = [0, 640], sizes = [2, 128], strides = [1, 1]} : vector<2x2048xf32> to vector<2x128xf32>
    %c14 = arith.constant 14 : index
    %c0_34 = arith.constant 0 : index
    %38 = vector.load %arg16[%c14, %c0_34] : memref<40x128xf32, #tpu.memory_space<vmem>>, vector<2x128xf32>
    tpu.vector_store %arg16[%c14, %c0_34], %37 {strides = array<i32>} : memref<40x128xf32, #tpu.memory_space<vmem>>, vector<2x128xf32>,
    %39 = vector.extract_strided_slice %26 {offsets = [0, 768], sizes = [2, 128], strides = [1, 1]} : vector<2x2048xf32> to vector<2x128xf32>
    %c16 = arith.constant 16 : index
    %c0_35 = arith.constant 0 : index
    %40 = vector.load %arg16[%c16, %c0_35] : memref<40x128xf32, #tpu.memory_space<vmem>>, vector<2x128xf32>
    tpu.vector_store %arg16[%c16, %c0_35], %39 {strides = array<i32>} : memref<40x128xf32, #tpu.memory_space<vmem>>, vector<2x128xf32>,
    %41 = vector.extract_strided_slice %26 {offsets = [0, 896], sizes = [2, 128], strides = [1, 1]} : vector<2x2048xf32> to vector<2x128xf32>
    %c18 = arith.constant 18 : index
    %c0_36 = arith.constant 0 : index
    %42 = vector.load %arg16[%c18, %c0_36] : memref<40x128xf32, #tpu.memory_space<vmem>>, vector<2x128xf32>
    tpu.vector_store %arg16[%c18, %c0_36], %41 {strides = array<i32>} : memref<40x128xf32, #tpu.memory_space<vmem>>, vector<2x128xf32>,
    %43 = vector.extract_strided_slice %26 {offsets = [0, 1024], sizes = [2, 128], strides = [1, 1]} : vector<2x2048xf32> to vector<2x128xf32>
    %c20 = arith.constant 20 : index
    %c0_37 = arith.constant 0 : index
    %44 = vector.load %arg16[%c20, %c0_37] : memref<40x128xf32, #tpu.memory_space<vmem>>, vector<2x128xf32>
    tpu.vector_store %arg16[%c20, %c0_37], %43 {strides = array<i32>} : memref<40x128xf32, #tpu.memory_space<vmem>>, vector<2x128xf32>,
    %45 = vector.extract_strided_slice %26 {offsets = [0, 1152], sizes = [2, 128], strides = [1, 1]} : vector<2x2048xf32> to vector<2x128xf32>
    %c22 = arith.constant 22 : index
    %c0_38 = arith.constant 0 : index
    %46 = vector.load %arg16[%c22, %c0_38] : memref<40x128xf32, #tpu.memory_space<vmem>>, vector<2x128xf32>
    tpu.vector_store %arg16[%c22, %c0_38], %45 {strides = array<i32>} : memref<40x128xf32, #tpu.memory_space<vmem>>, vector<2x128xf32>,
    %47 = vector.extract_strided_slice %26 {offsets = [0, 1280], sizes = [2, 128], strides = [1, 1]} : vector<2x2048xf32> to vector<2x128xf32>
    %c24 = arith.constant 24 : index
    %c0_39 = arith.constant 0 : index
    %48 = vector.load %arg16[%c24, %c0_39] : memref<40x128xf32, #tpu.memory_space<vmem>>, vector<2x128xf32>
    tpu.vector_store %arg16[%c24, %c0_39], %47 {strides = array<i32>} : memref<40x128xf32, #tpu.memory_space<vmem>>, vector<2x128xf32>,
    %49 = vector.extract_strided_slice %26 {offsets = [0, 1408], sizes = [2, 128], strides = [1, 1]} : vector<2x2048xf32> to vector<2x128xf32>
    %c26 = arith.constant 26 : index
    %c0_40 = arith.constant 0 : index
    %50 = vector.load %arg16[%c26, %c0_40] : memref<40x128xf32, #tpu.memory_space<vmem>>, vector<2x128xf32>
    tpu.vector_store %arg16[%c26, %c0_40], %49 {strides = array<i32>} : memref<40x128xf32, #tpu.memory_space<vmem>>, vector<2x128xf32>,
    %51 = vector.extract_strided_slice %26 {offsets = [0, 1536], sizes = [2, 128], strides = [1, 1]} : vector<2x2048xf32> to vector<2x128xf32>
    %c28 = arith.constant 28 : index
    %c0_41 = arith.constant 0 : index
    %52 = vector.load %arg16[%c28, %c0_41] : memref<40x128xf32, #tpu.memory_space<vmem>>, vector<2x128xf32>
    tpu.vector_store %arg16[%c28, %c0_41], %51 {strides = array<i32>} : memref<40x128xf32, #tpu.memory_space<vmem>>, vector<2x128xf32>,
    %53 = vector.extract_strided_slice %26 {offsets = [0, 1664], sizes = [2, 128], strides = [1, 1]} : vector<2x2048xf32> to vector<2x128xf32>
    %c30 = arith.constant 30 : index
    %c0_42 = arith.constant 0 : index
    %54 = vector.load %arg16[%c30, %c0_42] : memref<40x128xf32, #tpu.memory_space<vmem>>, vector<2x128xf32>
    tpu.vector_store %arg16[%c30, %c0_42], %53 {strides = array<i32>} : memref<40x128xf32, #tpu.memory_space<vmem>>, vector<2x128xf32>,
    %55 = vector.extract_strided_slice %26 {offsets = [0, 1792], sizes = [2, 128], strides = [1, 1]} : vector<2x2048xf32> to vector<2x128xf32>
    %c32 = arith.constant 32 : index
    %c0_43 = arith.constant 0 : index
    %56 = vector.load %arg16[%c32, %c0_43] : memref<40x128xf32, #tpu.memory_space<vmem>>, vector<2x128xf32>
    tpu.vector_store %arg16[%c32, %c0_43], %55 {strides = array<i32>} : memref<40x128xf32, #tpu.memory_space<vmem>>, vector<2x128xf32>,
    %57 = vector.extract_strided_slice %26 {offsets = [0, 1920], sizes = [2, 128], strides = [1, 1]} : vector<2x2048xf32> to vector<2x128xf32>
    %c34 = arith.constant 34 : index
    %c0_44 = arith.constant 0 : index
    %58 = vector.load %arg16[%c34, %c0_44] : memref<40x128xf32, #tpu.memory_space<vmem>>, vector<2x128xf32>
    tpu.vector_store %arg16[%c34, %c0_44], %57 {strides = array<i32>} : memref<40x128xf32, #tpu.memory_space<vmem>>, vector<2x128xf32>,
    %c0_45 = arith.constant 0 : index
    %c0_46 = arith.constant 0 : index
    %59 = vector.load %arg16[%c0_45, %c0_46] : memref<40x128xf32, #tpu.memory_space<vmem>>, vector<32x128xf32>
    %c0_47 = arith.constant 0 : index
    %c0_48 = arith.constant 0 : index
    %c0_49 = arith.constant 0 : index
    %60 = vector.load %arg5[%c0_47, %c0_48, %c0_49] : memref<5x128x64xf32, #tpu.memory_space<vmem>>, vector<1x128x64xf32>
    %61 = vector.shape_cast %60 : vector<1x128x64xf32> to vector<128x64xf32>
    %cst_50 = arith.constant dense<0.000000e+00> : vector<32x64xf32>
    %62 = tpu.matmul %59, %61, %cst_50 {dimension_numbers = #tpu.dot_dimension_numbers<[1], [0], [0], [1], [0, 0, 1, 1], [], []>} : vector<32x128xf32>, vector<128x64xf32>, vector<32x64xf32> -> vector<32x64xf32>
    %c2 = arith.constant 2 : index
    %c0_51 = arith.constant 0 : index
    %63 = vector.load %arg16[%c2, %c0_51] : memref<40x128xf32, #tpu.memory_space<vmem>>, vector<32x128xf32>
    %c1 = arith.constant 1 : index
    %c0_52 = arith.constant 0 : index
    %c0_53 = arith.constant 0 : index
    %64 = vector.load %arg5[%c1, %c0_52, %c0_53] : memref<5x128x64xf32, #tpu.memory_space<vmem>>, vector<1x128x64xf32>
    %65 = vector.shape_cast %64 : vector<1x128x64xf32> to vector<128x64xf32>
    %cst_54 = arith.constant dense<0.000000e+00> : vector<32x64xf32>
    %66 = tpu.matmul %63, %65, %cst_54 {dimension_numbers = #tpu.dot_dimension_numbers<[1], [0], [0], [1], [0, 0, 1, 1], [], []>} : vector<32x128xf32>, vector<128x64xf32>, vector<32x64xf32> -> vector<32x64xf32>
    %67 = arith.addf %62, %66 : vector<32x64xf32>
    %c4_55 = arith.constant 4 : index
    %c0_56 = arith.constant 0 : index
    %68 = vector.load %arg16[%c4_55, %c0_56] : memref<40x128xf32, #tpu.memory_space<vmem>>, vector<32x128xf32>
    %c2_57 = arith.constant 2 : index
    %c0_58 = arith.constant 0 : index
    %c0_59 = arith.constant 0 : index
    %69 = vector.load %arg5[%c2_57, %c0_58, %c0_59] : memref<5x128x64xf32, #tpu.memory_space<vmem>>, vector<1x128x64xf32>
    %70 = vector.shape_cast %69 : vector<1x128x64xf32> to vector<128x64xf32>
    %cst_60 = arith.constant dense<0.000000e+00> : vector<32x64xf32>
    %71 = tpu.matmul %68, %70, %cst_60 {dimension_numbers = #tpu.dot_dimension_numbers<[1], [0], [0], [1], [0, 0, 1, 1], [], []>} : vector<32x128xf32>, vector<128x64xf32>, vector<32x64xf32> -> vector<32x64xf32>
    %72 = arith.addf %67, %71 : vector<32x64xf32>
    %c6_61 = arith.constant 6 : index
    %c0_62 = arith.constant 0 : index
    %73 = vector.load %arg16[%c6_61, %c0_62] : memref<40x128xf32, #tpu.memory_space<vmem>>, vector<32x128xf32>
    %c3 = arith.constant 3 : index
    %c0_63 = arith.constant 0 : index
    %c0_64 = arith.constant 0 : index
    %74 = vector.load %arg5[%c3, %c0_63, %c0_64] : memref<5x128x64xf32, #tpu.memory_space<vmem>>, vector<1x128x64xf32>
    %75 = vector.shape_cast %74 : vector<1x128x64xf32> to vector<128x64xf32>
    %cst_65 = arith.constant dense<0.000000e+00> : vector<32x64xf32>
    %76 = tpu.matmul %73, %75, %cst_65 {dimension_numbers = #tpu.dot_dimension_numbers<[1], [0], [0], [1], [0, 0, 1, 1], [], []>} : vector<32x128xf32>, vector<128x64xf32>, vector<32x64xf32> -> vector<32x64xf32>
    %77 = arith.addf %72, %76 : vector<32x64xf32>
    %c8_66 = arith.constant 8 : index
    %c0_67 = arith.constant 0 : index
    %78 = vector.load %arg16[%c8_66, %c0_67] : memref<40x128xf32, #tpu.memory_space<vmem>>, vector<32x128xf32>
    %c4_68 = arith.constant 4 : index
    %c0_69 = arith.constant 0 : index
    %c0_70 = arith.constant 0 : index
    %79 = vector.load %arg5[%c4_68, %c0_69, %c0_70] : memref<5x128x64xf32, #tpu.memory_space<vmem>>, vector<1x128x64xf32>
    %80 = vector.shape_cast %79 : vector<1x128x64xf32> to vector<128x64xf32>
    %cst_71 = arith.constant dense<0.000000e+00> : vector<32x64xf32>
    %81 = tpu.matmul %78, %80, %cst_71 {dimension_numbers = #tpu.dot_dimension_numbers<[1], [0], [0], [1], [0, 0, 1, 1], [], []>} : vector<32x128xf32>, vector<128x64xf32>, vector<32x64xf32> -> vector<32x64xf32>
    %82 = arith.addf %77, %81 : vector<32x64xf32>
    %c0_72 = arith.constant 0 : index
    %c0_73 = arith.constant 0 : index
    %83 = vector.load %arg6[%c0_72, %c0_73] : memref<1x64xf32, #tpu.memory_space<vmem>>, vector<1x64xf32>
    %84 = vector.broadcast %83 : vector<1x64xf32> to vector<32x64xf32>
    %85 = arith.addf %82, %84 : vector<32x64xf32>
    %cst_74 = arith.constant dense<0.000000e+00> : vector<64xf32>
    %86 = vector.multi_reduction <add>, %85, %cst_74 [0] : vector<32x64xf32> to vector<64xf32>
    %87 = vector.shape_cast %86 : vector<64xf32> to vector<1x64xf32>
    %cst_75 = arith.constant 3.200000e+01 : f32
    %88 = vector.broadcast %cst_75 : f32 to vector<1x64xf32>
    %89 = arith.divf %87, %88 : vector<1x64xf32>
    %90 = vector.broadcast %89 : vector<1x64xf32> to vector<32x64xf32>
    %91 = arith.subf %85, %90 : vector<32x64xf32>
    %92 = arith.mulf %91, %91 : vector<32x64xf32>
    %cst_76 = arith.constant dense<0.000000e+00> : vector<64xf32>
    %93 = vector.multi_reduction <add>, %92, %cst_76 [0] : vector<32x64xf32> to vector<64xf32>
    %94 = vector.shape_cast %93 : vector<64xf32> to vector<1x64xf32>
    %cst_77 = arith.constant 3.200000e+01 : f32
    %95 = vector.broadcast %cst_77 : f32 to vector<1x64xf32>
    %96 = arith.divf %94, %95 : vector<1x64xf32>
    %cst_78 = arith.constant 9.99999974E-6 : f32
    %97 = vector.broadcast %cst_78 : f32 to vector<1x64xf32>
    %98 = arith.addf %96, %97 : vector<1x64xf32>
    %99 = math.rsqrt %98 : vector<1x64xf32>
    %100 = vector.broadcast %99 : vector<1x64xf32> to vector<32x64xf32>
    %101 = arith.mulf %91, %100 : vector<32x64xf32>
    %c0_79 = arith.constant 0 : index
    %c0_80 = arith.constant 0 : index
    %102 = vector.load %arg7[%c0_79, %c0_80] : memref<1x64xf32, #tpu.memory_space<vmem>>, vector<1x64xf32>
    %103 = vector.broadcast %102 : vector<1x64xf32> to vector<32x64xf32>
    %104 = arith.mulf %101, %103 : vector<32x64xf32>
    %c0_81 = arith.constant 0 : index
    %c0_82 = arith.constant 0 : index
    %105 = vector.load %arg8[%c0_81, %c0_82] : memref<1x64xf32, #tpu.memory_space<vmem>>, vector<1x64xf32>
    %106 = vector.broadcast %105 : vector<1x64xf32> to vector<32x64xf32>
    %107 = arith.addf %104, %106 : vector<32x64xf32>
    %cst_83 = arith.constant 0.000000e+00 : f32
    %108 = vector.broadcast %cst_83 : f32 to vector<32x64xf32>
    %109 = arith.maximumf %107, %108 : vector<32x64xf32>
    %c4_84 = arith.constant 4 : index
    %c0_85 = arith.constant 0 : index
    %110 = vector.load %arg17[%c4_84, %c0_85] : memref<40x64xf32, #tpu.memory_space<vmem>>, vector<32x64xf32>
    tpu.vector_store %arg17[%c4_84, %c0_85], %109 {strides = array<i32>} : memref<40x64xf32, #tpu.memory_space<vmem>>, vector<32x64xf32>,
    %c0_86 = arith.constant 0 : index
    %c0_87 = arith.constant 0 : index
    %111 = vector.load %arg17[%c0_86, %c0_87] : memref<40x64xf32, #tpu.memory_space<vmem>>, vector<32x64xf32>
    %c0_88 = arith.constant 0 : index
    %c0_89 = arith.constant 0 : index
    %c0_90 = arith.constant 0 : index
    %112 = vector.load %arg9[%c0_88, %c0_89, %c0_90] : memref<5x64x32xf32, #tpu.memory_space<vmem>>, vector<1x64x32xf32>
    %113 = vector.shape_cast %112 : vector<1x64x32xf32> to vector<64x32xf32>
    %cst_91 = arith.constant dense<0.000000e+00> : vector<32x32xf32>
    %114 = tpu.matmul %111, %113, %cst_91 {dimension_numbers = #tpu.dot_dimension_numbers<[1], [0], [0], [1], [0, 0, 1, 1], [], []>} : vector<32x64xf32>, vector<64x32xf32>, vector<32x32xf32> -> vector<32x32xf32>
    %c2_92 = arith.constant 2 : index
    %c0_93 = arith.constant 0 : index
    %115 = vector.load %arg17[%c2_92, %c0_93] : memref<40x64xf32, #tpu.memory_space<vmem>>, vector<32x64xf32>
    %c1_94 = arith.constant 1 : index
    %c0_95 = arith.constant 0 : index
    %c0_96 = arith.constant 0 : index
    %116 = vector.load %arg9[%c1_94, %c0_95, %c0_96] : memref<5x64x32xf32, #tpu.memory_space<vmem>>, vector<1x64x32xf32>
    %117 = vector.shape_cast %116 : vector<1x64x32xf32> to vector<64x32xf32>
    %cst_97 = arith.constant dense<0.000000e+00> : vector<32x32xf32>
    %118 = tpu.matmul %115, %117, %cst_97 {dimension_numbers = #tpu.dot_dimension_numbers<[1], [0], [0], [1], [0, 0, 1, 1], [], []>} : vector<32x64xf32>, vector<64x32xf32>, vector<32x32xf32> -> vector<32x32xf32>
    %119 = arith.addf %114, %118 : vector<32x32xf32>
    %c4_98 = arith.constant 4 : index
    %c0_99 = arith.constant 0 : index
    %120 = vector.load %arg17[%c4_98, %c0_99] : memref<40x64xf32, #tpu.memory_space<vmem>>, vector<32x64xf32>
    %c2_100 = arith.constant 2 : index
    %c0_101 = arith.constant 0 : index
    %c0_102 = arith.constant 0 : index
    %121 = vector.load %arg9[%c2_100, %c0_101, %c0_102] : memref<5x64x32xf32, #tpu.memory_space<vmem>>, vector<1x64x32xf32>
    %122 = vector.shape_cast %121 : vector<1x64x32xf32> to vector<64x32xf32>
    %cst_103 = arith.constant dense<0.000000e+00> : vector<32x32xf32>
    %123 = tpu.matmul %120, %122, %cst_103 {dimension_numbers = #tpu.dot_dimension_numbers<[1], [0], [0], [1], [0, 0, 1, 1], [], []>} : vector<32x64xf32>, vector<64x32xf32>, vector<32x32xf32> -> vector<32x32xf32>
    %124 = arith.addf %119, %123 : vector<32x32xf32>
    %c6_104 = arith.constant 6 : index
    %c0_105 = arith.constant 0 : index
    %125 = vector.load %arg17[%c6_104, %c0_105] : memref<40x64xf32, #tpu.memory_space<vmem>>, vector<32x64xf32>
    %c3_106 = arith.constant 3 : index
    %c0_107 = arith.constant 0 : index
    %c0_108 = arith.constant 0 : index
    %126 = vector.load %arg9[%c3_106, %c0_107, %c0_108] : memref<5x64x32xf32, #tpu.memory_space<vmem>>, vector<1x64x32xf32>
    %127 = vector.shape_cast %126 : vector<1x64x32xf32> to vector<64x32xf32>
    %cst_109 = arith.constant dense<0.000000e+00> : vector<32x32xf32>
    %128 = tpu.matmul %125, %127, %cst_109 {dimension_numbers = #tpu.dot_dimension_numbers<[1], [0], [0], [1], [0, 0, 1, 1], [], []>} : vector<32x64xf32>, vector<64x32xf32>, vector<32x32xf32> -> vector<32x32xf32>
    %129 = arith.addf %124, %128 : vector<32x32xf32>
    %c8_110 = arith.constant 8 : index
    %c0_111 = arith.constant 0 : index
    %130 = vector.load %arg17[%c8_110, %c0_111] : memref<40x64xf32, #tpu.memory_space<vmem>>, vector<32x64xf32>
    %c4_112 = arith.constant 4 : index
    %c0_113 = arith.constant 0 : index
    %c0_114 = arith.constant 0 : index
    %131 = vector.load %arg9[%c4_112, %c0_113, %c0_114] : memref<5x64x32xf32, #tpu.memory_space<vmem>>, vector<1x64x32xf32>
    %132 = vector.shape_cast %131 : vector<1x64x32xf32> to vector<64x32xf32>
    %cst_115 = arith.constant dense<0.000000e+00> : vector<32x32xf32>
    %133 = tpu.matmul %130, %132, %cst_115 {dimension_numbers = #tpu.dot_dimension_numbers<[1], [0], [0], [1], [0, 0, 1, 1], [], []>} : vector<32x64xf32>, vector<64x32xf32>, vector<32x32xf32> -> vector<32x32xf32>
    %134 = arith.addf %129, %133 : vector<32x32xf32>
    %c0_116 = arith.constant 0 : index
    %c0_117 = arith.constant 0 : index
    %135 = vector.load %arg10[%c0_116, %c0_117] : memref<1x32xf32, #tpu.memory_space<vmem>>, vector<1x32xf32>
    %136 = vector.broadcast %135 : vector<1x32xf32> to vector<32x32xf32>
    %137 = arith.addf %134, %136 : vector<32x32xf32>
    %cst_118 = arith.constant dense<0.000000e+00> : vector<32xf32>
    %138 = vector.multi_reduction <add>, %137, %cst_118 [0] : vector<32x32xf32> to vector<32xf32>
    %139 = vector.shape_cast %138 : vector<32xf32> to vector<1x32xf32>
    %cst_119 = arith.constant 3.200000e+01 : f32
    %140 = vector.broadcast %cst_119 : f32 to vector<1x32xf32>
    %141 = arith.divf %139, %140 : vector<1x32xf32>
    %142 = vector.broadcast %141 : vector<1x32xf32> to vector<32x32xf32>
    %143 = arith.subf %137, %142 : vector<32x32xf32>
    %144 = arith.mulf %143, %143 : vector<32x32xf32>
    %cst_120 = arith.constant dense<0.000000e+00> : vector<32xf32>
    %145 = vector.multi_reduction <add>, %144, %cst_120 [0] : vector<32x32xf32> to vector<32xf32>
    %146 = vector.shape_cast %145 : vector<32xf32> to vector<1x32xf32>
    %cst_121 = arith.constant 3.200000e+01 : f32
    %147 = vector.broadcast %cst_121 : f32 to vector<1x32xf32>
    %148 = arith.divf %146, %147 : vector<1x32xf32>
    %cst_122 = arith.constant 9.99999974E-6 : f32
    %149 = vector.broadcast %cst_122 : f32 to vector<1x32xf32>
    %150 = arith.addf %148, %149 : vector<1x32xf32>
    %151 = math.rsqrt %150 : vector<1x32xf32>
    %152 = vector.broadcast %151 : vector<1x32xf32> to vector<32x32xf32>
    %153 = arith.mulf %143, %152 : vector<32x32xf32>
    %c0_123 = arith.constant 0 : index
    %c0_124 = arith.constant 0 : index
    %154 = vector.load %arg11[%c0_123, %c0_124] : memref<1x32xf32, #tpu.memory_space<vmem>>, vector<1x32xf32>
    %155 = vector.broadcast %154 : vector<1x32xf32> to vector<32x32xf32>
    %156 = arith.mulf %153, %155 : vector<32x32xf32>
    %c0_125 = arith.constant 0 : index
    %c0_126 = arith.constant 0 : index
    %157 = vector.load %arg12[%c0_125, %c0_126] : memref<1x32xf32, #tpu.memory_space<vmem>>, vector<1x32xf32>
    %158 = vector.broadcast %157 : vector<1x32xf32> to vector<32x32xf32>
    %159 = arith.addf %156, %158 : vector<32x32xf32>
    %cst_127 = arith.constant 0.000000e+00 : f32
    %160 = vector.broadcast %cst_127 : f32 to vector<32x32xf32>
    %161 = arith.maximumf %159, %160 : vector<32x32xf32>
    %c4_128 = arith.constant 4 : index
    %c0_129 = arith.constant 0 : index
    %162 = vector.load %arg18[%c4_128, %c0_129] : memref<40x32xf32, #tpu.memory_space<vmem>>, vector<32x32xf32>
    tpu.vector_store %arg18[%c4_128, %c0_129], %161 {strides = array<i32>} : memref<40x32xf32, #tpu.memory_space<vmem>>, vector<32x32xf32>,
    %c0_130 = arith.constant 0 : index
    %c0_131 = arith.constant 0 : index
    %163 = vector.load %arg18[%c0_130, %c0_131] : memref<40x32xf32, #tpu.memory_space<vmem>>, vector<32x32xf32>
    %c0_132 = arith.constant 0 : index
    %c0_133 = arith.constant 0 : index
    %c0_134 = arith.constant 0 : index
    %164 = vector.load %arg13[%c0_132, %c0_133, %c0_134] : memref<5x32x128xf32, #tpu.memory_space<vmem>>, vector<1x32x128xf32>
    %165 = vector.shape_cast %164 : vector<1x32x128xf32> to vector<32x128xf32>
    %cst_135 = arith.constant dense<0.000000e+00> : vector<32x128xf32>
    %166 = tpu.matmul %163, %165, %cst_135 {dimension_numbers = #tpu.dot_dimension_numbers<[1], [0], [0], [1], [0, 0, 1, 1], [], []>} : vector<32x32xf32>, vector<32x128xf32>, vector<32x128xf32> -> vector<32x128xf32>
    %c2_136 = arith.constant 2 : index
    %c0_137 = arith.constant 0 : index
    %167 = vector.load %arg18[%c2_136, %c0_137] : memref<40x32xf32, #tpu.memory_space<vmem>>, vector<32x32xf32>
    %c1_138 = arith.constant 1 : index
    %c0_139 = arith.constant 0 : index
    %c0_140 = arith.constant 0 : index
    %168 = vector.load %arg13[%c1_138, %c0_139, %c0_140] : memref<5x32x128xf32, #tpu.memory_space<vmem>>, vector<1x32x128xf32>
    %169 = vector.shape_cast %168 : vector<1x32x128xf32> to vector<32x128xf32>
    %cst_141 = arith.constant dense<0.000000e+00> : vector<32x128xf32>
    %170 = tpu.matmul %167, %169, %cst_141 {dimension_numbers = #tpu.dot_dimension_numbers<[1], [0], [0], [1], [0, 0, 1, 1], [], []>} : vector<32x32xf32>, vector<32x128xf32>, vector<32x128xf32> -> vector<32x128xf32>
    %171 = arith.addf %166, %170 : vector<32x128xf32>
    %c4_142 = arith.constant 4 : index
    %c0_143 = arith.constant 0 : index
    %172 = vector.load %arg18[%c4_142, %c0_143] : memref<40x32xf32, #tpu.memory_space<vmem>>, vector<32x32xf32>
    %c2_144 = arith.constant 2 : index
    %c0_145 = arith.constant 0 : index
    %c0_146 = arith.constant 0 : index
    %173 = vector.load %arg13[%c2_144, %c0_145, %c0_146] : memref<5x32x128xf32, #tpu.memory_space<vmem>>, vector<1x32x128xf32>
    %174 = vector.shape_cast %173 : vector<1x32x128xf32> to vector<32x128xf32>
    %cst_147 = arith.constant dense<0.000000e+00> : vector<32x128xf32>
    %175 = tpu.matmul %172, %174, %cst_147 {dimension_numbers = #tpu.dot_dimension_numbers<[1], [0], [0], [1], [0, 0, 1, 1], [], []>} : vector<32x32xf32>, vector<32x128xf32>, vector<32x128xf32> -> vector<32x128xf32>
    %176 = arith.addf %171, %175 : vector<32x128xf32>
    %c6_148 = arith.constant 6 : index
    %c0_149 = arith.constant 0 : index
    %177 = vector.load %arg18[%c6_148, %c0_149] : memref<40x32xf32, #tpu.memory_space<vmem>>, vector<32x32xf32>
    %c3_150 = arith.constant 3 : index
    %c0_151 = arith.constant 0 : index
    %c0_152 = arith.constant 0 : index
    %178 = vector.load %arg13[%c3_150, %c0_151, %c0_152] : memref<5x32x128xf32, #tpu.memory_space<vmem>>, vector<1x32x128xf32>
    %179 = vector.shape_cast %178 : vector<1x32x128xf32> to vector<32x128xf32>
    %cst_153 = arith.constant dense<0.000000e+00> : vector<32x128xf32>
    %180 = tpu.matmul %177, %179, %cst_153 {dimension_numbers = #tpu.dot_dimension_numbers<[1], [0], [0], [1], [0, 0, 1, 1], [], []>} : vector<32x32xf32>, vector<32x128xf32>, vector<32x128xf32> -> vector<32x128xf32>
    %181 = arith.addf %176, %180 : vector<32x128xf32>
    %c8_154 = arith.constant 8 : index
    %c0_155 = arith.constant 0 : index
    %182 = vector.load %arg18[%c8_154, %c0_155] : memref<40x32xf32, #tpu.memory_space<vmem>>, vector<32x32xf32>
    %c4_156 = arith.constant 4 : index
    %c0_157 = arith.constant 0 : index
    %c0_158 = arith.constant 0 : index
    %183 = vector.load %arg13[%c4_156, %c0_157, %c0_158] : memref<5x32x128xf32, #tpu.memory_space<vmem>>, vector<1x32x128xf32>
    %184 = vector.shape_cast %183 : vector<1x32x128xf32> to vector<32x128xf32>
    %cst_159 = arith.constant dense<0.000000e+00> : vector<32x128xf32>
    %185 = tpu.matmul %182, %184, %cst_159 {dimension_numbers = #tpu.dot_dimension_numbers<[1], [0], [0], [1], [0, 0, 1, 1], [], []>} : vector<32x32xf32>, vector<32x128xf32>, vector<32x128xf32> -> vector<32x128xf32>
    %186 = arith.addf %181, %185 : vector<32x128xf32>
    %c0_160 = arith.constant 0 : index
    %c0_161 = arith.constant 0 : index
    %187 = vector.load %arg14[%c0_160, %c0_161] : memref<1x128xf32, #tpu.memory_space<vmem>>, vector<1x128xf32>
    %188 = vector.broadcast %187 : vector<1x128xf32> to vector<32x128xf32>
    %189 = arith.addf %186, %188 : vector<32x128xf32>
    %c0_162 = arith.constant 0 : index
    %c0_163 = arith.constant 0 : index
    %190 = vector.load %arg15[%c0_162, %c0_163] : memref<32x128xf32, #tpu.memory_space<vmem>>, vector<32x128xf32>
    tpu.vector_store %arg15[%c0_162, %c0_163], %189 {strides = array<i32>} : memref<32x128xf32, #tpu.memory_space<vmem>>, vector<32x128xf32>,
    return
  }
}

</mosaic_0001>

<bundles_post_ra>
// kernel: squeeze.1
= control target key start
LH: loop header
LB: loop body
LE: loop exit
PB: predicated region body
PF: predicated region fallthrough
CT: control target
= control target key end

     0   :  { %s130_s8 = smov 122   ;;  %s131_s9 = smov 124   ;;  %vm7_vm0 = vcmask 15360   ;;  %s221_s0 = inlined_call_operand.vmem [shape: f32[32], index: 0, kind: input, shape index: {}]   ;;  %s222_s1 = inlined_call_operand.vmem [shape: f32[16,2], index: 1, kind: output, shape index: {}]  }
   0x1   :  { %v4_v0 = vld [vmem:[%s221_s0] sm:$0x1]  ;;  %s129_s0 = smov 126   ;;  %s132_s10 = smov 120  }
   0x2   :  { %5 = vst [vmem:[#allocation0] sm:$0x1] %v4_v0  ;;  %s133_s11 = smov 118   ;;  %s134_s12 = smov 116  }
   0x3   :  { %s135_s13 = smov 114   ;;  %s136_s14 = smov 112  }
   0x4   :  { %s137_s17 = smov 110   ;;  %s138_s18 = smov 108  }
   0x5   :  { %s139_s19 = smov 106   ;;  %s140_s20 = smov 104  }
   0x6   :  { %s141_s21 = smov 102   ;;  %s142_s22 = smov 100  }
   0x7   :  { %s143_s23 = smov 98  }
   0x9   :  { %v9_v1 = vld [vmem:[#allocation0] sm:$0x1]  }
   0xa   :  { %v21_v2 = vld [vmem:[#allocation0] sm:$0x1]   ;;  %10 = vrot.lane.b32.xlu0 %v9_v1, %s129_s0 }
   0xb   :  { %22 = vrot.lane.b32.xlu1 %v21_v2, %s130_s8  ;;  %v15_v3 = vld [vmem:[#allocation0] sm:$0x1]  }
   0xc   :  { %v27_v4 = vld [vmem:[#allocation0] sm:$0x1]  }
   0xd   :  { %v33_v5 = vld [vmem:[#allocation0] sm:$0x1]  }
   0xe   :  { %16 = vrot.lane.b32.xlu0 %v15_v3, %s131_s9  ;;  %v39_v6 = vld [vmem:[#allocation0] sm:$0x1]  }
   0xf   :  { %28 = vrot.lane.b32.xlu1 %v27_v4, %s132_s10  ;;  %v45_v7 = vld [vmem:[#allocation0] sm:$0x1]  }
  0x10   :  { %v51_v8 = vld [vmem:[#allocation0] sm:$0x1]  }
  0x11   :  { %v57_v9 = vld [vmem:[#allocation0] sm:$0x1]  }
  0x12   :  { %34 = vrot.lane.b32.xlu0 %v33_v5, %s133_s11  ;;  %v63_v10 = vld [vmem:[#allocation0] sm:$0x1]  }
  0x13   :  { %40 = vrot.lane.b32.xlu1 %v39_v6, %s134_s12  ;;  %v6_v11 = vld [vmem:[#allocation0] sm:$0x1]  }
  0x14   :  { %8 = vst.msk [vmem:[%s222_s1] sm:$0x1] %vm7_vm0, %v6_v11   ;;  %v69_v12 = vld [vmem:[#allocation0] sm:$0x1]  }
  0x15   :  { %v75_v13 = vld [vmem:[#allocation0] sm:$0x1]  }
  0x16   :  { %46 = vrot.lane.b32.xlu0 %v45_v7, %s135_s13  ;;  %v81_v14 = vld [vmem:[#allocation0] sm:$0x1]  }
  0x17   :  { %52 = vrot.lane.b32.xlu1 %v51_v8, %s136_s14  ;;  %v87_v15 = vld [vmem:[#allocation0] sm:$0x1]  }
  0x18   :  { %v93_v16 = vld [vmem:[#allocation0] sm:$0x1]  }
  0x1a   :  { %58 = vrot.lane.b32.xlu0 %v57_v9, %s137_s17 }
  0x1b   :  { %64 = vrot.lane.b32.xlu1 %v63_v10, %s138_s18 }
  0x1e   :  { %70 = vrot.lane.b32.xlu0 %v69_v12, %s139_s19 }
  0x1f   :  { %76 = vrot.lane.b32.xlu1 %v75_v13, %s140_s20 }
  0x22   :  { %82 = vrot.lane.b32.xlu0 %v81_v14, %s141_s21 }
  0x23   :  { %88 = vrot.lane.b32.xlu1 %v87_v15, %s142_s22 }
  0x26   :  { %94 = vrot.lane.b32.xlu0 %v93_v16, %s143_s23 }
  0x7c   :  { %v11_v17 = vpop.permute.xlu0 %10  }
  0x7d   :  { %v23_v18 = vpop.permute.xlu1 %22   ;;  %99 = vst.msk [vmem:[%s222_s1 + $0x1] sm:$0x1] %vm7_vm0, %v11_v17  }
  0x7e   :  { %101 = vst.msk [vmem:[%s222_s1 + $0x3] sm:$0x1] %vm7_vm0, %v23_v18  }
  0x80   :  { %v17_v19 = vpop.permute.xlu0 %16  }
  0x81   :  { %v29_v20 = vpop.permute.xlu1 %28   ;;  %100 = vst.msk [vmem:[%s222_s1 + $0x2] sm:$0x1] %vm7_vm0, %v17_v19  }
  0x82   :  { %102 = vst.msk [vmem:[%s222_s1 + $0x4] sm:$0x1] %vm7_vm0, %v29_v20  }
  0x84   :  { %v35_v21 = vpop.permute.xlu0 %34  }
  0x85   :  { %v41_v22 = vpop.permute.xlu1 %40   ;;  %103 = vst.msk [vmem:[%s222_s1 + $0x5] sm:$0x1] %vm7_vm0, %v35_v21  }
  0x86   :  { %104 = vst.msk [vmem:[%s222_s1 + $0x6] sm:$0x1] %vm7_vm0, %v41_v22  }
  0x88   :  { %v47_v23 = vpop.permute.xlu0 %46  }
  0x89   :  { %v53_v24 = vpop.permute.xlu1 %52   ;;  %105 = vst.msk [vmem:[%s222_s1 + $0x7] sm:$0x1] %vm7_vm0, %v47_v23  }
  0x8a   :  { %106 = vst.msk [vmem:[%s222_s1 + $0x8] sm:$0x1] %vm7_vm0, %v53_v24  }
  0x8c   :  { %v59_v25 = vpop.permute.xlu0 %58  }
  0x8d   :  { %v65_v26 = vpop.permute.xlu1 %64   ;;  %107 = vst.msk [vmem:[%s222_s1 + $0x9] sm:$0x1] %vm7_vm0, %v59_v25  }
  0x8e   :  { %108 = vst.msk [vmem:[%s222_s1 + $0xa] sm:$0x1] %vm7_vm0, %v65_v26  }
  0x90   :  { %v71_v27 = vpop.permute.xlu0 %70  }
  0x91   :  { %v77_v28 = vpop.permute.xlu1 %76   ;;  %109 = vst.msk [vmem:[%s222_s1 + $0xb] sm:$0x1] %vm7_vm0, %v71_v27  }
  0x92   :  { %110 = vst.msk [vmem:[%s222_s1 + $0xc] sm:$0x1] %vm7_vm0, %v77_v28  }
  0x94   :  { %v83_v29 = vpop.permute.xlu0 %82  }
  0x95   :  { %v89_v30 = vpop.permute.xlu1 %88   ;;  %111 = vst.msk [vmem:[%s222_s1 + $0xd] sm:$0x1] %vm7_vm0, %v83_v29  }
  0x96   :  { %112 = vst.msk [vmem:[%s222_s1 + $0xe] sm:$0x1] %vm7_vm0, %v89_v30  }
  0x98   :  { %v95_v31 = vpop.permute.xlu0 %94  }
  0x99   :  { %113 = vst.msk [vmem:[%s222_s1 + $0xf] sm:$0x1] %vm7_vm0, %v95_v31  }

// kernel: decoder_cnn_forward.1
= control target key start
LH: loop header
LB: loop body
LE: loop exit
PB: predicated region body
PF: predicated region fallthrough
CT: control target
= control target key end

     0   :  { %vm79_vm0 = vcmask 1043456   ;;  %vm52_vm1 = vcmask 519168   ;;  %vm4770_vm2 = vmmov 1   ;;  %v4771_v3 = vmov 0.0   ;;  %s7044_s1 = inlined_call_operand.vmem [shape: f32[12,256], index: 1, kind: input, shape index: {}]   ;;  %s7045_s0 = inlined_call_operand.vmem [shape: f32[2,12], index: 0, kind: input, shape index: {}]   ;;  %s7046_s3 = inlined_call_operand.vmem [shape: f32[256,2048], index: 3, kind: input, shape index: {}]   ;;  %s7047_s2 = inlined_call_operand.vmem [shape: f32[1,256], index: 2, kind: input, shape index: {}]   ;;  %s7048_s5 = inlined_call_operand.vmem [shape: f32[5,128,64], index: 5, kind: input, shape index: {}]   ;;  %s7049_s4 = inlined_call_operand.vmem [shape: f32[1,2048], index: 4, kind: input, shape index: {}]   ;;  %s7050_s9 = inlined_call_operand.vmem [shape: f32[5,64,32], index: 9, kind: input, shape index: {}]   ;;  %s7051_s6 = inlined_call_operand.vmem [shape: f32[1,64], index: 6, kind: input, shape index: {}]   ;;  %s7052_s7 = inlined_call_operand.vmem [shape: f32[1,64], index: 7, kind: input, shape index: {}]   ;;  %s7053_s8 = inlined_call_operand.vmem [shape: f32[1,64], index: 8, kind: input, shape index: {}]   ;;  %s7054_s13 = inlined_call_operand.vmem [shape: f32[5,32,128], index: 13, kind: input, shape index: {}]   ;;  %s7055_s10 = inlined_call_operand.vmem [shape: f32[1,32], index: 10, kind: input, shape index: {}]   ;;  %s7056_s11 = inlined_call_operand.vmem [shape: f32[1,32], index: 11, kind: input, shape index: {}]   ;;  %s7057_s12 = inlined_call_operand.vmem [shape: f32[1,32], index: 12, kind: input, shape index: {}]   ;;  %s7058_s14 = inlined_call_operand.vmem [shape: f32[1,128], index: 14, kind: input, shape index: {}]   ;;  %s7059_s15 = inlined_call_operand.vmem [shape: f32[32,128], index: 15, kind: output, shape index: {}]  }
   0x1   :  { %v60_v0 = vld [vmem:[%s7044_s1 + $0x8] sm:$0xff]  ;;  %v62_v1 = vld [vmem:[%s7044_s1 + $0x18] sm:$0xf]  ;;  %vm4858_vm3 = vmpackc.low %vm79_vm0, %vm4770_vm2  ;;  %50 = vst [vmem:[#allocation2] sm:$0xf] %v4771_v3  ;;  %vm55_vm4 = vcmask 257024   ;;  %150 = vmatprep.mubr.f32.mxu0 %v4771_v3 }
   0x2   :  { %51 = vst [vmem:[#allocation2 + $0x24] sm:$0xf] %v4771_v3  ;;  %53 = vst.msk [vmem:[#allocation3] sm:$0xf] %vm52_vm1, %v4771_v3  ;;  %v3918_v4 = vpack.c.bf16 %v62_v1, %v60_v0  ;;  %v59_v5 = vld [vmem:[%s7044_s1] sm:$0xff]  ;;  %v160_v9 = vld [vmem:[%s7046_s3 + $0x8] sm:$0xff] }
   0x3   :  { %54 = vst.msk [vmem:[#allocation3 + $0x24] sm:$0xf] %vm52_vm1, %v4771_v3  ;;  %v61_v6 = vld [vmem:[%s7044_s1 + $0x10] sm:$0xf]  ;;  %v58_v8 = vld [vmem:[%s7045_s0] sm:$0x3] }
   0x4   :  { %56 = vst.msk [vmem:[#allocation4] sm:$0xf] %vm55_vm4, %v4771_v3  ;;  %57 = vst.msk [vmem:[#allocation4 + $0x24] sm:$0xf] %vm55_vm4, %v4771_v3  ;;  %v3921_v7 = vpack.c.bf16 %v61_v6, %v59_v5  ;;  %v176_v10 = vld [vmem:[%s7046_s3 + $0x88] sm:$0xff]  ;;  %v162_v11 = vld [vmem:[%s7046_s3 + $0x18] sm:$0xff]  ;;  %3920 = vmatprep.subr.msk.bf16.mxu0 %vm4858_vm3, %v3918_v4 }
   0x5   :  { %v3924_v12 = vpack.c.bf16 %v176_v10, %v160_v9  ;;  %v178_v13 = vld [vmem:[%s7046_s3 + $0x98] sm:$0xff]  ;;  %v159_v14 = vld [vmem:[%s7046_s3] sm:$0xff]  ;;  %vm75_vm5 = vcmask 97280   ;;  %v161_v18 = vld [vmem:[%s7046_s3 + $0x10] sm:$0xff]  ;;  %vm1907_vm6 = vcmask 523264   ;;  %vm2553_vm7 = vcmask 261120  }
   0x6   :  { %v175_v15 = vld [vmem:[%s7046_s3 + $0x80] sm:$0xff]  ;;  %3923 = vmatpush1.bf16.msk.msra.mxu0 %vm4858_vm3, %v3921_v7  ;;  %v3988_v16 = vpack.c.bf16 %v178_v13, %v162_v11  ;;  %v177_v19 = vld [vmem:[%s7046_s3 + $0x90] sm:$0xff]  ;;  %v192_v20 = vld [vmem:[%s7046_s3 + $0x108] sm:$0xff] }
   0x7   :  { %v3926_v17 = vpack.c.bf16 %v175_v15, %v159_v14  ;;  %3925 = vmatprep.subr.bf16.mxu1 %v3924_v12  ;;  %v3990_v21 = vpack.c.bf16 %v177_v19, %v161_v18  ;;  %v208_v22 = vld [vmem:[%s7046_s3 + $0x188] sm:$0xff]  ;;  %v194_v23 = vld [vmem:[%s7046_s3 + $0x118] sm:$0xff]  ;;  %v191_v27 = vld [vmem:[%s7046_s3 + $0x100] sm:$0xff] }
   0x8   :  { %v210_v24 = vld [vmem:[%s7046_s3 + $0x198] sm:$0xff]  ;;  %3989 = vmatprep.subr.bf16.mxu0 %v3988_v16  ;;  %v3928_v25 = vpack.c.bf16 %v208_v22, %v192_v20  ;;  %v207_v28 = vld [vmem:[%s7046_s3 + $0x180] sm:$0xff]  ;;  %v193_v29 = vld [vmem:[%s7046_s3 + $0x110] sm:$0xff] }
   0x9   :  { %3927 = vmatpush1.bf16.msra.mxu1 %v3926_v17  ;;  %v3992_v26 = vpack.c.bf16 %v210_v24, %v194_v23  ;;  %3188 = vmatmul.mubr.msk.f32.vlgmr.msra.gmra.mrb[0].mxu0 %vm75_vm5, %v58_v8  ;;  %v3930_v30 = vpack.c.bf16 %v207_v28, %v191_v27  ;;  %v209_v31 = vld [vmem:[%s7046_s3 + $0x190] sm:$0xff]  ;;  %v224_v32 = vld [vmem:[%s7046_s3 + $0x208] sm:$0xff]  ;;  %v226_v36 = vld [vmem:[%s7046_s3 + $0x218] sm:$0xff] }
   0xa   :  { %v240_v33 = vld [vmem:[%s7046_s3 + $0x288] sm:$0xff]  ;;  %3991 = vmatpush1.bf16.msra.mxu0 %v3990_v21  ;;  %3929 = vmatprep.subr.bf16.mxu1 %v3928_v25  ;;  %v3994_v34 = vpack.c.bf16 %v209_v31, %v193_v29  ;;  %v242_v37 = vld [vmem:[%s7046_s3 + $0x298] sm:$0xff]  ;;  %v223_v38 = vld [vmem:[%s7046_s3 + $0x200] sm:$0xff] }
   0xb   :  { %v3932_v35 = vpack.c.bf16 %v240_v33, %v224_v32  ;;  %3993 = vmatprep.subr.bf16.mxu0 %v3992_v26  ;;  %v3996_v39 = vpack.c.bf16 %v242_v37, %v226_v36  ;;  %v239_v40 = vld [vmem:[%s7046_s3 + $0x280] sm:$0xff]  ;;  %v225_v41 = vld [vmem:[%s7046_s3 + $0x210] sm:$0xff]  ;;  %v256_v44 = vld [vmem:[%s7046_s3 + $0x308] sm:$0xff] }
   0xc   :  { %v241_v42 = vld [vmem:[%s7046_s3 + $0x290] sm:$0xff]  ;;  %v3934_v43 = vpack.c.bf16 %v239_v40, %v223_v38  ;;  %v272_v45 = vld [vmem:[%s7046_s3 + $0x388] sm:$0xff]  ;;  %v258_v46 = vld [vmem:[%s7046_s3 + $0x318] sm:$0xff] }
   0xd   :  { %3931 = vmatpush1.bf16.msra.mxu1 %v3930_v30  ;;  %v3936_v47 = vpack.c.bf16 %v272_v45, %v256_v44  ;;  %v274_v48 = vld [vmem:[%s7046_s3 + $0x398] sm:$0xff]  ;;  %v255_v49 = vld [vmem:[%s7046_s3 + $0x300] sm:$0xff]  ;;  %v3998_v51 = vpack.c.bf16 %v241_v42, %v225_v41  ;;  %v288_v52 = vld [vmem:[%s7046_s3 + $0x408] sm:$0xff] }
   0xe   :  { %3933 = vmatprep.subr.bf16.mxu1 %v3932_v35  ;;  %v271_v50 = vld [vmem:[%s7046_s3 + $0x380] sm:$0xff]  ;;  %3995 = vmatpush1.bf16.msra.mxu0 %v3994_v34  ;;  %v4000_v53 = vpack.c.bf16 %v274_v48, %v258_v46  ;;  %v257_v54 = vld [vmem:[%s7046_s3 + $0x310] sm:$0xff]  ;;  %v304_v56 = vld [vmem:[%s7046_s3 + $0x488] sm:$0xff] }
   0xf   :  { %3997 = vmatprep.subr.bf16.mxu0 %v3996_v39  ;;  %v273_v55 = vld [vmem:[%s7046_s3 + $0x390] sm:$0xff]  ;;  %v3938_v57 = vpack.c.bf16 %v271_v50, %v255_v49  ;;  %v290_v58 = vld [vmem:[%s7046_s3 + $0x418] sm:$0xff]  ;;  %v3940_v60 = vpack.c.bf16 %v304_v56, %v288_v52  ;;  %v287_v61 = vld [vmem:[%s7046_s3 + $0x400] sm:$0xff] }
  0x10   :  { %v306_v59 = vld [vmem:[%s7046_s3 + $0x498] sm:$0xff]  ;;  %v303_v62 = vld [vmem:[%s7046_s3 + $0x480] sm:$0xff]  ;;  %v4002_v63 = vpack.c.bf16 %v273_v55, %v257_v54  ;;  %v320_v0 = vld [vmem:[%s7046_s3 + $0x508] sm:$0xff] }
  0x11   :  { %3935 = vmatpush1.bf16.msra.mxu1 %v3934_v43  ;;  %v336_v1 = vld [vmem:[%s7046_s3 + $0x588] sm:$0xff]  ;;  %v4004_v2 = vpack.c.bf16 %v306_v59, %v290_v58  ;;  %v289_v3 = vld [vmem:[%s7046_s3 + $0x410] sm:$0xff]  ;;  %v3942_v5 = vpack.c.bf16 %v303_v62, %v287_v61  ;;  %v322_v6 = vld [vmem:[%s7046_s3 + $0x518] sm:$0xff] }
  0x12   :  { %3937 = vmatprep.subr.bf16.mxu1 %v3936_v47  ;;  %3999 = vmatpush1.bf16.msra.mxu0 %v3998_v51  ;;  %v305_v4 = vld [vmem:[%s7046_s3 + $0x490] sm:$0xff]  ;;  %v338_v7 = vld [vmem:[%s7046_s3 + $0x598] sm:$0xff]  ;;  %v3944_v8 = vpack.c.bf16 %v336_v1, %v320_v0  ;;  %v319_v9 = vld [vmem:[%s7046_s3 + $0x500] sm:$0xff] }
  0x13   :  { %4001 = vmatprep.subr.bf16.mxu0 %v4000_v53  ;;  %v335_v10 = vld [vmem:[%s7046_s3 + $0x580] sm:$0xff]  ;;  %v4006_v11 = vpack.c.bf16 %v305_v4, %v289_v3  ;;  %v352_v12 = vld [vmem:[%s7046_s3 + $0x608] sm:$0xff]  ;;  %v4008_v14 = vpack.c.bf16 %v338_v7, %v322_v6  ;;  %v321_v15 = vld [vmem:[%s7046_s3 + $0x510] sm:$0xff] }
  0x14   :  { %v368_v13 = vld [vmem:[%s7046_s3 + $0x688] sm:$0xff]  ;;  %v337_v16 = vld [vmem:[%s7046_s3 + $0x590] sm:$0xff]  ;;  %v3946_v17 = vpack.c.bf16 %v335_v10, %v319_v9  ;;  %v354_v18 = vld [vmem:[%s7046_s3 + $0x618] sm:$0xff] }
  0x15   :  { %3939 = vmatpush1.bf16.msra.mxu1 %v3938_v57  ;;  %v370_v19 = vld [vmem:[%s7046_s3 + $0x698] sm:$0xff]  ;;  %v3948_v20 = vpack.c.bf16 %v368_v13, %v352_v12  ;;  %v351_v21 = vld [vmem:[%s7046_s3 + $0x600] sm:$0xff]  ;;  %v4010_v23 = vpack.c.bf16 %v337_v16, %v321_v15  ;;  %v384_v24 = vld [vmem:[%s7046_s3 + $0x708] sm:$0xff] }
  0x16   :  { %3941 = vmatprep.subr.bf16.mxu1 %v3940_v60  ;;  %4003 = vmatpush1.bf16.msra.mxu0 %v4002_v63  ;;  %v367_v22 = vld [vmem:[%s7046_s3 + $0x680] sm:$0xff]  ;;  %v400_v25 = vld [vmem:[%s7046_s3 + $0x788] sm:$0xff]  ;;  %v4012_v26 = vpack.c.bf16 %v370_v19, %v354_v18  ;;  %v353_v27 = vld [vmem:[%s7046_s3 + $0x610] sm:$0xff] }
  0x17   :  { %4005 = vmatprep.subr.bf16.mxu0 %v4004_v2  ;;  %v369_v28 = vld [vmem:[%s7046_s3 + $0x690] sm:$0xff]  ;;  %v3950_v29 = vpack.c.bf16 %v367_v22, %v351_v21  ;;  %v386_v30 = vld [vmem:[%s7046_s3 + $0x718] sm:$0xff]  ;;  %v3952_v32 = vpack.c.bf16 %v400_v25, %v384_v24  ;;  %v383_v33 = vld [vmem:[%s7046_s3 + $0x700] sm:$0xff] }
  0x18   :  { %v402_v31 = vld [vmem:[%s7046_s3 + $0x798] sm:$0xff]  ;;  %v399_v34 = vld [vmem:[%s7046_s3 + $0x780] sm:$0xff]  ;;  %v4014_v35 = vpack.c.bf16 %v369_v28, %v353_v27  ;;  %v416_v36 = vld [vmem:[%s7046_s3 + $0x808] sm:$0xff] }
  0x19   :  { %3943 = vmatpush1.bf16.msra.mxu1 %v3942_v5  ;;  %v432_v37 = vld [vmem:[%s7046_s3 + $0x888] sm:$0xff]  ;;  %v4016_v38 = vpack.c.bf16 %v402_v31, %v386_v30  ;;  %v385_v39 = vld [vmem:[%s7046_s3 + $0x710] sm:$0xff]  ;;  %v3954_v41 = vpack.c.bf16 %v399_v34, %v383_v33  ;;  %v418_v42 = vld [vmem:[%s7046_s3 + $0x818] sm:$0xff] }
  0x1a   :  { %3945 = vmatprep.subr.bf16.mxu1 %v3944_v8  ;;  %4007 = vmatpush1.bf16.msra.mxu0 %v4006_v11  ;;  %v401_v40 = vld [vmem:[%s7046_s3 + $0x790] sm:$0xff]  ;;  %v434_v43 = vld [vmem:[%s7046_s3 + $0x898] sm:$0xff]  ;;  %v3956_v44 = vpack.c.bf16 %v432_v37, %v416_v36  ;;  %v415_v45 = vld [vmem:[%s7046_s3 + $0x800] sm:$0xff] }
  0x1b   :  { %4009 = vmatprep.subr.bf16.mxu0 %v4008_v14  ;;  %v431_v46 = vld [vmem:[%s7046_s3 + $0x880] sm:$0xff]  ;;  %v4018_v47 = vpack.c.bf16 %v401_v40, %v385_v39  ;;  %v448_v48 = vld [vmem:[%s7046_s3 + $0x908] sm:$0xff]  ;;  %v4020_v50 = vpack.c.bf16 %v434_v43, %v418_v42  ;;  %v417_v51 = vld [vmem:[%s7046_s3 + $0x810] sm:$0xff] }
  0x1c   :  { %v464_v49 = vld [vmem:[%s7046_s3 + $0x988] sm:$0xff]  ;;  %v433_v52 = vld [vmem:[%s7046_s3 + $0x890] sm:$0xff]  ;;  %v3958_v53 = vpack.c.bf16 %v431_v46, %v415_v45  ;;  %v450_v54 = vld [vmem:[%s7046_s3 + $0x918] sm:$0xff] }
  0x1d   :  { %3947 = vmatpush1.bf16.msra.mxu1 %v3946_v17  ;;  %v466_v55 = vld [vmem:[%s7046_s3 + $0x998] sm:$0xff]  ;;  %v3960_v56 = vpack.c.bf16 %v464_v49, %v448_v48  ;;  %v447_v57 = vld [vmem:[%s7046_s3 + $0x900] sm:$0xff]  ;;  %v4022_v59 = vpack.c.bf16 %v433_v52, %v417_v51  ;;  %v480_v60 = vld [vmem:[%s7046_s3 + $0xa08] sm:$0xff] }
  0x1e   :  { %3949 = vmatprep.subr.bf16.mxu1 %v3948_v20  ;;  %4011 = vmatpush1.bf16.msra.mxu0 %v4010_v23  ;;  %v463_v58 = vld [vmem:[%s7046_s3 + $0x980] sm:$0xff]  ;;  %v496_v61 = vld [vmem:[%s7046_s3 + $0xa88] sm:$0xff]  ;;  %v4024_v62 = vpack.c.bf16 %v466_v55, %v450_v54  ;;  %v449_v63 = vld [vmem:[%s7046_s3 + $0x910] sm:$0xff] }
  0x1f   :  { %4013 = vmatprep.subr.bf16.mxu0 %v4012_v26  ;;  %v465_v0 = vld [vmem:[%s7046_s3 + $0x990] sm:$0xff]  ;;  %v3962_v1 = vpack.c.bf16 %v463_v58, %v447_v57  ;;  %v482_v2 = vld [vmem:[%s7046_s3 + $0xa18] sm:$0xff]  ;;  %v3964_v4 = vpack.c.bf16 %v496_v61, %v480_v60  ;;  %v479_v5 = vld [vmem:[%s7046_s3 + $0xa00] sm:$0xff] }
  0x20   :  { %v498_v3 = vld [vmem:[%s7046_s3 + $0xa98] sm:$0xff]  ;;  %v495_v6 = vld [vmem:[%s7046_s3 + $0xa80] sm:$0xff]  ;;  %v4026_v7 = vpack.c.bf16 %v465_v0, %v449_v63  ;;  %v512_v8 = vld [vmem:[%s7046_s3 + $0xb08] sm:$0xff] }
  0x21   :  { %3951 = vmatpush1.bf16.msra.mxu1 %v3950_v29  ;;  %v528_v9 = vld [vmem:[%s7046_s3 + $0xb88] sm:$0xff]  ;;  %v4028_v10 = vpack.c.bf16 %v498_v3, %v482_v2  ;;  %v481_v11 = vld [vmem:[%s7046_s3 + $0xa10] sm:$0xff]  ;;  %v3966_v13 = vpack.c.bf16 %v495_v6, %v479_v5  ;;  %v514_v14 = vld [vmem:[%s7046_s3 + $0xb18] sm:$0xff] }
  0x22   :  { %3953 = vmatprep.subr.bf16.mxu1 %v3952_v32  ;;  %4015 = vmatpush1.bf16.msra.mxu0 %v4014_v35  ;;  %v497_v12 = vld [vmem:[%s7046_s3 + $0xa90] sm:$0xff]  ;;  %v530_v15 = vld [vmem:[%s7046_s3 + $0xb98] sm:$0xff]  ;;  %v3968_v16 = vpack.c.bf16 %v528_v9, %v512_v8  ;;  %v511_v17 = vld [vmem:[%s7046_s3 + $0xb00] sm:$0xff] }
  0x23   :  { %4017 = vmatprep.subr.bf16.mxu0 %v4016_v38  ;;  %v527_v18 = vld [vmem:[%s7046_s3 + $0xb80] sm:$0xff]  ;;  %v4030_v19 = vpack.c.bf16 %v497_v12, %v481_v11  ;;  %v544_v20 = vld [vmem:[%s7046_s3 + $0xc08] sm:$0xff]  ;;  %v4032_v22 = vpack.c.bf16 %v530_v15, %v514_v14  ;;  %v513_v23 = vld [vmem:[%s7046_s3 + $0xb10] sm:$0xff]  ;;  %v65_v15 = vlaneseq }
  0x24   :  { %v560_v21 = vld [vmem:[%s7046_s3 + $0xc88] sm:$0xff]  ;;  %v529_v24 = vld [vmem:[%s7046_s3 + $0xb90] sm:$0xff]  ;;  %v3970_v25 = vpack.c.bf16 %v527_v18, %v511_v17  ;;  %v546_v26 = vld [vmem:[%s7046_s3 + $0xc18] sm:$0xff] }
  0x25   :  { %3955 = vmatpush1.bf16.msra.mxu1 %v3954_v41  ;;  %v562_v27 = vld [vmem:[%s7046_s3 + $0xc98] sm:$0xff]  ;;  %v3972_v28 = vpack.c.bf16 %v560_v21, %v544_v20  ;;  %v543_v29 = vld [vmem:[%s7046_s3 + $0xc00] sm:$0xff]  ;;  %v4034_v31 = vpack.c.bf16 %v529_v24, %v513_v23  ;;  %v576_v32 = vld [vmem:[%s7046_s3 + $0xd08] sm:$0xff] }
  0x26   :  { %3957 = vmatprep.subr.bf16.mxu1 %v3956_v44  ;;  %4019 = vmatpush1.bf16.msra.mxu0 %v4018_v47  ;;  %v559_v30 = vld [vmem:[%s7046_s3 + $0xc80] sm:$0xff]  ;;  %v592_v33 = vld [vmem:[%s7046_s3 + $0xd88] sm:$0xff]  ;;  %v4036_v34 = vpack.c.bf16 %v562_v27, %v546_v26  ;;  %v545_v35 = vld [vmem:[%s7046_s3 + $0xc10] sm:$0xff] }
  0x27   :  { %4021 = vmatprep.subr.bf16.mxu0 %v4020_v50  ;;  %v561_v36 = vld [vmem:[%s7046_s3 + $0xc90] sm:$0xff]  ;;  %v3974_v37 = vpack.c.bf16 %v559_v30, %v543_v29  ;;  %v578_v38 = vld [vmem:[%s7046_s3 + $0xd18] sm:$0xff]  ;;  %v3976_v40 = vpack.c.bf16 %v592_v33, %v576_v32  ;;  %v575_v41 = vld [vmem:[%s7046_s3 + $0xd00] sm:$0xff] }
  0x28   :  { %v594_v39 = vld [vmem:[%s7046_s3 + $0xd98] sm:$0xff]  ;;  %v591_v42 = vld [vmem:[%s7046_s3 + $0xd80] sm:$0xff]  ;;  %v4038_v43 = vpack.c.bf16 %v561_v36, %v545_v35  ;;  %v608_v44 = vld [vmem:[%s7046_s3 + $0xe08] sm:$0xff] }
  0x29   :  { %3959 = vmatpush1.bf16.msra.mxu1 %v3958_v53  ;;  %v624_v45 = vld [vmem:[%s7046_s3 + $0xe88] sm:$0xff]  ;;  %v4040_v46 = vpack.c.bf16 %v594_v39, %v578_v38  ;;  %v577_v47 = vld [vmem:[%s7046_s3 + $0xd10] sm:$0xff]  ;;  %v3978_v49 = vpack.c.bf16 %v591_v42, %v575_v41  ;;  %v610_v50 = vld [vmem:[%s7046_s3 + $0xe18] sm:$0xff] }
  0x2a   :  { %3961 = vmatprep.subr.bf16.mxu1 %v3960_v56  ;;  %4023 = vmatpush1.bf16.msra.mxu0 %v4022_v59  ;;  %v593_v48 = vld [vmem:[%s7046_s3 + $0xd90] sm:$0xff]  ;;  %v626_v51 = vld [vmem:[%s7046_s3 + $0xe98] sm:$0xff]  ;;  %v3980_v52 = vpack.c.bf16 %v624_v45, %v608_v44  ;;  %v607_v53 = vld [vmem:[%s7046_s3 + $0xe00] sm:$0xff] }
  0x2b   :  { %4025 = vmatprep.subr.bf16.mxu0 %v4024_v62  ;;  %v623_v54 = vld [vmem:[%s7046_s3 + $0xe80] sm:$0xff]  ;;  %v4042_v55 = vpack.c.bf16 %v593_v48, %v577_v47  ;;  %v4044_v56 = vpack.c.bf16 %v626_v51, %v610_v50  ;;  %v609_v57 = vld [vmem:[%s7046_s3 + $0xe10] sm:$0xff]  ;;  %v640_v61 = vld [vmem:[%s7046_s3 + $0xf08] sm:$0xff] }
  0x2c   :  { %v625_v58 = vld [vmem:[%s7046_s3 + $0xe90] sm:$0xff]  ;;  %v3982_v59 = vpack.c.bf16 %v623_v54, %v607_v53  ;;  %v656_v62 = vld [vmem:[%s7046_s3 + $0xf88] sm:$0xff]  ;;  %v642_v63 = vld [vmem:[%s7046_s3 + $0xf18] sm:$0xff] }
  0x2d   :  { %3963 = vmatpush1.bf16.msra.mxu1 %v3962_v1  ;;  %v4046_v60 = vpack.c.bf16 %v625_v58, %v609_v57  ;;  %v3984_v0 = vpack.c.bf16 %v656_v62, %v640_v61  ;;  %v658_v1 = vld [vmem:[%s7046_s3 + $0xf98] sm:$0xff]  ;;  %v639_v2 = vld [vmem:[%s7046_s3 + $0xf00] sm:$0xff]  ;;  %v641_v6 = vld [vmem:[%s7046_s3 + $0xf10] sm:$0xff] }
  0x2e   :  { %3965 = vmatprep.subr.bf16.mxu1 %v3964_v4  ;;  %4027 = vmatpush1.bf16.msra.mxu0 %v4026_v7  ;;  %v655_v3 = vld [vmem:[%s7046_s3 + $0xf80] sm:$0xff]  ;;  %v4048_v4 = vpack.c.bf16 %v658_v1, %v642_v63  ;;  %v657_v7 = vld [vmem:[%s7046_s3 + $0xf90] sm:$0xff]  ;;  %v164_v9 = vld [vmem:[%s7046_s3 + $0x28] sm:$0xff] }
  0x2f   :  { %4029 = vmatprep.subr.bf16.mxu0 %v4028_v10  ;;  %v3986_v5 = vpack.c.bf16 %v655_v3, %v639_v2  ;;  %v4050_v8 = vpack.c.bf16 %v657_v7, %v641_v6  ;;  %v180_v10 = vld [vmem:[%s7046_s3 + $0xa8] sm:$0xff]  ;;  %v166_v11 = vld [vmem:[%s7046_s3 + $0x38] sm:$0xff]  ;;  %v63_v18 = vld [vmem:[%s7047_s2] sm:$0x3] }
  0x30   :  { %v4052_v12 = vpack.c.bf16 %v180_v10, %v164_v9  ;;  %v163_v23 = vld [vmem:[%s7046_s3 + $0x20] sm:$0xff]  ;;  %v165_v27 = vld [vmem:[%s7046_s3 + $0x30] sm:$0xff]  ;;  %v196_v30 = vld [vmem:[%s7046_s3 + $0x128] sm:$0xff] }
  0x31   :  { %3967 = vmatpush1.bf16.msra.mxu1 %v3966_v13  ;;  %v182_v13 = vld [vmem:[%s7046_s3 + $0xb8] sm:$0xff]  ;;  %v179_v26 = vld [vmem:[%s7046_s3 + $0xa0] sm:$0xff]  ;;  %v213_v41 = vld [vmem:[%s7046_s3 + $0x1b0] sm:$0xff] }
  0x32   :  { %3969 = vmatprep.subr.bf16.mxu1 %v3968_v16  ;;  %4031 = vmatpush1.bf16.msra.mxu0 %v4030_v19  ;;  %v4116_v14 = vpack.c.bf16 %v182_v13, %v166_v11  ;;  %v5272_v16 = vshrl.u32 %v65_v15, 7  ;;  %v198_v32 = vld [vmem:[%s7046_s3 + $0x138] sm:$0xff]  ;;  %v4054_v35 = vpack.c.bf16 %v179_v26, %v163_v23  ;;  %v211_v38 = vld [vmem:[%s7046_s3 + $0x1a0] sm:$0xff]  ;;  %v228_v42 = vld [vmem:[%s7046_s3 + $0x228] sm:$0xff] }
  0x33   :  { %4033 = vmatprep.subr.bf16.mxu0 %v4032_v22  ;;  %v214_v33 = vld [vmem:[%s7046_s3 + $0x1b8] sm:$0xff]  ;;  %v244_v45 = vld [vmem:[%s7046_s3 + $0x2a8] sm:$0xff]  ;;  %v227_v50 = vld [vmem:[%s7046_s3 + $0x220] sm:$0xff] }
  0x34   :  { %v5275_v17 = vsub.s32 0, %v5272_v16  ;;  %v5281_v19 = vsub.s32 1, %v5272_v16  ;;  %v4120_v44 = vpack.c.bf16 %v214_v33, %v198_v32  ;;  %v246_v47 = vld [vmem:[%s7046_s3 + $0x2b8] sm:$0xff]  ;;  %v243_v51 = vld [vmem:[%s7046_s3 + $0x2a0] sm:$0xff]  ;;  %v229_v54 = vld [vmem:[%s7046_s3 + $0x230] sm:$0xff] }
  0x35   :  { %3971 = vmatpush1.bf16.msra.mxu1 %v3970_v25  ;;  %v276_v57 = vld [vmem:[%s7046_s3 + $0x3a8] sm:$0xff]  ;;  %v262_v58 = vld [vmem:[%s7046_s3 + $0x338] sm:$0xff]  ;;  %v259_v62 = vld [vmem:[%s7046_s3 + $0x320] sm:$0xff] }
  0x36   :  { %3973 = vmatprep.subr.bf16.mxu1 %v3972_v28  ;;  %4035 = vmatpush1.bf16.msra.mxu0 %v4034_v31  ;;  %v68_v20 = vrot.slane %v63_v18, %v5275_v17  ;;  %v72_v21 = vrot.slane %v63_v18, %v5281_v19  ;;  %v181_v28 = vld [vmem:[%s7046_s3 + $0xb0] sm:$0xff]  ;;  %v212_v31 = vld [vmem:[%s7046_s3 + $0x1a8] sm:$0xff]  ;;  %v275_v63 = vld [vmem:[%s7046_s3 + $0x3a0] sm:$0xff] }
  0x37   :  { %4037 = vmatprep.subr.bf16.mxu0 %v4036_v34  ;;  %v4118_v36 = vpack.c.bf16 %v181_v28, %v165_v27  ;;  %v261_v2 = vld [vmem:[%s7046_s3 + $0x330] sm:$0xff]  ;;  %v294_v6 = vld [vmem:[%s7046_s3 + $0x438] sm:$0xff]  ;;  %v291_v10 = vld [vmem:[%s7046_s3 + $0x420] sm:$0xff] }
  0x38   :  { %v277_v3 = vld [vmem:[%s7046_s3 + $0x3b0] sm:$0xff]  ;;  %v310_v7 = vld [vmem:[%s7046_s3 + $0x4b8] sm:$0xff]  ;;  %v307_v11 = vld [vmem:[%s7046_s3 + $0x4a0] sm:$0xff] }
  0x39   :  { %3975 = vmatpush1.bf16.msra.mxu1 %v3974_v37  ;;  %v195_v37 = vld [vmem:[%s7046_s3 + $0x120] sm:$0xff]  ;;  %v4130_v9 = vpack.c.bf16 %v277_v3, %v261_v2  ;;  %v4132_v13 = vpack.c.bf16 %v310_v7, %v294_v6  ;;  %v309_v15 = vld [vmem:[%s7046_s3 + $0x4b0] sm:$0xff]  ;;  %v324_v18 = vld [vmem:[%s7046_s3 + $0x528] sm:$0xff]  ;;  %v4070_v23 = vpack.c.bf16 %v307_v11, %v291_v10 }
  0x3a   :  { %3977 = vmatprep.subr.bf16.mxu1 %v3976_v40  ;;  %4039 = vmatpush1.bf16.msra.mxu0 %v4038_v43  ;;  %v197_v40 = vld [vmem:[%s7046_s3 + $0x130] sm:$0xff]  ;;  %v4056_v43 = vpack.c.bf16 %v212_v31, %v196_v30  ;;  %v4058_v48 = vpack.c.bf16 %v211_v38, %v195_v37  ;;  %v339_v26 = vld [vmem:[%s7046_s3 + $0x5a0] sm:$0xff]  ;;  %v356_v31 = vld [vmem:[%s7046_s3 + $0x628] sm:$0xff] }
  0x3b   :  { %4041 = vmatprep.subr.bf16.mxu0 %v4040_v46  ;;  %v230_v46 = vld [vmem:[%s7046_s3 + $0x238] sm:$0xff]  ;;  %v341_v30 = vld [vmem:[%s7046_s3 + $0x5b0] sm:$0xff]  ;;  %v372_v32 = vld [vmem:[%s7046_s3 + $0x6a8] sm:$0xff] }
  0x3c   :  { %v4124_v53 = vpack.c.bf16 %v246_v47, %v230_v46  ;;  %v358_v33 = vld [vmem:[%s7046_s3 + $0x638] sm:$0xff]  ;;  %v355_v38 = vld [vmem:[%s7046_s3 + $0x620] sm:$0xff]  ;;  %v404_v46 = vld [vmem:[%s7046_s3 + $0x7a8] sm:$0xff] }
  0x3d   :  { %3979 = vmatpush1.bf16.msra.mxu1 %v3978_v49  ;;  %v4122_v49 = vpack.c.bf16 %v213_v41, %v197_v40  ;;  %v371_v40 = vld [vmem:[%s7046_s3 + $0x6a0] sm:$0xff]  ;;  %v4076_v41 = vpack.c.bf16 %v372_v32, %v356_v31  ;;  %v390_v47 = vld [vmem:[%s7046_s3 + $0x738] sm:$0xff]  ;;  %v421_v3 = vld [vmem:[%s7046_s3 + $0x830] sm:$0xff] }
  0x3e   :  { %3981 = vmatprep.subr.bf16.mxu1 %v3980_v52  ;;  %4043 = vmatpush1.bf16.msra.mxu0 %v4042_v55  ;;  %v4060_v52 = vpack.c.bf16 %v244_v45, %v228_v42  ;;  %v245_v55 = vld [vmem:[%s7046_s3 + $0x2b0] sm:$0xff]  ;;  %v388_v45 = vld [vmem:[%s7046_s3 + $0x728] sm:$0xff]  ;;  %v454_v7 = vld [vmem:[%s7046_s3 + $0x938] sm:$0xff] }
  0x3f   :  { %4045 = vmatprep.subr.bf16.mxu0 %v4044_v56  ;;  %v260_v56 = vld [vmem:[%s7046_s3 + $0x328] sm:$0xff]  ;;  %v4126_v61 = vpack.c.bf16 %v245_v55, %v229_v54  ;;  %v389_v55 = vld [vmem:[%s7046_s3 + $0x730] sm:$0xff]  ;;  %v451_v11 = vld [vmem:[%s7046_s3 + $0x920] sm:$0xff] }
  0x40   :  { %v468_v6 = vld [vmem:[%s7046_s3 + $0x9a8] sm:$0xff]  ;;  %v501_v31 = vld [vmem:[%s7046_s3 + $0xab0] sm:$0xff] }
  0x41   :  { %3983 = vmatpush1.bf16.msra.mxu1 %v3982_v59  ;;  %v278_v59 = vld [vmem:[%s7046_s3 + $0x3b8] sm:$0xff]  ;;  %v516_v32 = vld [vmem:[%s7046_s3 + $0xb28] sm:$0xff] }
  0x42   :  { %4047 = vmatpush1.bf16.msra.mxu0 %v4046_v60  ;;  %3985 = vmatprep.subr.bf16.mxu1 %v3984_v0  ;;  %v4062_v60 = vpack.c.bf16 %v243_v51, %v227_v50  ;;  %v4064_v0 = vpack.c.bf16 %v276_v57, %v260_v56  ;;  %v4128_v1 = vpack.c.bf16 %v278_v59, %v262_v58  ;;  %v387_v51 = vld [vmem:[%s7046_s3 + $0x720] sm:$0xff]  ;;  %v405_v56 = vld [vmem:[%s7046_s3 + $0x7b0] sm:$0xff]  ;;  %v420_v57 = vld [vmem:[%s7046_s3 + $0x828] sm:$0xff] }
  0x43   :  { %4049 = vmatprep.subr.bf16.mxu0 %v4048_v4  ;;  %v292_v4 = vld [vmem:[%s7046_s3 + $0x428] sm:$0xff]  ;;  %v422_v59 = vld [vmem:[%s7046_s3 + $0x838] sm:$0xff] }
  0x44   :  { %v436_v58 = vld [vmem:[%s7046_s3 + $0x8a8] sm:$0xff] }
  0x45   :  { %3987 = vmatpush1.bf16.msra.mxu1 %v3986_v5  ;;  %v308_v5 = vld [vmem:[%s7046_s3 + $0x4a8] sm:$0xff] }
  0x46   :  { %4051 = vmatpush1.bf16.msra.mxu0 %v4050_v8  ;;  %4053 = vmatprep.subr.bf16.mxu1 %v4052_v12  ;;  %v4066_v8 = vpack.c.bf16 %v275_v63, %v259_v62  ;;  %v4068_v12 = vpack.c.bf16 %v308_v5, %v292_v4  ;;  %v4146_v62 = vpack.c.bf16 %v405_v56, %v389_v55  ;;  %v419_v63 = vld [vmem:[%s7046_s3 + $0x820] sm:$0xff]  ;;  %v437_v4 = vld [vmem:[%s7046_s3 + $0x8b0] sm:$0xff]  ;;  %v452_v5 = vld [vmem:[%s7046_s3 + $0x928] sm:$0xff] }
  0x47   :  { %4117 = vmatprep.subr.bf16.mxu0 %v4116_v14  ;;  %v293_v14 = vld [vmem:[%s7046_s3 + $0x430] sm:$0xff]  ;;  %v4150_v10 = vpack.c.bf16 %v437_v4, %v421_v3 }
  0x48   :  { %v549_v56 = vld [vmem:[%s7046_s3 + $0xc30] sm:$0xff] }
  0x49   :  { %v581_v4 = vld [vmem:[%s7046_s3 + $0xd30] sm:$0xff] }
  0xdc   :  { %v152_v22 = vpop.f32.mrb[0].mxu0 }
  0xdd   :  { %v153_v24 = vadd.f32 %v152_v22, %v68_v20  ;;  %v154_v25 = vpop.f32.mrb[1].mxu0  ;;  %v340_v20 = vld [vmem:[%s7046_s3 + $0x5a8] sm:$0xff]  ;;  %v342_v22 = vld [vmem:[%s7046_s3 + $0x5b8] sm:$0xff] }
  0xde   :  { %v155_v29 = vadd.f32 %v154_v25, %v72_v21  ;;  %v326_v21 = vld [vmem:[%s7046_s3 + $0x538] sm:$0xff]  ;;  %v323_v25 = vld [vmem:[%s7046_s3 + $0x520] sm:$0xff]  ;;  %v4072_v27 = vpack.c.bf16 %v340_v20, %v324_v18  ;;  %v469_v18 = vld [vmem:[%s7046_s3 + $0x9b0] sm:$0xff] }
  0xdf   :  { %v5317_v39 = vmax.f32 %v153_v24, 0.0  ;;  %v4134_v24 = vpack.c.bf16 %v309_v15, %v293_v14  ;;  %v4136_v28 = vpack.c.bf16 %v342_v22, %v326_v21  ;;  %v453_v15 = vld [vmem:[%s7046_s3 + $0x930] sm:$0xff]  ;;  %v484_v20 = vld [vmem:[%s7046_s3 + $0xa28] sm:$0xff]  ;;  %v486_v22 = vld [vmem:[%s7046_s3 + $0xa38] sm:$0xff] }
  0xe0   :  { %v5309_v34 = vmax.f32 %v155_v29, 0.0  ;;  %v325_v29 = vld [vmem:[%s7046_s3 + $0x530] sm:$0xff]  ;;  %v500_v21 = vld [vmem:[%s7046_s3 + $0xaa8] sm:$0xff] }
  0xe1   :  { %v4138_v37 = vpack.c.bf16 %v341_v30, %v325_v29  ;;  %v485_v30 = vld [vmem:[%s7046_s3 + $0xa30] sm:$0xff] }
  0xe2   :  { %819 = vmatprep.mubr.f32.mxu1 %v5309_v34  ;;  %890 = vmatprep.mubr.f32.mxu0 %v5309_v34 }
  0xe3   :  { %820 = vmatmul.mubr.f32.vlgmr.msra.gmra.mrb[0].mxu1 %v5317_v39  ;;  %891 = vmatmul.mubr.f32.vlgmr.msra.gmra.mrb[2].mxu0 %v5317_v39 }
  0xe4   :  { %4055 = vmatpush1.bf16.msra.mxu1 %v4054_v35  ;;  %4119 = vmatpush1.bf16.msra.mxu0 %v4118_v36  ;;  %v374_v35 = vld [vmem:[%s7046_s3 + $0x6b8] sm:$0xff]  ;;  %v4074_v36 = vpack.c.bf16 %v339_v26, %v323_v25  ;;  %v4154_v25 = vpack.c.bf16 %v469_v18, %v453_v15  ;;  %v483_v26 = vld [vmem:[%s7046_s3 + $0xa20] sm:$0xff]  ;;  %v613_v18 = vld [vmem:[%s7046_s3 + $0xe30] sm:$0xff] }
  0xe5   :  { %961 = vmatprep.mubr.f32.mxu1 %v5309_v34  ;;  %1032 = vmatprep.mubr.f32.mxu0 %v5309_v34  ;;  %v4140_v42 = vpack.c.bf16 %v374_v35, %v358_v33  ;;  %v532_v33 = vld [vmem:[%s7046_s3 + $0xba8] sm:$0xff]  ;;  %v518_v35 = vld [vmem:[%s7046_s3 + $0xb38] sm:$0xff] }
  0xe6   :  { %4057 = vmatprep.subr.bf16.mxu1 %v4056_v43  ;;  %4121 = vmatprep.subr.bf16.mxu0 %v4120_v44  ;;  %v357_v43 = vld [vmem:[%s7046_s3 + $0x630] sm:$0xff] }
  0xe7   :  { %v373_v44 = vld [vmem:[%s7046_s3 + $0x6b0] sm:$0xff] }
  0xe8   :  { %4059 = vmatpush1.bf16.msra.mxu1 %v4058_v48  ;;  %4123 = vmatpush1.bf16.msra.mxu0 %v4122_v49  ;;  %v406_v48 = vld [vmem:[%s7046_s3 + $0x7b8] sm:$0xff]  ;;  %v4078_v49 = vpack.c.bf16 %v371_v40, %v355_v38  ;;  %v4142_v50 = vpack.c.bf16 %v373_v44, %v357_v43  ;;  %v4158_v38 = vpack.c.bf16 %v501_v31, %v485_v30  ;;  %v515_v40 = vld [vmem:[%s7046_s3 + $0xb20] sm:$0xff]  ;;  %v517_v44 = vld [vmem:[%s7046_s3 + $0xb30] sm:$0xff] }
  0xe9   :  { %4061 = vmatprep.subr.bf16.mxu1 %v4060_v52  ;;  %4125 = vmatprep.subr.bf16.mxu0 %v4124_v53  ;;  %v403_v52 = vld [vmem:[%s7046_s3 + $0x7a0] sm:$0xff]  ;;  %v4080_v53 = vpack.c.bf16 %v404_v46, %v388_v45  ;;  %v4144_v54 = vpack.c.bf16 %v406_v48, %v390_v47  ;;  %v533_v45 = vld [vmem:[%s7046_s3 + $0xbb0] sm:$0xff]  ;;  %v548_v46 = vld [vmem:[%s7046_s3 + $0xc28] sm:$0xff] }
  0xea   :  { %v564_v47 = vld [vmem:[%s7046_s3 + $0xca8] sm:$0xff]  ;;  %v550_v48 = vld [vmem:[%s7046_s3 + $0xc38] sm:$0xff]  ;;  %v645_v31 = vld [vmem:[%s7046_s3 + $0xf30] sm:$0xff] }
  0xec   :  { %4063 = vmatpush1.bf16.msra.mxu1 %v4062_v60  ;;  %4127 = vmatpush1.bf16.msra.mxu0 %v4126_v61  ;;  %v438_v60 = vld [vmem:[%s7046_s3 + $0x8b8] sm:$0xff]  ;;  %v4082_v61 = vpack.c.bf16 %v403_v52, %v387_v51  ;;  %v4162_v51 = vpack.c.bf16 %v533_v45, %v517_v44  ;;  %v547_v52 = vld [vmem:[%s7046_s3 + $0xc20] sm:$0xff]  ;;  %v169_v45 = vld [vmem:[%s7046_s3 + $0x50] sm:$0xff] }
  0xed   :  { %4065 = vmatprep.subr.bf16.mxu1 %v4064_v0  ;;  %4129 = vmatprep.subr.bf16.mxu0 %v4128_v1  ;;  %v435_v0 = vld [vmem:[%s7046_s3 + $0x8a0] sm:$0xff]  ;;  %v4084_v1 = vpack.c.bf16 %v436_v58, %v420_v57  ;;  %v4148_v2 = vpack.c.bf16 %v438_v60, %v422_v59  ;;  %v565_v57 = vld [vmem:[%s7046_s3 + $0xcb0] sm:$0xff]  ;;  %v580_v58 = vld [vmem:[%s7046_s3 + $0xd28] sm:$0xff] }
  0xee   :  { %v596_v59 = vld [vmem:[%s7046_s3 + $0xda8] sm:$0xff]  ;;  %v582_v60 = vld [vmem:[%s7046_s3 + $0xd38] sm:$0xff]  ;;  %v183_v44 = vld [vmem:[%s7046_s3 + $0xc0] sm:$0xff] }
  0xf0   :  { %4067 = vmatpush1.bf16.msra.mxu1 %v4066_v8  ;;  %4131 = vmatpush1.bf16.msra.mxu0 %v4130_v9  ;;  %v470_v8 = vld [vmem:[%s7046_s3 + $0x9b8] sm:$0xff]  ;;  %v4086_v9 = vpack.c.bf16 %v435_v0, %v419_v63  ;;  %v4166_v63 = vpack.c.bf16 %v565_v57, %v549_v56  ;;  %v579_v0 = vld [vmem:[%s7046_s3 + $0xd20] sm:$0xff] }
  0xf1   :  { %4069 = vmatprep.subr.bf16.mxu1 %v4068_v12  ;;  %4133 = vmatprep.subr.bf16.mxu0 %v4132_v13  ;;  %v467_v12 = vld [vmem:[%s7046_s3 + $0x9a0] sm:$0xff]  ;;  %v4088_v13 = vpack.c.bf16 %v468_v6, %v452_v5  ;;  %v4152_v14 = vpack.c.bf16 %v470_v8, %v454_v7  ;;  %v597_v5 = vld [vmem:[%s7046_s3 + $0xdb0] sm:$0xff]  ;;  %v612_v6 = vld [vmem:[%s7046_s3 + $0xe28] sm:$0xff] }
  0xf2   :  { %v628_v7 = vld [vmem:[%s7046_s3 + $0xea8] sm:$0xff]  ;;  %v614_v8 = vld [vmem:[%s7046_s3 + $0xe38] sm:$0xff] }
  0xf4   :  { %4071 = vmatpush1.bf16.msra.mxu1 %v4070_v23  ;;  %4135 = vmatpush1.bf16.msra.mxu0 %v4134_v24  ;;  %v502_v23 = vld [vmem:[%s7046_s3 + $0xab8] sm:$0xff]  ;;  %v4090_v24 = vpack.c.bf16 %v467_v12, %v451_v11  ;;  %v4170_v11 = vpack.c.bf16 %v597_v5, %v581_v4  ;;  %v611_v12 = vld [vmem:[%s7046_s3 + $0xe20] sm:$0xff]  ;;  %v233_v4 = vld [vmem:[%s7046_s3 + $0x250] sm:$0xff] }
  0xf5   :  { %4073 = vmatprep.subr.bf16.mxu1 %v4072_v27  ;;  %4137 = vmatprep.subr.bf16.mxu0 %v4136_v28  ;;  %v499_v27 = vld [vmem:[%s7046_s3 + $0xaa0] sm:$0xff]  ;;  %v4092_v28 = vpack.c.bf16 %v500_v21, %v484_v20  ;;  %v4156_v29 = vpack.c.bf16 %v502_v23, %v486_v22  ;;  %v629_v20 = vld [vmem:[%s7046_s3 + $0xeb0] sm:$0xff]  ;;  %v644_v21 = vld [vmem:[%s7046_s3 + $0xf28] sm:$0xff] }
  0xf6   :  { %v660_v22 = vld [vmem:[%s7046_s3 + $0xfa8] sm:$0xff]  ;;  %v646_v23 = vld [vmem:[%s7046_s3 + $0xf38] sm:$0xff] }
  0xf8   :  { %4075 = vmatpush1.bf16.msra.mxu1 %v4074_v36  ;;  %4139 = vmatpush1.bf16.msra.mxu0 %v4138_v37  ;;  %v534_v36 = vld [vmem:[%s7046_s3 + $0xbb8] sm:$0xff]  ;;  %v4094_v37 = vpack.c.bf16 %v499_v27, %v483_v26  ;;  %v4174_v26 = vpack.c.bf16 %v629_v20, %v613_v18  ;;  %v643_v27 = vld [vmem:[%s7046_s3 + $0xf20] sm:$0xff]  ;;  %v265_v18 = vld [vmem:[%s7046_s3 + $0x350] sm:$0xff] }
  0xf9   :  { %4077 = vmatprep.subr.bf16.mxu1 %v4076_v41  ;;  %4141 = vmatprep.subr.bf16.mxu0 %v4140_v42  ;;  %v531_v41 = vld [vmem:[%s7046_s3 + $0xba0] sm:$0xff]  ;;  %v4096_v42 = vpack.c.bf16 %v532_v33, %v516_v32  ;;  %v4160_v43 = vpack.c.bf16 %v534_v36, %v518_v35  ;;  %v661_v32 = vld [vmem:[%s7046_s3 + $0xfb0] sm:$0xff]  ;;  %v168_v33 = vld [vmem:[%s7046_s3 + $0x48] sm:$0xff] }
  0xfa   :  { %v184_v35 = vld [vmem:[%s7046_s3 + $0xc8] sm:$0xff]  ;;  %v170_v36 = vld [vmem:[%s7046_s3 + $0x58] sm:$0xff] }
  0xfc   :  { %4079 = vmatpush1.bf16.msra.mxu1 %v4078_v49  ;;  %4143 = vmatpush1.bf16.msra.mxu0 %v4142_v50  ;;  %v566_v49 = vld [vmem:[%s7046_s3 + $0xcb8] sm:$0xff]  ;;  %v4098_v50 = vpack.c.bf16 %v531_v41, %v515_v40  ;;  %v4178_v40 = vpack.c.bf16 %v661_v32, %v645_v31  ;;  %v4180_v41 = vpack.c.bf16 %v184_v35, %v168_v33  ;;  %v297_v31 = vld [vmem:[%s7046_s3 + $0x450] sm:$0xff]  ;;  %v328_v35 = vld [vmem:[%s7046_s3 + $0x548] sm:$0xff] }
  0xfd   :  { %4081 = vmatprep.subr.bf16.mxu1 %v4080_v53  ;;  %4145 = vmatprep.subr.bf16.mxu0 %v4144_v54  ;;  %v563_v53 = vld [vmem:[%s7046_s3 + $0xca0] sm:$0xff]  ;;  %v4100_v54 = vpack.c.bf16 %v564_v47, %v548_v46  ;;  %v4164_v55 = vpack.c.bf16 %v566_v49, %v550_v48  ;;  %v185_v46 = vld [vmem:[%s7046_s3 + $0xd0] sm:$0xff]  ;;  %v200_v47 = vld [vmem:[%s7046_s3 + $0x148] sm:$0xff] }
  0xfe   :  { %v216_v48 = vld [vmem:[%s7046_s3 + $0x1c8] sm:$0xff]  ;;  %v202_v49 = vld [vmem:[%s7046_s3 + $0x158] sm:$0xff]  ;;  %v313_v33 = vld [vmem:[%s7046_s3 + $0x4d0] sm:$0xff] }
  0xff   :  { %v4184_v56 = vpack.c.bf16 %v216_v48, %v200_v47  ;;  %v345_v47 = vld [vmem:[%s7046_s3 + $0x5d0] sm:$0xff]  ;;  %v360_v48 = vld [vmem:[%s7046_s3 + $0x648] sm:$0xff] }
 0x100   :  { %4083 = vmatpush1.bf16.msra.mxu1 %v4082_v61  ;;  %4147 = vmatpush1.bf16.msra.mxu0 %v4146_v62  ;;  %v598_v61 = vld [vmem:[%s7046_s3 + $0xdb8] sm:$0xff]  ;;  %v4102_v62 = vpack.c.bf16 %v563_v53, %v547_v52  ;;  %v4246_v52 = vpack.c.bf16 %v185_v46, %v169_v45  ;;  %v199_v53 = vld [vmem:[%s7046_s3 + $0x140] sm:$0xff]  ;;  %v329_v45 = vld [vmem:[%s7046_s3 + $0x550] sm:$0xff] }
 0x101   :  { %4085 = vmatprep.subr.bf16.mxu1 %v4084_v1  ;;  %4149 = vmatprep.subr.bf16.mxu0 %v4148_v2  ;;  %v595_v1 = vld [vmem:[%s7046_s3 + $0xda0] sm:$0xff]  ;;  %v4104_v2 = vpack.c.bf16 %v596_v59, %v580_v58  ;;  %v4168_v3 = vpack.c.bf16 %v598_v61, %v582_v60  ;;  %v217_v58 = vld [vmem:[%s7046_s3 + $0x1d0] sm:$0xff]  ;;  %v232_v59 = vld [vmem:[%s7046_s3 + $0x248] sm:$0xff] }
 0x102   :  { %v248_v60 = vld [vmem:[%s7046_s3 + $0x2c8] sm:$0xff]  ;;  %v234_v61 = vld [vmem:[%s7046_s3 + $0x258] sm:$0xff] }
 0x104   :  { %4087 = vmatpush1.bf16.msra.mxu1 %v4086_v9  ;;  %4151 = vmatpush1.bf16.msra.mxu0 %v4150_v10  ;;  %v630_v9 = vld [vmem:[%s7046_s3 + $0xeb8] sm:$0xff]  ;;  %v4106_v10 = vpack.c.bf16 %v595_v1, %v579_v0  ;;  %v4188_v1 = vpack.c.bf16 %v248_v60, %v232_v59  ;;  %v377_v59 = vld [vmem:[%s7046_s3 + $0x6d0] sm:$0xff]  ;;  %v392_v60 = vld [vmem:[%s7046_s3 + $0x748] sm:$0xff] }
 0x105   :  { %4089 = vmatprep.subr.bf16.mxu1 %v4088_v13  ;;  %4153 = vmatprep.subr.bf16.mxu0 %v4152_v14  ;;  %v627_v13 = vld [vmem:[%s7046_s3 + $0xea0] sm:$0xff]  ;;  %v4108_v14 = vpack.c.bf16 %v628_v7, %v612_v6  ;;  %v4172_v15 = vpack.c.bf16 %v630_v9, %v614_v8  ;;  %v249_v6 = vld [vmem:[%s7046_s3 + $0x2d0] sm:$0xff]  ;;  %v264_v7 = vld [vmem:[%s7046_s3 + $0x348] sm:$0xff] }
 0x106   :  { %v280_v8 = vld [vmem:[%s7046_s3 + $0x3c8] sm:$0xff]  ;;  %v266_v9 = vld [vmem:[%s7046_s3 + $0x358] sm:$0xff] }
 0x108   :  { %4091 = vmatpush1.bf16.msra.mxu1 %v4090_v24  ;;  %4155 = vmatpush1.bf16.msra.mxu0 %v4154_v25  ;;  %v662_v24 = vld [vmem:[%s7046_s3 + $0xfb8] sm:$0xff]  ;;  %v4110_v25 = vpack.c.bf16 %v627_v13, %v611_v12  ;;  %v4254_v12 = vpack.c.bf16 %v249_v6, %v233_v4  ;;  %v4192_v13 = vpack.c.bf16 %v280_v8, %v264_v7  ;;  %v407_v4 = vld [vmem:[%s7046_s3 + $0x7c0] sm:$0xff]  ;;  %v409_v7 = vld [vmem:[%s7046_s3 + $0x7d0] sm:$0xff] }
 0x109   :  { %4093 = vmatprep.subr.bf16.mxu1 %v4092_v28  ;;  %4157 = vmatprep.subr.bf16.mxu0 %v4156_v29  ;;  %v659_v28 = vld [vmem:[%s7046_s3 + $0xfa0] sm:$0xff]  ;;  %v4112_v29 = vpack.c.bf16 %v660_v22, %v644_v21  ;;  %v4176_v30 = vpack.c.bf16 %v662_v24, %v646_v23  ;;  %v281_v21 = vld [vmem:[%s7046_s3 + $0x3d0] sm:$0xff]  ;;  %v296_v22 = vld [vmem:[%s7046_s3 + $0x448] sm:$0xff] }
 0x10a   :  { %v312_v23 = vld [vmem:[%s7046_s3 + $0x4c8] sm:$0xff]  ;;  %v298_v24 = vld [vmem:[%s7046_s3 + $0x458] sm:$0xff] }
 0x10b   :  { %v424_v8 = vld [vmem:[%s7046_s3 + $0x848] sm:$0xff] }
 0x10c   :  { %4095 = vmatpush1.bf16.msra.mxu1 %v4094_v37  ;;  %4159 = vmatpush1.bf16.msra.mxu0 %v4158_v38  ;;  %v186_v37 = vld [vmem:[%s7046_s3 + $0xd8] sm:$0xff]  ;;  %v4114_v38 = vpack.c.bf16 %v659_v28, %v643_v27  ;;  %v4258_v27 = vpack.c.bf16 %v281_v21, %v265_v18  ;;  %v4196_v28 = vpack.c.bf16 %v312_v23, %v296_v22  ;;  %v439_v18 = vld [vmem:[%s7046_s3 + $0x8c0] sm:$0xff]  ;;  %v441_v22 = vld [vmem:[%s7046_s3 + $0x8d0] sm:$0xff] }
 0x10d   :  { %4097 = vmatprep.subr.bf16.mxu1 %v4096_v42  ;;  %4161 = vmatprep.subr.bf16.mxu0 %v4160_v43  ;;  %v4244_v42 = vpack.c.bf16 %v186_v37, %v170_v36  ;;  %v167_v43 = vld [vmem:[%s7046_s3 + $0x40] sm:$0xff]  ;;  %v344_v36 = vld [vmem:[%s7046_s3 + $0x5c8] sm:$0xff]  ;;  %v330_v37 = vld [vmem:[%s7046_s3 + $0x558] sm:$0xff] }
 0x10e   :  { %v456_v23 = vld [vmem:[%s7046_s3 + $0x948] sm:$0xff] }
 0x110   :  { %4099 = vmatpush1.bf16.msra.mxu1 %v4098_v50  ;;  %4163 = vmatpush1.bf16.msra.mxu0 %v4162_v51  ;;  %v218_v50 = vld [vmem:[%s7046_s3 + $0x1d8] sm:$0xff]  ;;  %v4182_v51 = vpack.c.bf16 %v183_v44, %v167_v43  ;;  %v327_v43 = vld [vmem:[%s7046_s3 + $0x540] sm:$0xff] }
 0x111   :  { %4101 = vmatprep.subr.bf16.mxu1 %v4100_v54  ;;  %4165 = vmatprep.subr.bf16.mxu0 %v4164_v55  ;;  %v215_v54 = vld [vmem:[%s7046_s3 + $0x1c0] sm:$0xff]  ;;  %v201_v55 = vld [vmem:[%s7046_s3 + $0x150] sm:$0xff]  ;;  %v4248_v57 = vpack.c.bf16 %v218_v50, %v202_v49  ;;  %v376_v49 = vld [vmem:[%s7046_s3 + $0x6c8] sm:$0xff] }
 0x112   :  { %v4250_v0 = vpack.c.bf16 %v217_v58, %v201_v55  ;;  %v343_v44 = vld [vmem:[%s7046_s3 + $0x5c0] sm:$0xff]  ;;  %v362_v50 = vld [vmem:[%s7046_s3 + $0x658] sm:$0xff] }
 0x113   :  { %v359_v55 = vld [vmem:[%s7046_s3 + $0x640] sm:$0xff] }
 0x114   :  { %4103 = vmatpush1.bf16.msra.mxu1 %v4102_v62  ;;  %4167 = vmatpush1.bf16.msra.mxu0 %v4166_v63  ;;  %v250_v62 = vld [vmem:[%s7046_s3 + $0x2d8] sm:$0xff]  ;;  %v4186_v63 = vpack.c.bf16 %v215_v54, %v199_v53  ;;  %v4266_v53 = vpack.c.bf16 %v345_v47, %v329_v45  ;;  %v4204_v54 = vpack.c.bf16 %v376_v49, %v360_v48  ;;  %v503_v45 = vld [vmem:[%s7046_s3 + $0xac0] sm:$0xff]  ;;  %v505_v48 = vld [vmem:[%s7046_s3 + $0xad0] sm:$0xff] }
 0x115   :  { %4105 = vmatprep.subr.bf16.mxu1 %v4104_v2  ;;  %4169 = vmatprep.subr.bf16.mxu0 %v4168_v3  ;;  %v231_v2 = vld [vmem:[%s7046_s3 + $0x240] sm:$0xff]  ;;  %v4252_v5 = vpack.c.bf16 %v250_v62, %v234_v61  ;;  %v408_v61 = vld [vmem:[%s7046_s3 + $0x7c8] sm:$0xff]  ;;  %v394_v62 = vld [vmem:[%s7046_s3 + $0x758] sm:$0xff] }
 0x116   :  { %v247_v3 = vld [vmem:[%s7046_s3 + $0x2c0] sm:$0xff]  ;;  %v520_v49 = vld [vmem:[%s7046_s3 + $0xb48] sm:$0xff] }
 0x118   :  { %4107 = vmatpush1.bf16.msra.mxu1 %v4106_v10  ;;  %4171 = vmatpush1.bf16.msra.mxu0 %v4170_v11  ;;  %v282_v10 = vld [vmem:[%s7046_s3 + $0x3d8] sm:$0xff]  ;;  %v4190_v11 = vpack.c.bf16 %v247_v3, %v231_v2  ;;  %v4208_v2 = vpack.c.bf16 %v408_v61, %v392_v60  ;;  %v391_v3 = vld [vmem:[%s7046_s3 + $0x740] sm:$0xff]  ;;  %v537_v60 = vld [vmem:[%s7046_s3 + $0xbd0] sm:$0xff] }
 0x119   :  { %4109 = vmatprep.subr.bf16.mxu1 %v4108_v14  ;;  %4173 = vmatprep.subr.bf16.mxu0 %v4172_v15  ;;  %v263_v14 = vld [vmem:[%s7046_s3 + $0x340] sm:$0xff]  ;;  %v4256_v20 = vpack.c.bf16 %v282_v10, %v266_v9  ;;  %v440_v9 = vld [vmem:[%s7046_s3 + $0x8c8] sm:$0xff]  ;;  %v426_v10 = vld [vmem:[%s7046_s3 + $0x858] sm:$0xff] }
 0x11a   :  { %v279_v15 = vld [vmem:[%s7046_s3 + $0x3c0] sm:$0xff]  ;;  %v552_v61 = vld [vmem:[%s7046_s3 + $0xc48] sm:$0xff] }
 0x11c   :  { %4111 = vmatpush1.bf16.msra.mxu1 %v4110_v25  ;;  %4175 = vmatpush1.bf16.msra.mxu0 %v4174_v26  ;;  %v314_v25 = vld [vmem:[%s7046_s3 + $0x4d8] sm:$0xff]  ;;  %v4194_v26 = vpack.c.bf16 %v279_v15, %v263_v14  ;;  %v4212_v14 = vpack.c.bf16 %v440_v9, %v424_v8  ;;  %v423_v15 = vld [vmem:[%s7046_s3 + $0x840] sm:$0xff]  ;;  %v569_v8 = vld [vmem:[%s7046_s3 + $0xcd0] sm:$0xff] }
 0x11d   :  { %4113 = vmatprep.subr.bf16.mxu1 %v4112_v29  ;;  %4177 = vmatprep.subr.bf16.mxu0 %v4176_v30  ;;  %v295_v29 = vld [vmem:[%s7046_s3 + $0x440] sm:$0xff]  ;;  %v4260_v32 = vpack.c.bf16 %v314_v25, %v298_v24  ;;  %v472_v24 = vld [vmem:[%s7046_s3 + $0x9c8] sm:$0xff]  ;;  %v458_v25 = vld [vmem:[%s7046_s3 + $0x958] sm:$0xff] }
 0x11e   :  { %v311_v30 = vld [vmem:[%s7046_s3 + $0x4c0] sm:$0xff]  ;;  %v584_v9 = vld [vmem:[%s7046_s3 + $0xd48] sm:$0xff] }
 0x120   :  { %4115 = vmatpush1.bf16.msra.mxu1 %v4114_v38  ;;  %4179 = vmatpush1.bf16.msra.mxu0 %v4178_v40  ;;  %v346_v38 = vld [vmem:[%s7046_s3 + $0x5d8] sm:$0xff]  ;;  %v4198_v40 = vpack.c.bf16 %v311_v30, %v295_v29  ;;  %v4216_v29 = vpack.c.bf16 %v472_v24, %v456_v23  ;;  %v455_v30 = vld [vmem:[%s7046_s3 + $0x940] sm:$0xff]  ;;  %v601_v23 = vld [vmem:[%s7046_s3 + $0xdd0] sm:$0xff] }
 0x121   :  { %4181 = vmatprep.subr.bf16.mxu1 %v4180_v41  ;;  %4245 = vmatprep.subr.bf16.mxu0 %v4244_v42  ;;  %v4262_v41 = vpack.c.bf16 %v313_v33, %v297_v31  ;;  %v4200_v42 = vpack.c.bf16 %v344_v36, %v328_v35  ;;  %v4264_v46 = vpack.c.bf16 %v346_v38, %v330_v37  ;;  %v471_v31 = vld [vmem:[%s7046_s3 + $0x9c0] sm:$0xff]  ;;  %v473_v35 = vld [vmem:[%s7046_s3 + $0x9d0] sm:$0xff]  ;;  %v488_v36 = vld [vmem:[%s7046_s3 + $0xa48] sm:$0xff] }
 0x122   :  { %v504_v37 = vld [vmem:[%s7046_s3 + $0xac8] sm:$0xff]  ;;  %v490_v38 = vld [vmem:[%s7046_s3 + $0xa58] sm:$0xff] }
 0x123   :  { %962 = vmatmul.mubr.f32.vlgmr.msra.gmra.mrb[2].mxu1 %v5317_v39  ;;  %1033 = vmatmul.mubr.f32.vlgmr.msra.gmra.mrb[4].mxu0 %v5317_v39  ;;  %v616_v24 = vld [vmem:[%s7046_s3 + $0xe48] sm:$0xff] }
 0x124   :  { %4183 = vmatpush1.bf16.msra.mxu1 %v4182_v51  ;;  %1103 = vmatprep.mubr.f32.mxu1 %v5309_v34  ;;  %v378_v51 = vld [vmem:[%s7046_s3 + $0x6d8] sm:$0xff] }
 0x125   :  { %4247 = vmatpush1.bf16.msra.mxu0 %v4246_v52  ;;  %1174 = vmatprep.mubr.f32.mxu0 %v5309_v34  ;;  %v4202_v52 = vpack.c.bf16 %v343_v44, %v327_v43  ;;  %v4268_v58 = vpack.c.bf16 %v378_v51, %v362_v50  ;;  %v4220_v43 = vpack.c.bf16 %v504_v37, %v488_v36  ;;  %v487_v44 = vld [vmem:[%s7046_s3 + $0xa40] sm:$0xff]  ;;  %v536_v50 = vld [vmem:[%s7046_s3 + $0xbc8] sm:$0xff]  ;;  %v522_v51 = vld [vmem:[%s7046_s3 + $0xb58] sm:$0xff] }
 0x126   :  { %4185 = vmatprep.subr.bf16.mxu1 %v4184_v56  ;;  %4249 = vmatprep.subr.bf16.mxu0 %v4248_v57  ;;  %v375_v56 = vld [vmem:[%s7046_s3 + $0x6c0] sm:$0xff]  ;;  %v361_v57 = vld [vmem:[%s7046_s3 + $0x650] sm:$0xff]  ;;  %v648_v37 = vld [vmem:[%s7046_s3 + $0xf48] sm:$0xff] }
 0x127   :  { %v633_v36 = vld [vmem:[%s7046_s3 + $0xed0] sm:$0xff] }
 0x128   :  { %4187 = vmatpush1.bf16.msra.mxu1 %v4186_v63  ;;  %v410_v63 = vld [vmem:[%s7046_s3 + $0x7d8] sm:$0xff] }
 0x129   :  { %4251 = vmatpush1.bf16.msra.mxu0 %v4250_v0  ;;  %4189 = vmatprep.subr.bf16.mxu1 %v4188_v1  ;;  %v4206_v0 = vpack.c.bf16 %v375_v56, %v359_v55  ;;  %v4270_v1 = vpack.c.bf16 %v377_v59, %v361_v57  ;;  %v4272_v6 = vpack.c.bf16 %v410_v63, %v394_v62  ;;  %v519_v56 = vld [vmem:[%s7046_s3 + $0xb40] sm:$0xff]  ;;  %v568_v62 = vld [vmem:[%s7046_s3 + $0xcc8] sm:$0xff]  ;;  %v554_v63 = vld [vmem:[%s7046_s3 + $0xc58] sm:$0xff] }
 0x12a   :  { %4253 = vmatprep.subr.bf16.mxu0 %v4252_v5  ;;  %v393_v5 = vld [vmem:[%s7046_s3 + $0x750] sm:$0xff]  ;;  %v4224_v55 = vpack.c.bf16 %v536_v50, %v520_v49  ;;  %v535_v57 = vld [vmem:[%s7046_s3 + $0xbc0] sm:$0xff]  ;;  %v172_v50 = vld [vmem:[%s7046_s3 + $0x68] sm:$0xff] }
 0x12b   :  { %v665_v49 = vld [vmem:[%s7046_s3 + $0xfd0] sm:$0xff] }
 0x12c   :  { %4191 = vmatpush1.bf16.msra.mxu1 %v4190_v11  ;;  %v442_v11 = vld [vmem:[%s7046_s3 + $0x8d8] sm:$0xff] }
 0x12d   :  { %4255 = vmatpush1.bf16.msra.mxu0 %v4254_v12  ;;  %4193 = vmatprep.subr.bf16.mxu1 %v4192_v13  ;;  %v4210_v12 = vpack.c.bf16 %v407_v4, %v391_v3  ;;  %v4274_v13 = vpack.c.bf16 %v409_v7, %v393_v5  ;;  %v4276_v21 = vpack.c.bf16 %v442_v11, %v426_v10  ;;  %v551_v4 = vld [vmem:[%s7046_s3 + $0xc40] sm:$0xff]  ;;  %v600_v10 = vld [vmem:[%s7046_s3 + $0xdc8] sm:$0xff]  ;;  %v586_v11 = vld [vmem:[%s7046_s3 + $0xd58] sm:$0xff] }
 0x12e   :  { %4257 = vmatprep.subr.bf16.mxu0 %v4256_v20  ;;  %v425_v20 = vld [vmem:[%s7046_s3 + $0x850] sm:$0xff]  ;;  %v4228_v3 = vpack.c.bf16 %v568_v62, %v552_v61  ;;  %v567_v5 = vld [vmem:[%s7046_s3 + $0xcc0] sm:$0xff]  ;;  %v204_v62 = vld [vmem:[%s7046_s3 + $0x168] sm:$0xff] }
 0x12f   :  { %v189_v61 = vld [vmem:[%s7046_s3 + $0xf0] sm:$0xff] }
 0x130   :  { %4195 = vmatpush1.bf16.msra.mxu1 %v4194_v26  ;;  %v474_v26 = vld [vmem:[%s7046_s3 + $0x9d8] sm:$0xff] }
 0x131   :  { %4259 = vmatpush1.bf16.msra.mxu0 %v4258_v27  ;;  %4197 = vmatprep.subr.bf16.mxu1 %v4196_v28  ;;  %v4214_v27 = vpack.c.bf16 %v439_v18, %v423_v15  ;;  %v4278_v28 = vpack.c.bf16 %v441_v22, %v425_v20  ;;  %v4280_v33 = vpack.c.bf16 %v474_v26, %v458_v25  ;;  %v583_v18 = vld [vmem:[%s7046_s3 + $0xd40] sm:$0xff]  ;;  %v632_v25 = vld [vmem:[%s7046_s3 + $0xec8] sm:$0xff]  ;;  %v618_v26 = vld [vmem:[%s7046_s3 + $0xe58] sm:$0xff] }
 0x132   :  { %4261 = vmatprep.subr.bf16.mxu0 %v4260_v32  ;;  %v457_v32 = vld [vmem:[%s7046_s3 + $0x950] sm:$0xff]  ;;  %v4232_v15 = vpack.c.bf16 %v600_v10, %v584_v9  ;;  %v599_v20 = vld [vmem:[%s7046_s3 + $0xdc0] sm:$0xff]  ;;  %v236_v9 = vld [vmem:[%s7046_s3 + $0x268] sm:$0xff] }
 0x133   :  { %v252_v10 = vld [vmem:[%s7046_s3 + $0x2e8] sm:$0xff] }
 0x134   :  { %4199 = vmatpush1.bf16.msra.mxu1 %v4198_v40  ;;  %v506_v40 = vld [vmem:[%s7046_s3 + $0xad8] sm:$0xff] }
 0x135   :  { %4263 = vmatpush1.bf16.msra.mxu0 %v4262_v41  ;;  %4201 = vmatprep.subr.bf16.mxu1 %v4200_v42  ;;  %v4218_v41 = vpack.c.bf16 %v471_v31, %v455_v30  ;;  %v4282_v42 = vpack.c.bf16 %v473_v35, %v457_v32  ;;  %v4284_v47 = vpack.c.bf16 %v506_v40, %v490_v38  ;;  %v615_v31 = vld [vmem:[%s7046_s3 + $0xe40] sm:$0xff]  ;;  %v664_v38 = vld [vmem:[%s7046_s3 + $0xfc8] sm:$0xff]  ;;  %v650_v40 = vld [vmem:[%s7046_s3 + $0xf58] sm:$0xff] }
 0x136   :  { %4265 = vmatprep.subr.bf16.mxu0 %v4264_v46  ;;  %v489_v46 = vld [vmem:[%s7046_s3 + $0xa50] sm:$0xff]  ;;  %v4236_v30 = vpack.c.bf16 %v632_v25, %v616_v24  ;;  %v631_v32 = vld [vmem:[%s7046_s3 + $0xec0] sm:$0xff]  ;;  %v268_v25 = vld [vmem:[%s7046_s3 + $0x368] sm:$0xff] }
 0x137   :  { %v253_v24 = vld [vmem:[%s7046_s3 + $0x2f0] sm:$0xff] }
 0x138   :  { %4203 = vmatpush1.bf16.msra.mxu1 %v4202_v52  ;;  %v538_v52 = vld [vmem:[%s7046_s3 + $0xbd8] sm:$0xff] }
 0x139   :  { %4267 = vmatpush1.bf16.msra.mxu0 %v4266_v53  ;;  %4205 = vmatprep.subr.bf16.mxu1 %v4204_v54  ;;  %v4222_v53 = vpack.c.bf16 %v503_v45, %v487_v44  ;;  %v4286_v54 = vpack.c.bf16 %v505_v48, %v489_v46  ;;  %v4288_v59 = vpack.c.bf16 %v538_v52, %v522_v51  ;;  %v647_v45 = vld [vmem:[%s7046_s3 + $0xf40] sm:$0xff]  ;;  %v188_v51 = vld [vmem:[%s7046_s3 + $0xe8] sm:$0xff]  ;;  %v174_v52 = vld [vmem:[%s7046_s3 + $0x78] sm:$0xff] }
 0x13a   :  { %4269 = vmatprep.subr.bf16.mxu0 %v4268_v58  ;;  %v521_v58 = vld [vmem:[%s7046_s3 + $0xb50] sm:$0xff]  ;;  %v4240_v44 = vpack.c.bf16 %v664_v38, %v648_v37  ;;  %v663_v46 = vld [vmem:[%s7046_s3 + $0xfc0] sm:$0xff]  ;;  %v300_v37 = vld [vmem:[%s7046_s3 + $0x468] sm:$0xff] }
 0x13b   :  { %v316_v38 = vld [vmem:[%s7046_s3 + $0x4e8] sm:$0xff] }
 0x13c   :  { %4207 = vmatpush1.bf16.msra.mxu1 %v4206_v0  ;;  %v570_v0 = vld [vmem:[%s7046_s3 + $0xcd8] sm:$0xff] }
 0x13d   :  { %4271 = vmatpush1.bf16.msra.mxu0 %v4270_v1  ;;  %4209 = vmatprep.subr.bf16.mxu1 %v4208_v2  ;;  %v4226_v1 = vpack.c.bf16 %v535_v57, %v519_v56  ;;  %v4290_v2 = vpack.c.bf16 %v537_v60, %v521_v58  ;;  %v4292_v7 = vpack.c.bf16 %v570_v0, %v554_v63  ;;  %v171_v57 = vld [vmem:[%s7046_s3 + $0x60] sm:$0xff]  ;;  %v173_v60 = vld [vmem:[%s7046_s3 + $0x70] sm:$0xff]  ;;  %v220_v63 = vld [vmem:[%s7046_s3 + $0x1e8] sm:$0xff] }
 0x13e   :  { %4273 = vmatprep.subr.bf16.mxu0 %v4272_v6  ;;  %v553_v6 = vld [vmem:[%s7046_s3 + $0xc50] sm:$0xff]  ;;  %v4308_v56 = vpack.c.bf16 %v188_v51, %v172_v50  ;;  %v187_v58 = vld [vmem:[%s7046_s3 + $0xe0] sm:$0xff]  ;;  %v332_v50 = vld [vmem:[%s7046_s3 + $0x568] sm:$0xff] }
 0x13f   :  { %v4310_v0 = vpack.c.bf16 %v187_v58, %v171_v57  ;;  %v348_v51 = vld [vmem:[%s7046_s3 + $0x5e8] sm:$0xff]  ;;  %v331_v57 = vld [vmem:[%s7046_s3 + $0x560] sm:$0xff] }
 0x140   :  { %4211 = vmatpush1.bf16.msra.mxu1 %v4210_v12  ;;  %v602_v12 = vld [vmem:[%s7046_s3 + $0xdd8] sm:$0xff]  ;;  %v347_v58 = vld [vmem:[%s7046_s3 + $0x5e0] sm:$0xff] }
 0x141   :  { %4275 = vmatpush1.bf16.msra.mxu0 %v4274_v13  ;;  %4213 = vmatprep.subr.bf16.mxu1 %v4212_v14  ;;  %v4230_v13 = vpack.c.bf16 %v567_v5, %v551_v4  ;;  %v4294_v14 = vpack.c.bf16 %v569_v8, %v553_v6  ;;  %v4296_v22 = vpack.c.bf16 %v602_v12, %v586_v11  ;;  %v203_v4 = vld [vmem:[%s7046_s3 + $0x160] sm:$0xff]  ;;  %v205_v6 = vld [vmem:[%s7046_s3 + $0x170] sm:$0xff]  ;;  %v238_v12 = vld [vmem:[%s7046_s3 + $0x278] sm:$0xff] }
 0x142   :  { %4277 = vmatprep.subr.bf16.mxu0 %v4276_v21  ;;  %v585_v21 = vld [vmem:[%s7046_s3 + $0xd50] sm:$0xff]  ;;  %v219_v5 = vld [vmem:[%s7046_s3 + $0x1e0] sm:$0xff] }
 0x143   :  { %v221_v8 = vld [vmem:[%s7046_s3 + $0x1f0] sm:$0xff] }
 0x144   :  { %4215 = vmatpush1.bf16.msra.mxu1 %v4214_v27  ;;  %v634_v27 = vld [vmem:[%s7046_s3 + $0xed8] sm:$0xff] }
 0x145   :  { %4279 = vmatpush1.bf16.msra.mxu0 %v4278_v28  ;;  %4217 = vmatprep.subr.bf16.mxu1 %v4216_v29  ;;  %v4234_v28 = vpack.c.bf16 %v599_v20, %v583_v18  ;;  %v4298_v29 = vpack.c.bf16 %v601_v23, %v585_v21  ;;  %v4300_v35 = vpack.c.bf16 %v634_v27, %v618_v26  ;;  %v235_v20 = vld [vmem:[%s7046_s3 + $0x260] sm:$0xff]  ;;  %v284_v26 = vld [vmem:[%s7046_s3 + $0x3e8] sm:$0xff]  ;;  %v270_v27 = vld [vmem:[%s7046_s3 + $0x378] sm:$0xff] }
 0x146   :  { %4281 = vmatprep.subr.bf16.mxu0 %v4280_v33  ;;  %v617_v33 = vld [vmem:[%s7046_s3 + $0xe50] sm:$0xff]  ;;  %v4316_v18 = vpack.c.bf16 %v252_v10, %v236_v9  ;;  %v251_v21 = vld [vmem:[%s7046_s3 + $0x2e0] sm:$0xff]  ;;  %v396_v10 = vld [vmem:[%s7046_s3 + $0x768] sm:$0xff] }
 0x147   :  { %v381_v9 = vld [vmem:[%s7046_s3 + $0x6f0] sm:$0xff] }
 0x148   :  { %4219 = vmatpush1.bf16.msra.mxu1 %v4218_v41  ;;  %v666_v41 = vld [vmem:[%s7046_s3 + $0xfd8] sm:$0xff] }
 0x149   :  { %4283 = vmatpush1.bf16.msra.mxu0 %v4282_v42  ;;  %4221 = vmatprep.subr.bf16.mxu1 %v4220_v43  ;;  %v4238_v42 = vpack.c.bf16 %v631_v32, %v615_v31  ;;  %v4302_v43 = vpack.c.bf16 %v633_v36, %v617_v33  ;;  %v4304_v48 = vpack.c.bf16 %v666_v41, %v650_v40  ;;  %v267_v31 = vld [vmem:[%s7046_s3 + $0x360] sm:$0xff]  ;;  %v269_v33 = vld [vmem:[%s7046_s3 + $0x370] sm:$0xff]  ;;  %v302_v40 = vld [vmem:[%s7046_s3 + $0x478] sm:$0xff] }
 0x14a   :  { %4285 = vmatprep.subr.bf16.mxu0 %v4284_v47  ;;  %v649_v47 = vld [vmem:[%s7046_s3 + $0xf50] sm:$0xff]  ;;  %v283_v32 = vld [vmem:[%s7046_s3 + $0x3e0] sm:$0xff]  ;;  %v318_v41 = vld [vmem:[%s7046_s3 + $0x4f8] sm:$0xff] }
 0x14b   :  { %v285_v36 = vld [vmem:[%s7046_s3 + $0x3f0] sm:$0xff] }
 0x14c   :  { %4223 = vmatpush1.bf16.msra.mxu1 %v4222_v53  ;;  %v190_v53 = vld [vmem:[%s7046_s3 + $0xf8] sm:$0xff] }
 0x14d   :  { %4287 = vmatpush1.bf16.msra.mxu0 %v4286_v54  ;;  %4225 = vmatprep.subr.bf16.mxu1 %v4224_v55  ;;  %v4242_v54 = vpack.c.bf16 %v663_v46, %v647_v45  ;;  %v4306_v55 = vpack.c.bf16 %v665_v49, %v649_v47  ;;  %v299_v45 = vld [vmem:[%s7046_s3 + $0x460] sm:$0xff]  ;;  %v301_v47 = vld [vmem:[%s7046_s3 + $0x470] sm:$0xff] }
 0x14e   :  { %4289 = vmatprep.subr.bf16.mxu0 %v4288_v59  ;;  %v4372_v59 = vpack.c.bf16 %v190_v53, %v174_v52  ;;  %v315_v46 = vld [vmem:[%s7046_s3 + $0x4e0] sm:$0xff]  ;;  %v317_v49 = vld [vmem:[%s7046_s3 + $0x4f0] sm:$0xff]  ;;  %v334_v52 = vld [vmem:[%s7046_s3 + $0x578] sm:$0xff] }
 0x14f   :  { %v350_v53 = vld [vmem:[%s7046_s3 + $0x5f8] sm:$0xff] }
 0x150   :  { %4227 = vmatpush1.bf16.msra.mxu1 %v4226_v1  ;;  %v206_v1 = vld [vmem:[%s7046_s3 + $0x178] sm:$0xff] }
 0x151   :  { %4291 = vmatpush1.bf16.msra.mxu0 %v4290_v2  ;;  %4229 = vmatprep.subr.bf16.mxu1 %v4228_v3  ;;  %v222_v2 = vld [vmem:[%s7046_s3 + $0x1f8] sm:$0xff]  ;;  %v4374_v3 = vpack.c.bf16 %v189_v61, %v173_v60  ;;  %v4392_v60 = vpack.c.bf16 %v350_v53, %v334_v52  ;;  %v349_v61 = vld [vmem:[%s7046_s3 + $0x5f0] sm:$0xff] }
 0x152   :  { %4293 = vmatprep.subr.bf16.mxu0 %v4292_v7  ;;  %v4312_v7 = vpack.c.bf16 %v220_v63, %v204_v62  ;;  %v4376_v11 = vpack.c.bf16 %v222_v2, %v206_v1  ;;  %v364_v62 = vld [vmem:[%s7046_s3 + $0x668] sm:$0xff]  ;;  %v382_v1 = vld [vmem:[%s7046_s3 + $0x6f8] sm:$0xff]  ;;  %v4330_v2 = vpack.c.bf16 %v347_v58, %v331_v57  ;;  %v491_v57 = vld [vmem:[%s7046_s3 + $0xa60] sm:$0xff] }
 0x153   :  { %v380_v63 = vld [vmem:[%s7046_s3 + $0x6e8] sm:$0xff]  ;;  %v494_v52 = vld [vmem:[%s7046_s3 + $0xa78] sm:$0xff]  ;;  %v507_v58 = vld [vmem:[%s7046_s3 + $0xae0] sm:$0xff] }
 0x154   :  { %4231 = vmatpush1.bf16.msra.mxu1 %v4230_v13  ;;  %v254_v13 = vld [vmem:[%s7046_s3 + $0x2f8] sm:$0xff] }
 0x155   :  { %4295 = vmatpush1.bf16.msra.mxu0 %v4294_v14  ;;  %4233 = vmatprep.subr.bf16.mxu1 %v4232_v15  ;;  %v4314_v14 = vpack.c.bf16 %v219_v5, %v203_v4  ;;  %v4378_v15 = vpack.c.bf16 %v221_v8, %v205_v6  ;;  %v4380_v23 = vpack.c.bf16 %v254_v13, %v238_v12  ;;  %v363_v5 = vld [vmem:[%s7046_s3 + $0x660] sm:$0xff]  ;;  %v398_v12 = vld [vmem:[%s7046_s3 + $0x778] sm:$0xff] }
 0x156   :  { %4297 = vmatprep.subr.bf16.mxu0 %v4296_v22  ;;  %v237_v22 = vld [vmem:[%s7046_s3 + $0x270] sm:$0xff]  ;;  %v4332_v4 = vpack.c.bf16 %v380_v63, %v364_v62  ;;  %v379_v6 = vld [vmem:[%s7046_s3 + $0x6e0] sm:$0xff]  ;;  %v414_v13 = vld [vmem:[%s7046_s3 + $0x7f8] sm:$0xff] }
 0x157   :  { %v510_v53 = vld [vmem:[%s7046_s3 + $0xaf8] sm:$0xff]  ;;  %v524_v62 = vld [vmem:[%s7046_s3 + $0xb68] sm:$0xff] }
 0x158   :  { %4235 = vmatpush1.bf16.msra.mxu1 %v4234_v28  ;;  %v4318_v28 = vpack.c.bf16 %v251_v21, %v235_v20  ;;  %v395_v20 = vld [vmem:[%s7046_s3 + $0x760] sm:$0xff]  ;;  %v540_v63 = vld [vmem:[%s7046_s3 + $0xbe8] sm:$0xff] }
 0x159   :  { %4299 = vmatpush1.bf16.msra.mxu0 %v4298_v29  ;;  %4237 = vmatprep.subr.bf16.mxu1 %v4236_v30  ;;  %v4382_v29 = vpack.c.bf16 %v253_v24, %v237_v22  ;;  %v4320_v30 = vpack.c.bf16 %v284_v26, %v268_v25  ;;  %v411_v21 = vld [vmem:[%s7046_s3 + $0x7e0] sm:$0xff]  ;;  %v397_v22 = vld [vmem:[%s7046_s3 + $0x770] sm:$0xff]  ;;  %v428_v25 = vld [vmem:[%s7046_s3 + $0x868] sm:$0xff] }
 0x15a   :  { %4301 = vmatprep.subr.bf16.mxu0 %v4300_v35  ;;  %v413_v24 = vld [vmem:[%s7046_s3 + $0x7f0] sm:$0xff]  ;;  %v444_v26 = vld [vmem:[%s7046_s3 + $0x8e8] sm:$0xff] }
 0x15c   :  { %4239 = vmatpush1.bf16.msra.mxu1 %v4238_v42  ;;  %v4322_v42 = vpack.c.bf16 %v283_v32, %v267_v31  ;;  %v427_v31 = vld [vmem:[%s7046_s3 + $0x860] sm:$0xff] }
 0x15d   :  { %4303 = vmatpush1.bf16.msra.mxu0 %v4302_v43  ;;  %4241 = vmatprep.subr.bf16.mxu1 %v4240_v44  ;;  %v4386_v43 = vpack.c.bf16 %v285_v36, %v269_v33  ;;  %v4324_v44 = vpack.c.bf16 %v316_v38, %v300_v37  ;;  %v443_v32 = vld [vmem:[%s7046_s3 + $0x8e0] sm:$0xff]  ;;  %v429_v33 = vld [vmem:[%s7046_s3 + $0x870] sm:$0xff]  ;;  %v460_v37 = vld [vmem:[%s7046_s3 + $0x968] sm:$0xff] }
 0x15e   :  { %4305 = vmatprep.subr.bf16.mxu0 %v4304_v48  ;;  %v4388_v48 = vpack.c.bf16 %v318_v41, %v302_v40  ;;  %v445_v36 = vld [vmem:[%s7046_s3 + $0x8f0] sm:$0xff]  ;;  %v476_v38 = vld [vmem:[%s7046_s3 + $0x9e8] sm:$0xff]  ;;  %v462_v40 = vld [vmem:[%s7046_s3 + $0x978] sm:$0xff] }
 0x15f   :  { %v478_v41 = vld [vmem:[%s7046_s3 + $0x9f8] sm:$0xff] }
 0x160   :  { %4243 = vmatpush1.bf16.msra.mxu1 %v4242_v54  ;;  %v4326_v54 = vpack.c.bf16 %v315_v46, %v299_v45  ;;  %v459_v45 = vld [vmem:[%s7046_s3 + $0x960] sm:$0xff] }
 0x161   :  { %4307 = vmatpush1.bf16.msra.mxu0 %v4306_v55  ;;  %4309 = vmatprep.subr.bf16.mxu1 %v4308_v56  ;;  %v4390_v55 = vpack.c.bf16 %v317_v49, %v301_v47  ;;  %v4328_v56 = vpack.c.bf16 %v348_v51, %v332_v50  ;;  %v475_v46 = vld [vmem:[%s7046_s3 + $0x9e0] sm:$0xff]  ;;  %v461_v47 = vld [vmem:[%s7046_s3 + $0x970] sm:$0xff]  ;;  %v492_v50 = vld [vmem:[%s7046_s3 + $0xa68] sm:$0xff] }
 0x162   :  { %4373 = vmatprep.subr.bf16.mxu0 %v4372_v59  ;;  %v333_v59 = vld [vmem:[%s7046_s3 + $0x570] sm:$0xff]  ;;  %v508_v51 = vld [vmem:[%s7046_s3 + $0xae8] sm:$0xff] }
 0x163   :  { %1104 = vmatmul.mubr.f32.vlgmr.msra.gmra.mrb[4].mxu1 %v5317_v39  ;;  %v477_v49 = vld [vmem:[%s7046_s3 + $0x9f0] sm:$0xff] }
 0x164   :  { %1175 = vmatmul.mubr.f32.vlgmr.msra.gmra.mrb[6].mxu0 %v5317_v39  ;;  %4311 = vmatpush1.bf16.msra.mxu1 %v4310_v0  ;;  %v366_v0 = vld [vmem:[%s7046_s3 + $0x678] sm:$0xff] }
 0x165   :  { %1245 = vmatprep.mubr.f32.mxu1 %v5309_v34  ;;  %4375 = vmatpush1.bf16.msra.mxu0 %v4374_v3  ;;  %v4394_v3 = vpack.c.bf16 %v349_v61, %v333_v59  ;;  %v4396_v8 = vpack.c.bf16 %v382_v1, %v366_v0  ;;  %v493_v59 = vld [vmem:[%s7046_s3 + $0xa70] sm:$0xff]  ;;  %v526_v0 = vld [vmem:[%s7046_s3 + $0xb78] sm:$0xff] }
 0x166   :  { %1316 = vmatprep.mubr.f32.mxu0 %v5309_v34  ;;  %4313 = vmatprep.subr.bf16.mxu1 %v4312_v7  ;;  %v286_v34 = vld [vmem:[%s7046_s3 + $0x3f8] sm:$0xff]  ;;  %v365_v7 = vld [vmem:[%s7046_s3 + $0x670] sm:$0xff] }
 0x167   :  { %4377 = vmatprep.subr.bf16.mxu0 %v4376_v11  ;;  %v4384_v35 = vpack.c.bf16 %v286_v34, %v270_v27  ;;  %v412_v11 = vld [vmem:[%s7046_s3 + $0x7e8] sm:$0xff]  ;;  %v430_v27 = vld [vmem:[%s7046_s3 + $0x878] sm:$0xff]  ;;  %v509_v61 = vld [vmem:[%s7046_s3 + $0xaf0] sm:$0xff] }
 0x168   :  { %4315 = vmatpush1.bf16.msra.mxu1 %v4314_v14  ;;  %v4334_v14 = vpack.c.bf16 %v379_v6, %v363_v5  ;;  %v446_v34 = vld [vmem:[%s7046_s3 + $0x8f8] sm:$0xff]  ;;  %v523_v5 = vld [vmem:[%s7046_s3 + $0xb60] sm:$0xff] }
 0x169   :  { %4379 = vmatpush1.bf16.msra.mxu0 %v4378_v15  ;;  %4317 = vmatprep.subr.bf16.mxu1 %v4316_v18  ;;  %v4398_v15 = vpack.c.bf16 %v381_v9, %v365_v7  ;;  %v4336_v18 = vpack.c.bf16 %v412_v11, %v396_v10  ;;  %v542_v1 = vld [vmem:[%s7046_s3 + $0xbf8] sm:$0xff]  ;;  %v539_v6 = vld [vmem:[%s7046_s3 + $0xbe0] sm:$0xff]  ;;  %v525_v7 = vld [vmem:[%s7046_s3 + $0xb70] sm:$0xff] }
 0x16a   :  { %4381 = vmatprep.subr.bf16.mxu0 %v4380_v23  ;;  %v4400_v23 = vpack.c.bf16 %v414_v13, %v398_v12  ;;  %v541_v9 = vld [vmem:[%s7046_s3 + $0xbf0] sm:$0xff]  ;;  %v556_v10 = vld [vmem:[%s7046_s3 + $0xc68] sm:$0xff]  ;;  %v558_v12 = vld [vmem:[%s7046_s3 + $0xc78] sm:$0xff] }
 0x16b   :  { %v572_v11 = vld [vmem:[%s7046_s3 + $0xce8] sm:$0xff]  ;;  %v574_v13 = vld [vmem:[%s7046_s3 + $0xcf8] sm:$0xff] }
 0x16c   :  { %4319 = vmatpush1.bf16.msra.mxu1 %v4318_v28  ;;  %v4338_v28 = vpack.c.bf16 %v411_v21, %v395_v20  ;;  %v555_v20 = vld [vmem:[%s7046_s3 + $0xc60] sm:$0xff] }
 0x16d   :  { %4383 = vmatpush1.bf16.msra.mxu0 %v4382_v29  ;;  %4321 = vmatprep.subr.bf16.mxu1 %v4320_v30  ;;  %v4402_v29 = vpack.c.bf16 %v413_v24, %v397_v22  ;;  %v4340_v30 = vpack.c.bf16 %v444_v26, %v428_v25  ;;  %v571_v21 = vld [vmem:[%s7046_s3 + $0xce0] sm:$0xff]  ;;  %v557_v22 = vld [vmem:[%s7046_s3 + $0xc70] sm:$0xff]  ;;  %v588_v25 = vld [vmem:[%s7046_s3 + $0xd68] sm:$0xff] }
 0x16e   :  { %4385 = vmatprep.subr.bf16.mxu0 %v4384_v35  ;;  %v4404_v35 = vpack.c.bf16 %v446_v34, %v430_v27  ;;  %v573_v24 = vld [vmem:[%s7046_s3 + $0xcf0] sm:$0xff]  ;;  %v604_v26 = vld [vmem:[%s7046_s3 + $0xde8] sm:$0xff]  ;;  %v590_v27 = vld [vmem:[%s7046_s3 + $0xd78] sm:$0xff] }
 0x16f   :  { %v606_v34 = vld [vmem:[%s7046_s3 + $0xdf8] sm:$0xff] }
 0x170   :  { %4323 = vmatpush1.bf16.msra.mxu1 %v4322_v42  ;;  %v4342_v42 = vpack.c.bf16 %v443_v32, %v427_v31  ;;  %v587_v31 = vld [vmem:[%s7046_s3 + $0xd60] sm:$0xff] }
 0x171   :  { %4387 = vmatpush1.bf16.msra.mxu0 %v4386_v43  ;;  %4325 = vmatprep.subr.bf16.mxu1 %v4324_v44  ;;  %v4406_v43 = vpack.c.bf16 %v445_v36, %v429_v33  ;;  %v4344_v44 = vpack.c.bf16 %v476_v38, %v460_v37  ;;  %v603_v32 = vld [vmem:[%s7046_s3 + $0xde0] sm:$0xff]  ;;  %v589_v33 = vld [vmem:[%s7046_s3 + $0xd70] sm:$0xff]  ;;  %v620_v37 = vld [vmem:[%s7046_s3 + $0xe68] sm:$0xff] }
 0x172   :  { %4389 = vmatprep.subr.bf16.mxu0 %v4388_v48  ;;  %v4408_v48 = vpack.c.bf16 %v478_v41, %v462_v40  ;;  %v605_v36 = vld [vmem:[%s7046_s3 + $0xdf0] sm:$0xff]  ;;  %v636_v38 = vld [vmem:[%s7046_s3 + $0xee8] sm:$0xff]  ;;  %v622_v40 = vld [vmem:[%s7046_s3 + $0xe78] sm:$0xff] }
 0x173   :  { %v638_v41 = vld [vmem:[%s7046_s3 + $0xef8] sm:$0xff] }
 0x174   :  { %4327 = vmatpush1.bf16.msra.mxu1 %v4326_v54  ;;  %v4346_v54 = vpack.c.bf16 %v475_v46, %v459_v45  ;;  %v619_v45 = vld [vmem:[%s7046_s3 + $0xe60] sm:$0xff] }
 0x175   :  { %4391 = vmatpush1.bf16.msra.mxu0 %v4390_v55  ;;  %4329 = vmatprep.subr.bf16.mxu1 %v4328_v56  ;;  %v4410_v55 = vpack.c.bf16 %v477_v49, %v461_v47  ;;  %v4348_v56 = vpack.c.bf16 %v508_v51, %v492_v50  ;;  %v635_v46 = vld [vmem:[%s7046_s3 + $0xee0] sm:$0xff]  ;;  %v621_v47 = vld [vmem:[%s7046_s3 + $0xe70] sm:$0xff]  ;;  %v652_v50 = vld [vmem:[%s7046_s3 + $0xf68] sm:$0xff] }
 0x176   :  { %4393 = vmatprep.subr.bf16.mxu0 %v4392_v60  ;;  %v4412_v60 = vpack.c.bf16 %v510_v53, %v494_v52  ;;  %v637_v49 = vld [vmem:[%s7046_s3 + $0xef0] sm:$0xff]  ;;  %v668_v51 = vld [vmem:[%s7046_s3 + $0xfe8] sm:$0xff]  ;;  %v654_v52 = vld [vmem:[%s7046_s3 + $0xf78] sm:$0xff] }
 0x177   :  { %v670_v53 = vld [vmem:[%s7046_s3 + $0xff8] sm:$0xff] }
 0x178   :  { %4331 = vmatpush1.bf16.msra.mxu1 %v4330_v2  ;;  %v4350_v2 = vpack.c.bf16 %v507_v58, %v491_v57  ;;  %v651_v57 = vld [vmem:[%s7046_s3 + $0xf60] sm:$0xff] }
 0x179   :  { %4395 = vmatpush1.bf16.msra.mxu0 %v4394_v3  ;;  %4333 = vmatprep.subr.bf16.mxu1 %v4332_v4  ;;  %v4414_v3 = vpack.c.bf16 %v509_v61, %v493_v59  ;;  %v4352_v4 = vpack.c.bf16 %v540_v63, %v524_v62  ;;  %v667_v58 = vld [vmem:[%s7046_s3 + $0xfe0] sm:$0xff]  ;;  %v653_v59 = vld [vmem:[%s7046_s3 + $0xf70] sm:$0xff]  ;;  %v1360_v63 = vld [vmem:[%s7048_s5 + $0x8] sm:$0xff] }
 0x17a   :  { %4397 = vmatprep.subr.bf16.mxu0 %v4396_v8  ;;  %v4416_v8 = vpack.c.bf16 %v542_v1, %v526_v0  ;;  %v669_v61 = vld [vmem:[%s7046_s3 + $0xff0] sm:$0xff]  ;;  %v1359_v62 = vld [vmem:[%s7048_s5] sm:$0xff]  ;;  %v3190_v1 = vld [vmem:[%s7048_s5 + $0x88] sm:$0xff] }
 0x17b   :  { %v3189_v0 = vld [vmem:[%s7048_s5 + $0x80] sm:$0xff] }
 0x17c   :  { %4335 = vmatpush1.bf16.msra.mxu1 %v4334_v14  ;;  %v4354_v14 = vpack.c.bf16 %v539_v6, %v523_v5  ;;  %v4436_v5 = vpack.c.bf16 %v3190_v1, %v3189_v0  ;;  %v1361_v6 = vld [vmem:[%s7048_s5 + $0x10] sm:$0xff] }
 0x17d   :  { %4399 = vmatpush1.bf16.msra.mxu0 %v4398_v15  ;;  %4337 = vmatprep.subr.bf16.mxu1 %v4336_v18  ;;  %v4418_v15 = vpack.c.bf16 %v541_v9, %v525_v7  ;;  %v4356_v18 = vpack.c.bf16 %v572_v11, %v556_v10  ;;  %v1362_v7 = vld [vmem:[%s7048_s5 + $0x18] sm:$0xff] }
 0x17e   :  { %4401 = vmatprep.subr.bf16.mxu0 %v4400_v23  ;;  %v4420_v23 = vpack.c.bf16 %v574_v13, %v558_v12  ;;  %v3192_v9 = vld [vmem:[%s7048_s5 + $0x98] sm:$0xff]  ;;  %v4472_v10 = vpack.c.bf16 %v1362_v7, %v1361_v6  ;;  %v1363_v12 = vld [vmem:[%s7048_s5 + $0x20] sm:$0xff]  ;;  %v1364_v13 = vld [vmem:[%s7048_s5 + $0x28] sm:$0xff] }
 0x180   :  { %4339 = vmatpush1.bf16.msra.mxu1 %v4338_v28  ;;  %v4358_v28 = vpack.c.bf16 %v571_v21, %v555_v20  ;;  %v1365_v21 = vld [vmem:[%s7048_s5 + $0x30] sm:$0xff] }
 0x181   :  { %4403 = vmatpush1.bf16.msra.mxu0 %v4402_v29  ;;  %4341 = vmatprep.subr.bf16.mxu1 %v4340_v30  ;;  %v4422_v29 = vpack.c.bf16 %v573_v24, %v557_v22  ;;  %v4360_v30 = vpack.c.bf16 %v604_v26, %v588_v25  ;;  %v1366_v22 = vld [vmem:[%s7048_s5 + $0x38] sm:$0xff]  ;;  %v1367_v26 = vld [vmem:[%s7048_s5 + $0x40] sm:$0xff] }
 0x182   :  { %4405 = vmatprep.subr.bf16.mxu0 %v4404_v35  ;;  %v4424_v35 = vpack.c.bf16 %v606_v34, %v590_v27  ;;  %v4480_v24 = vpack.c.bf16 %v1366_v22, %v1365_v21  ;;  %v1368_v27 = vld [vmem:[%s7048_s5 + $0x48] sm:$0xff]  ;;  %v3197_v34 = vld [vmem:[%s7048_s5 + $0xc0] sm:$0xff] }
 0x184   :  { %4343 = vmatpush1.bf16.msra.mxu1 %v4342_v42  ;;  %v4362_v42 = vpack.c.bf16 %v603_v32, %v587_v31  ;;  %v1369_v31 = vld [vmem:[%s7048_s5 + $0x50] sm:$0xff]  ;;  %v1370_v32 = vld [vmem:[%s7048_s5 + $0x58] sm:$0xff] }
 0x185   :  { %4407 = vmatpush1.bf16.msra.mxu0 %v4406_v43  ;;  %4345 = vmatprep.subr.bf16.mxu1 %v4344_v44  ;;  %v4426_v43 = vpack.c.bf16 %v605_v36, %v589_v33  ;;  %v4364_v44 = vpack.c.bf16 %v636_v38, %v620_v37  ;;  %v685_v33 = vsub.s32 2, %v5272_v16  ;;  %v3200_v36 = vld [vmem:[%s7048_s5 + $0xd8] sm:$0xff]  ;;  %v6521_v37 = vld [vmem:[%s7049_s4] sm:$0xff]  ;;  %v689_v38 = vsub.s32 3, %v5272_v16 }
 0x186   :  { %4409 = vmatprep.subr.bf16.mxu0 %v4408_v48  ;;  %v4428_v48 = vpack.c.bf16 %v638_v41, %v622_v40  ;;  %v4488_v40 = vpack.c.bf16 %v1370_v32, %v1369_v31  ;;  %v3207_v32 = vld [vmem:[%s7048_s5 + $0x110] sm:$0xff] }
 0x188   :  { %4347 = vmatpush1.bf16.msra.mxu1 %v4346_v54  ;;  %v4366_v54 = vpack.c.bf16 %v635_v46, %v619_v45  ;;  %v686_v45 = vrot.slane %v6521_v37, %v685_v33  ;;  %v3201_v46 = vld [vmem:[%s7048_s5 + $0xe0] sm:$0xff] }
 0x189   :  { %4411 = vmatpush1.bf16.msra.mxu0 %v4410_v55  ;;  %4349 = vmatprep.subr.bf16.mxu1 %v4348_v56  ;;  %v4430_v55 = vpack.c.bf16 %v637_v49, %v621_v47  ;;  %v4368_v56 = vpack.c.bf16 %v668_v51, %v652_v50  ;;  %v3202_v47 = vld [vmem:[%s7048_s5 + $0xe8] sm:$0xff]  ;;  %v690_v49 = vrot.slane %v6521_v37, %v689_v38 }
 0x18a   :  { %4413 = vmatprep.subr.bf16.mxu0 %v4412_v60  ;;  %v4432_v60 = vpack.c.bf16 %v670_v53, %v654_v52  ;;  %v4460_v53 = vpack.c.bf16 %v3202_v47, %v3201_v46  ;;  %v3213_v47 = vld [vmem:[%s7048_s5 + $0x140] sm:$0xff] }
 0x18c   :  { %4351 = vmatpush1.bf16.msra.mxu1 %v4350_v2  ;;  %v4370_v2 = vpack.c.bf16 %v667_v58, %v651_v57 }
 0x18d   :  { %4415 = vmatpush1.bf16.msra.mxu0 %v4414_v3  ;;  %4353 = vmatprep.subr.bf16.mxu1 %v4352_v4  ;;  %v4434_v3 = vpack.c.bf16 %v669_v61, %v653_v59  ;;  %v4468_v4 = vpack.c.bf16 %v1360_v63, %v1359_v62  ;;  %v3204_v61 = vld [vmem:[%s7048_s5 + $0xf8] sm:$0xff] }
 0x18e   :  { %4417 = vmatprep.subr.bf16.mxu0 %v4416_v8  ;;  %v3191_v8 = vld [vmem:[%s7048_s5 + $0x90] sm:$0xff] }
 0x18f   :  { %v4440_v11 = vpack.c.bf16 %v3192_v9, %v3191_v8  ;;  %v3205_v8 = vld [vmem:[%s7048_s5 + $0x100] sm:$0xff]  ;;  %v3206_v9 = vld [vmem:[%s7048_s5 + $0x108] sm:$0xff] }
 0x190   :  { %4355 = vmatpush1.bf16.msra.mxu1 %v4354_v14  ;;  %v3193_v14 = vld [vmem:[%s7048_s5 + $0xa0] sm:$0xff] }
 0x191   :  { %4419 = vmatpush1.bf16.msra.mxu0 %v4418_v15  ;;  %4357 = vmatprep.subr.bf16.mxu1 %v4356_v18  ;;  %v3194_v15 = vld [vmem:[%s7048_s5 + $0xa8] sm:$0xff]  ;;  %v4476_v18 = vpack.c.bf16 %v1364_v13, %v1363_v12  ;;  %v701_v12 = vsub.s32 6, %v5272_v16  ;;  %v697_v13 = vsub.s32 5, %v5272_v16 }
 0x192   :  { %4421 = vmatprep.subr.bf16.mxu0 %v4420_v23  ;;  %v4444_v20 = vpack.c.bf16 %v3194_v15, %v3193_v14  ;;  %v3195_v23 = vld [vmem:[%s7048_s5 + $0xb0] sm:$0xff]  ;;  %v705_v14 = vsub.s32 7, %v5272_v16 }
 0x194   :  { %4359 = vmatpush1.bf16.msra.mxu1 %v4358_v28  ;;  %v3198_v28 = vld [vmem:[%s7048_s5 + $0xc8] sm:$0xff]  ;;  %v706_v21 = vrot.slane %v6521_v37, %v705_v14 }
 0x195   :  { %4423 = vmatpush1.bf16.msra.mxu0 %v4422_v29  ;;  %4361 = vmatprep.subr.bf16.mxu1 %v4360_v30  ;;  %v4484_v29 = vpack.c.bf16 %v1368_v27, %v1367_v26  ;;  %v4452_v30 = vpack.c.bf16 %v3198_v28, %v3197_v34 }
 0x196   :  { %4425 = vmatprep.subr.bf16.mxu0 %v4424_v35  ;;  %v3199_v35 = vld [vmem:[%s7048_s5 + $0xd0] sm:$0xff] }
 0x197   :  { %v4456_v41 = vpack.c.bf16 %v3200_v36, %v3199_v35  ;;  %v3208_v35 = vld [vmem:[%s7048_s5 + $0x118] sm:$0xff] }
 0x198   :  { %4363 = vmatpush1.bf16.msra.mxu1 %v4362_v42  ;;  %v1371_v42 = vld [vmem:[%s7048_s5 + $0x60] sm:$0xff]  ;;  %v4504_v36 = vpack.c.bf16 %v3208_v35, %v3207_v32 }
 0x199   :  { %4427 = vmatpush1.bf16.msra.mxu0 %v4426_v43  ;;  %4365 = vmatprep.subr.bf16.mxu1 %v4364_v44  ;;  %v1372_v43 = vld [vmem:[%s7048_s5 + $0x68] sm:$0xff]  ;;  %v678_v44 = vrot.slane %v6521_v37, %v5275_v17 }
 0x19a   :  { %4429 = vmatprep.subr.bf16.mxu0 %v4428_v48  ;;  %v682_v48 = vrot.slane %v6521_v37, %v5281_v19  ;;  %v4492_v50 = vpack.c.bf16 %v1372_v43, %v1371_v42  ;;  %v3210_v42 = vld [vmem:[%s7048_s5 + $0x128] sm:$0xff] }
 0x19c   :  { %4367 = vmatpush1.bf16.msra.mxu1 %v4366_v54  ;;  %v1373_v54 = vld [vmem:[%s7048_s5 + $0x70] sm:$0xff] }
 0x19d   :  { %4431 = vmatpush1.bf16.msra.mxu0 %v4430_v55  ;;  %4369 = vmatprep.subr.bf16.mxu1 %v4368_v56  ;;  %v1374_v55 = vld [vmem:[%s7048_s5 + $0x78] sm:$0xff] }
 0x19e   :  { %4433 = vmatprep.subr.bf16.mxu0 %v4432_v60  ;;  %v3203_v60 = vld [vmem:[%s7048_s5 + $0xf0] sm:$0xff] }
 0x1a0   :  { %4371 = vmatpush1.bf16.msra.mxu1 %v4370_v2  ;;  %v4496_v2 = vpack.c.bf16 %v1374_v55, %v1373_v54  ;;  %v3218_v54 = vld [vmem:[%s7048_s5 + $0x168] sm:$0xff] }
 0x1a1   :  { %4435 = vmatpush1.bf16.msra.mxu0 %v4434_v3  ;;  %4469 = vmatprep.subr.bf16.mxu1 %v4468_v4 }
 0x1a2   :  { %4437 = vmatprep.subr.bf16.mxu0 %v4436_v5 }
 0x1a3   :  { %1246 = vmatmul.mubr.f32.vlgmr.msra.gmra.mrb[6].mxu1 %v5317_v39 }
 0x1a4   :  { %1317 = vmatmul.mubr.f32.vlgmr.msra.gmra.mrb[8].mxu0 %v5317_v39  ;;  %4471 = vmatpush3.bf16.msra.mxu1 %v4468_v4  ;;  %v3196_v39 = vld [vmem:[%s7048_s5 + $0xb8] sm:$0xff] }
 0x1a5   :  { %4439 = vmatpush3.bf16.msra.mxu0 %v4436_v5  ;;  %4473 = vmatprep.subr.bf16.mxu1 %v4472_v10  ;;  %v4448_v25 = vpack.c.bf16 %v3196_v39, %v3195_v23  ;;  %v4464_v5 = vpack.c.bf16 %v3204_v61, %v3203_v60  ;;  %v3222_v60 = vld [vmem:[%s7048_s5 + $0x188] sm:$0xff] }
 0x1a6   :  { %4441 = vmatprep.subr.bf16.mxu0 %v4440_v11 }
 0x1a8   :  { %4475 = vmatpush3.bf16.msra.mxu1 %v4472_v10  ;;  %v4500_v10 = vpack.c.bf16 %v3206_v9, %v3205_v8 }
 0x1a9   :  { %4443 = vmatpush3.bf16.msra.mxu0 %v4440_v11  ;;  %4477 = vmatprep.subr.bf16.mxu1 %v4476_v18  ;;  %v693_v11 = vsub.s32 4, %v5272_v16  ;;  %v3223_v16 = vld [vmem:[%s7048_s5 + $0x190] sm:$0xff] }
 0x1aa   :  { %4445 = vmatprep.subr.bf16.mxu0 %v4444_v20 }
 0x1ab   :  { %v694_v15 = vrot.slane %v6521_v37, %v693_v11 }
 0x1ac   :  { %4479 = vmatpush3.bf16.msra.mxu1 %v4476_v18  ;;  %v702_v18 = vrot.slane %v6521_v37, %v701_v12 }
 0x1ad   :  { %4447 = vmatpush3.bf16.msra.mxu0 %v4444_v20  ;;  %4481 = vmatprep.subr.bf16.mxu1 %v4480_v24  ;;  %v698_v20 = vrot.slane %v6521_v37, %v697_v13  ;;  %v3209_v37 = vld [vmem:[%s7048_s5 + $0x120] sm:$0xff] }
 0x1ae   :  { %4449 = vmatprep.subr.bf16.mxu0 %v4448_v25  ;;  %v4508_v43 = vpack.c.bf16 %v3210_v42, %v3209_v37  ;;  %v3226_v42 = vld [vmem:[%s7048_s5 + $0x1a8] sm:$0xff] }
 0x1b0   :  { %4483 = vmatpush3.bf16.msra.mxu1 %v4480_v24 }
 0x1b1   :  { %4451 = vmatpush3.bf16.msra.mxu0 %v4448_v25  ;;  %4485 = vmatprep.subr.bf16.mxu1 %v4484_v29 }
 0x1b2   :  { %4453 = vmatprep.subr.bf16.mxu0 %v4452_v30 }
 0x1b4   :  { %4487 = vmatpush3.bf16.msra.mxu1 %v4484_v29 }
 0x1b5   :  { %4455 = vmatpush3.bf16.msra.mxu0 %v4452_v30  ;;  %4489 = vmatprep.subr.bf16.mxu1 %v4488_v40 }
 0x1b6   :  { %v821_v51 = vpop.f32.mrb[0].mxu1  ;;  %v892_v52 = vpop.f32.mrb[2].mxu0  ;;  %4457 = vmatprep.subr.bf16.mxu0 %v4456_v41 }
 0x1b7   :  { %v822_v56 = vadd.f32 %v821_v51, %v678_v44  ;;  %v893_v57 = vadd.f32 %v892_v52, %v686_v45  ;;  %v823_v58 = vpop.f32.mrb[1].mxu1  ;;  %v894_v59 = vpop.f32.mrb[3].mxu0  ;;  %v3211_v44 = vld [vmem:[%s7048_s5 + $0x130] sm:$0xff]  ;;  %v3212_v45 = vld [vmem:[%s7048_s5 + $0x138] sm:$0xff] }
 0x1b8   :  { %v824_v62 = vadd.f32 %v823_v58, %v682_v48  ;;  %v895_v63 = vadd.f32 %v894_v59, %v690_v49  ;;  %4491 = vmatpush3.bf16.msra.mxu1 %v4488_v40  ;;  %v4512_v46 = vpack.c.bf16 %v3212_v45, %v3211_v44  ;;  %v3214_v48 = vld [vmem:[%s7048_s5 + $0x148] sm:$0xff]  ;;  %v3216_v51 = vld [vmem:[%s7048_s5 + $0x158] sm:$0xff]  ;;  %v3221_v59 = vld [vmem:[%s7048_s5 + $0x180] sm:$0xff] }
 0x1b9   :  { %v1323_v0 = vmax.f32 %v822_v56, 0.0  ;;  %v1325_v1 = vmax.f32 %v893_v57, 0.0  ;;  %4459 = vmatpush3.bf16.msra.mxu0 %v4456_v41  ;;  %4493 = vmatprep.subr.bf16.mxu1 %v4492_v50  ;;  %v4516_v49 = vpack.c.bf16 %v3214_v48, %v3213_v47  ;;  %v3219_v56 = vld [vmem:[%s7048_s5 + $0x170] sm:$0xff]  ;;  %v3220_v57 = vld [vmem:[%s7048_s5 + $0x178] sm:$0xff]  ;;  %v4532_v61 = vpack.c.bf16 %v3222_v60, %v3221_v59 }
 0x1ba   :  { %v1324_v3 = vmax.f32 %v824_v62, 0.0  ;;  %v1326_v4 = vmax.f32 %v895_v63, 0.0  ;;  %4461 = vmatprep.subr.bf16.mxu0 %v4460_v53  ;;  %v4528_v58 = vpack.c.bf16 %v3220_v57, %v3219_v56  ;;  %v672_v62 = vld [vmem:[%s7049_s4 + $0x8] sm:$0xff]  ;;  %v3228_v47 = vld [vmem:[%s7048_s5 + $0x1b8] sm:$0xff]  ;;  %v3233_v56 = vld [vmem:[%s7048_s5 + $0x1e0] sm:$0xff] }
 0x1bb   :  { %1339 = vst [vmem:[#allocation2 + $0x4] sm:$0x3] %v1323_v0  ;;  %1341 = vst [vmem:[#allocation2 + $0x8] sm:$0x3] %v1325_v1  ;;  %v710_v63 = vrot.slane %v672_v62, %v5275_v17  ;;  %v718_v0 = vrot.slane %v672_v62, %v685_v33  ;;  %v714_v1 = vrot.slane %v672_v62, %v5281_v19  ;;  %v3234_v57 = vld [vmem:[%s7048_s5 + $0x1e8] sm:$0xff]  ;;  %v3235_v59 = vld [vmem:[%s7048_s5 + $0x1f0] sm:$0xff] }
 0x1bc   :  { %1340 = vst [vmem:[#allocation2 + $0x6] sm:$0x3] %v1324_v3  ;;  %1342 = vst [vmem:[#allocation2 + $0xa] sm:$0x3] %v1326_v4  ;;  %4495 = vmatpush3.bf16.msra.mxu1 %v4492_v50  ;;  %v3215_v50 = vld [vmem:[%s7048_s5 + $0x150] sm:$0xff]  ;;  %v3236_v60 = vld [vmem:[%s7048_s5 + $0x1f8] sm:$0xff] }
 0x1bd   :  { %4463 = vmatpush3.bf16.msra.mxu0 %v4460_v53  ;;  %4497 = vmatprep.subr.bf16.mxu1 %v4496_v2  ;;  %v4520_v52 = vpack.c.bf16 %v3216_v51, %v3215_v50  ;;  %v3217_v53 = vld [vmem:[%s7048_s5 + $0x160] sm:$0xff]  ;;  %v3230_v51 = vld [vmem:[%s7048_s5 + $0x1c8] sm:$0xff] }
 0x1be   :  { %4465 = vmatprep.subr.bf16.mxu0 %v4464_v5  ;;  %v4524_v55 = vpack.c.bf16 %v3218_v54, %v3217_v53  ;;  %v3229_v50 = vld [vmem:[%s7048_s5 + $0x1c0] sm:$0xff]  ;;  %v3231_v53 = vld [vmem:[%s7048_s5 + $0x1d0] sm:$0xff]  ;;  %v3232_v54 = vld [vmem:[%s7048_s5 + $0x1d8] sm:$0xff] }
 0x1c0   :  { %4499 = vmatpush3.bf16.msra.mxu1 %v4496_v2  ;;  %v722_v2 = vrot.slane %v672_v62, %v689_v38  ;;  %v726_v38 = vrot.slane %v672_v62, %v693_v11 }
 0x1c1   :  { %4467 = vmatpush3.bf16.msra.mxu0 %v4464_v5  ;;  %4501 = vmatprep.subr.bf16.mxu1 %v4500_v10 }
 0x1c3   :  { %v1375_v6 = vld [vmem:[#allocation2 + $0x2] sm:$0xff] }
 0x1c4   :  { %v1355_v7 = vld [vmem:[#allocation2] sm:$0xff]  ;;  %3580 = vmatprep.mubr.f32.mxu0 %v1375_v6 }
 0x1c5   :  { %3618 = vmatprep.mubr.f32.mxu1 %v1355_v7  ;;  %v1566_v35 = vld [vmem:[#allocation2 + $0x4] sm:$0xff] }
 0x1f6   :  { %v963_v22 = vpop.f32.mrb[2].mxu1  ;;  %v1034_v23 = vpop.f32.mrb[4].mxu0 }
 0x1f7   :  { %v964_v39 = vadd.f32 %v963_v22, %v694_v15  ;;  %v1035_v24 = vadd.f32 %v1034_v23, %v702_v18  ;;  %v965_v25 = vpop.f32.mrb[3].mxu1  ;;  %v1036_v26 = vpop.f32.mrb[5].mxu0  ;;  %v730_v22 = vrot.slane %v672_v62, %v697_v13  ;;  %v738_v23 = vrot.slane %v672_v62, %v705_v14  ;;  %v3224_v14 = vld [vmem:[%s7048_s5 + $0x198] sm:$0xff] }
 0x1f8   :  { %v966_v27 = vadd.f32 %v965_v25, %v698_v20  ;;  %v1037_v34 = vadd.f32 %v1036_v26, %v706_v21  ;;  %v734_v21 = vrot.slane %v672_v62, %v701_v12  ;;  %v3237_v62 = vld [vmem:[%s7048_s5 + $0x200] sm:$0xff] }
 0x1f9   :  { %v1327_v28 = vmax.f32 %v964_v39, 0.0  ;;  %v1329_v29 = vmax.f32 %v1035_v24, 0.0 }
 0x1fa   :  { %v1328_v30 = vmax.f32 %v966_v27, 0.0  ;;  %v1330_v31 = vmax.f32 %v1037_v34, 0.0 }
 0x1fb   :  { %1343 = vst [vmem:[#allocation2 + $0xc] sm:$0x3] %v1327_v28  ;;  %1345 = vst [vmem:[#allocation2 + $0x10] sm:$0x3] %v1329_v29 }
 0x1fc   :  { %1344 = vst [vmem:[#allocation2 + $0xe] sm:$0x3] %v1328_v30  ;;  %1346 = vst [vmem:[#allocation2 + $0x12] sm:$0x3] %v1330_v31 }
 0x202   :  { %v1676_v48 = vld [vmem:[#allocation2 + $0x6] sm:$0xff] }
 0x203   :  { %v1376_v40 = vld [vmem:[#allocation2 + $0xa] sm:$0xff] }
 0x204   :  { %v6589_v41 = vld [vmem:[#allocation2 + $0x8] sm:$0xff]  ;;  %3581 = vmatmul.mubr.f32.vlgmr.msra.gmra.mrb[10].mxu0 %v1376_v40  ;;  %v3225_v40 = vld [vmem:[%s7048_s5 + $0x1a0] sm:$0xff] }
 0x205   :  { %3619 = vmatmul.mubr.f32.vlgmr.msra.gmra.mrb[8].mxu1 %v6589_v41  ;;  %v1567_v37 = vld [vmem:[#allocation2 + $0xc] sm:$0xff]  ;;  %v4540_v44 = vpack.c.bf16 %v3226_v42, %v3225_v40  ;;  %v1989_v42 = vld [vmem:[%s7050_s9 + $0x20] sm:$0xff] }
 0x206   :  { %4503 = vmatpush3.bf16.msra.mxu1 %v4500_v10 }
 0x207   :  { %4505 = vmatprep.subr.bf16.mxu1 %v4504_v36 }
 0x20a   :  { %4507 = vmatpush3.bf16.msra.mxu1 %v4504_v36  ;;  %v4536_v36 = vpack.c.bf16 %v3224_v14, %v3223_v16  ;;  %v3257_v16 = vld [vmem:[%s7050_s9 + $0x48] sm:$0xff]  ;;  %v1988_v14 = vld [vmem:[%s7050_s9 + $0x18] sm:$0xff] }
 0x20b   :  { %4509 = vmatprep.subr.bf16.mxu1 %v4508_v43 }
 0x20e   :  { %4511 = vmatpush3.bf16.msra.mxu1 %v4508_v43 }
 0x20f   :  { %4513 = vmatprep.subr.bf16.mxu1 %v4512_v46 }
 0x212   :  { %4515 = vmatpush3.bf16.msra.mxu1 %v4512_v46  ;;  %v3227_v46 = vld [vmem:[%s7048_s5 + $0x1b0] sm:$0xff] }
 0x213   :  { %4517 = vmatprep.subr.bf16.mxu1 %v4516_v49 }
 0x216   :  { %4519 = vmatpush3.bf16.msra.mxu1 %v4516_v49  ;;  %v4544_v49 = vpack.c.bf16 %v3228_v47, %v3227_v46  ;;  %v3261_v46 = vld [vmem:[%s7050_s9 + $0x68] sm:$0xff] }
 0x217   :  { %4521 = vmatprep.subr.bf16.mxu1 %v4520_v52 }
 0x21a   :  { %4523 = vmatpush3.bf16.msra.mxu1 %v4520_v52  ;;  %v4548_v52 = vpack.c.bf16 %v3230_v51, %v3229_v50  ;;  %v3262_v50 = vld [vmem:[%s7050_s9 + $0x70] sm:$0xff] }
 0x21b   :  { %4525 = vmatprep.subr.bf16.mxu1 %v4524_v55 }
 0x21e   :  { %4527 = vmatpush3.bf16.msra.mxu1 %v4524_v55  ;;  %v4552_v55 = vpack.c.bf16 %v3232_v54, %v3231_v53  ;;  %v3272_v54 = vld [vmem:[%s7050_s9 + $0x80] sm:$0xff] }
 0x21f   :  { %4529 = vmatprep.subr.bf16.mxu1 %v4528_v58 }
 0x222   :  { %4531 = vmatpush3.bf16.msra.mxu1 %v4528_v58  ;;  %v4556_v58 = vpack.c.bf16 %v3234_v57, %v3233_v56 }
 0x223   :  { %4533 = vmatprep.subr.bf16.mxu1 %v4532_v61 }
 0x236   :  { %v1105_v3 = vpop.f32.mrb[4].mxu1 }
 0x237   :  { %v1106_v4 = vadd.f32 %v1105_v3, %v710_v63  ;;  %v1176_v5 = vpop.f32.mrb[6].mxu0  ;;  %v1107_v6 = vpop.f32.mrb[5].mxu1  ;;  %v3238_v63 = vld [vmem:[%s7048_s5 + $0x208] sm:$0xff] }
 0x238   :  { %v1177_v7 = vadd.f32 %v1176_v5, %v718_v0  ;;  %v1108_v8 = vadd.f32 %v1107_v6, %v714_v1  ;;  %v1178_v9 = vpop.f32.mrb[7].mxu0  ;;  %v4564_v0 = vpack.c.bf16 %v3238_v63, %v3237_v62  ;;  %v3239_v1 = vld [vmem:[%s7048_s5 + $0x210] sm:$0xff]  ;;  %v3241_v5 = vld [vmem:[%s7048_s5 + $0x220] sm:$0xff]  ;;  %v3242_v6 = vld [vmem:[%s7048_s5 + $0x228] sm:$0xff] }
 0x239   :  { %v1331_v10 = vmax.f32 %v1106_v4, 0.0  ;;  %v1179_v15 = vadd.f32 %v1178_v9, %v722_v2  ;;  %v3240_v2 = vld [vmem:[%s7048_s5 + $0x218] sm:$0xff] }
 0x23a   :  { %v1333_v18 = vmax.f32 %v1177_v7, 0.0  ;;  %v1332_v20 = vmax.f32 %v1108_v8, 0.0  ;;  %v4568_v3 = vpack.c.bf16 %v3240_v2, %v3239_v1  ;;  %v4572_v8 = vpack.c.bf16 %v3242_v6, %v3241_v5 }
 0x23b   :  { %1347 = vst [vmem:[#allocation2 + $0x14] sm:$0x3] %v1331_v10  ;;  %v1334_v17 = vmax.f32 %v1179_v15, 0.0  ;;  %v3243_v10 = vld [vmem:[%s7048_s5 + $0x230] sm:$0xff]  ;;  %v3244_v15 = vld [vmem:[%s7048_s5 + $0x238] sm:$0xff] }
 0x23c   :  { %1349 = vst [vmem:[#allocation2 + $0x18] sm:$0x3] %v1333_v18  ;;  %1348 = vst [vmem:[#allocation2 + $0x16] sm:$0x3] %v1332_v20  ;;  %v4576_v18 = vpack.c.bf16 %v3244_v15, %v3243_v10  ;;  %v3245_v20 = vld [vmem:[%s7048_s5 + $0x240] sm:$0xff] }
 0x23d   :  { %1350 = vst [vmem:[#allocation2 + $0x1a] sm:$0x3] %v1334_v17  ;;  %v3246_v17 = vld [vmem:[%s7048_s5 + $0x248] sm:$0xff] }
 0x242   :  { %v1677_v4 = vld [vmem:[#allocation2 + $0xe] sm:$0xff] }
 0x243   :  { %v1377_v19 = vld [vmem:[#allocation2 + $0x12] sm:$0xff] }
 0x244   :  { %v6640_v33 = vld [vmem:[#allocation2 + $0x10] sm:$0xff]  ;;  %3583 = vmatprep.mubr.f32.mxu0 %v1377_v19  ;;  %v4580_v19 = vpack.c.bf16 %v3246_v17, %v3245_v20 }
 0x245   :  { %3621 = vmatprep.mubr.f32.mxu1 %v6640_v33  ;;  %v1568_v43 = vld [vmem:[#allocation2 + $0x14] sm:$0xff] }
 0x276   :  { %v1247_v39 = vpop.f32.mrb[6].mxu1 }
 0x277   :  { %v1248_v24 = vadd.f32 %v1247_v39, %v726_v38  ;;  %v1318_v25 = vpop.f32.mrb[8].mxu0  ;;  %v1249_v26 = vpop.f32.mrb[7].mxu1  ;;  %v3247_v38 = vld [vmem:[%s7048_s5 + $0x250] sm:$0xff] }
 0x278   :  { %v1319_v27 = vadd.f32 %v1318_v25, %v734_v21  ;;  %v1250_v34 = vadd.f32 %v1249_v26, %v730_v22  ;;  %v1320_v28 = vpop.f32.mrb[9].mxu0  ;;  %v3249_v22 = vld [vmem:[%s7048_s5 + $0x260] sm:$0xff]  ;;  %v3252_v25 = vld [vmem:[%s7048_s5 + $0x278] sm:$0xff] }
 0x279   :  { %v1335_v29 = vmax.f32 %v1248_v24, 0.0  ;;  %v1321_v30 = vadd.f32 %v1320_v28, %v738_v23  ;;  %v3250_v23 = vld [vmem:[%s7048_s5 + $0x268] sm:$0xff]  ;;  %v3251_v24 = vld [vmem:[%s7048_s5 + $0x270] sm:$0xff] }
 0x27a   :  { %v1337_v31 = vmax.f32 %v1319_v27, 0.0  ;;  %v1336_v11 = vmax.f32 %v1250_v34, 0.0  ;;  %v4588_v39 = vpack.c.bf16 %v3250_v23, %v3249_v22  ;;  %v4592_v26 = vpack.c.bf16 %v3252_v25, %v3251_v24 }
 0x27b   :  { %1351 = vst [vmem:[#allocation2 + $0x1c] sm:$0x3] %v1335_v29  ;;  %v1338_v32 = vmax.f32 %v1321_v30, 0.0 }
 0x27c   :  { %1353 = vst [vmem:[#allocation2 + $0x20] sm:$0x3] %v1337_v31  ;;  %1352 = vst [vmem:[#allocation2 + $0x1e] sm:$0x3] %v1336_v11  ;;  %v1985_v31 = vld [vmem:[%s7050_s9] sm:$0xff]  ;;  %v1986_v11 = vld [vmem:[%s7050_s9 + $0x8] sm:$0xff] }
 0x27d   :  { %1354 = vst [vmem:[#allocation2 + $0x22] sm:$0x3] %v1338_v32  ;;  %v4612_v32 = vpack.c.bf16 %v1986_v11, %v1985_v31 }
 0x27f   :  { %4613 = vmatprep.subr.bf16.mxu0 %v4612_v32 }
 0x280   :  { %4615 = vmatpush3.bf16.msra.mxu0 %v4612_v32 }
 0x282   :  { %v1678_v7 = vld [vmem:[#allocation2 + $0x16] sm:$0xff] }
 0x283   :  { %v1378_v12 = vld [vmem:[#allocation2 + $0x1a] sm:$0xff] }
 0x284   :  { %v6654_v13 = vld [vmem:[#allocation2 + $0x18] sm:$0xff]  ;;  %3584 = vmatmul.mubr.f32.gmra.mrb[12].mxu0 %v1378_v12  ;;  %v1789_v27 = vld [vmem:[#allocation2 + $0x20] sm:$0xff] }
 0x285   :  { %3622 = vmatmul.mubr.f32.gmra.mrb[10].mxu1 %v6654_v13  ;;  %v1569_v45 = vld [vmem:[#allocation2 + $0x1c] sm:$0xff] }
 0x286   :  { %3656 = vmatprep.mubr.f32.mxu1 %v1566_v35  ;;  %v1679_v9 = vld [vmem:[#allocation2 + $0x1e] sm:$0xff] }
 0x289   :  { %3657 = vmatmul.mubr.f32.vlgmr.msra.gmra.mrb[8].mxu1 %v1567_v37  ;;  %v3259_v37 = vld [vmem:[%s7050_s9 + $0x58] sm:$0xff] }
 0x28a   :  { %4535 = vmatpush3.bf16.msra.mxu1 %v4532_v61  ;;  %3659 = vmatprep.mubr.f32.mxu1 %v1568_v43  ;;  %v4560_v61 = vpack.c.bf16 %v3236_v60, %v3235_v59  ;;  %v1990_v43 = vld [vmem:[%s7050_s9 + $0x28] sm:$0xff] }
 0x28b   :  { %4537 = vmatprep.subr.bf16.mxu1 %v4536_v36 }
 0x28d   :  { %3660 = vmatmul.mubr.f32.gmra.mrb[10].mxu1 %v1569_v45  ;;  %v3260_v45 = vld [vmem:[%s7050_s9 + $0x60] sm:$0xff] }
 0x28e   :  { %4539 = vmatpush3.bf16.msra.mxu1 %v4536_v36  ;;  %3694 = vmatprep.mubr.f32.mxu1 %v1676_v48  ;;  %v3258_v36 = vld [vmem:[%s7050_s9 + $0x50] sm:$0xff]  ;;  %v4604_v47 = vpack.c.bf16 %v3261_v46, %v3260_v45 }
 0x28f   :  { %4541 = vmatprep.subr.bf16.mxu1 %v4540_v44  ;;  %v4600_v40 = vpack.c.bf16 %v3259_v37, %v3258_v36  ;;  %v1991_v48 = vld [vmem:[%s7050_s9 + $0x30] sm:$0xff] }
 0x292   :  { %4543 = vmatpush3.bf16.msra.mxu1 %v4540_v44  ;;  %v4620_v44 = vpack.c.bf16 %v1990_v43, %v1989_v42 }
 0x293   :  { %4545 = vmatprep.subr.bf16.mxu1 %v4544_v49 }
 0x296   :  { %4547 = vmatpush3.bf16.msra.mxu1 %v4544_v49  ;;  %v1992_v49 = vld [vmem:[%s7050_s9 + $0x38] sm:$0xff] }
 0x297   :  { %4549 = vmatprep.subr.bf16.mxu1 %v4548_v52  ;;  %v4624_v51 = vpack.c.bf16 %v1992_v49, %v1991_v48  ;;  %v3255_v49 = vld [vmem:[%s7053_s8] ss:$0 sm:$0xff] }
 0x29a   :  { %4551 = vmatpush3.bf16.msra.mxu1 %v4548_v52  ;;  %v3263_v52 = vld [vmem:[%s7050_s9 + $0x78] sm:$0xff] }
 0x29b   :  { %4553 = vmatprep.subr.bf16.mxu1 %v4552_v55  ;;  %v4608_v53 = vpack.c.bf16 %v3263_v52, %v3262_v50 }
 0x29e   :  { %4555 = vmatpush3.bf16.msra.mxu1 %v4552_v55  ;;  %v3273_v55 = vld [vmem:[%s7050_s9 + $0x88] sm:$0xff] }
 0x29f   :  { %4557 = vmatprep.subr.bf16.mxu1 %v4556_v58  ;;  %v6801_v56 = vpack.c.bf16 %v3273_v55, %v3272_v54 }
 0x2a2   :  { %4559 = vmatpush3.bf16.msra.mxu1 %v4556_v58  ;;  %v3253_v58 = vld [vmem:[%s7051_s6] ss:$0 sm:$0xff] }
 0x2a3   :  { %4561 = vmatprep.subr.bf16.mxu1 %v4560_v61 }
 0x2a6   :  { %4563 = vmatpush3.bf16.msra.mxu1 %v4560_v61 }
 0x2a7   :  { %4565 = vmatprep.subr.bf16.mxu1 %v4564_v0 }
 0x2a9   :  { %3695 = vmatmul.mubr.f32.vlgmr.msra.gmra.mrb[8].mxu1 %v1677_v4 }
 0x2aa   :  { %3697 = vmatprep.mubr.f32.mxu1 %v1678_v7  ;;  %4567 = vmatpush3.bf16.msra.mxu1 %v4564_v0 }
 0x2ab   :  { %4569 = vmatprep.subr.bf16.mxu1 %v4568_v3 }
 0x2ad   :  { %3698 = vmatmul.mubr.f32.gmra.mrb[10].mxu1 %v1679_v9 }
 0x2ae   :  { %4571 = vmatpush3.bf16.msra.mxu1 %v4568_v3  ;;  %3732 = vmatprep.mubr.f32.mxu1 %v6589_v41  ;;  %v3248_v41 = vld [vmem:[%s7048_s5 + $0x258] sm:$0xff] }
 0x2af   :  { %4573 = vmatprep.subr.bf16.mxu1 %v4572_v8  ;;  %v4584_v21 = vpack.c.bf16 %v3248_v41, %v3247_v38 }
 0x2b2   :  { %4575 = vmatpush3.bf16.msra.mxu1 %v4572_v8 }
 0x2b3   :  { %4577 = vmatprep.subr.bf16.mxu1 %v4576_v18 }
 0x2b6   :  { %4579 = vmatpush3.bf16.msra.mxu1 %v4576_v18 }
 0x2b7   :  { %4581 = vmatprep.subr.bf16.mxu1 %v4580_v19 }
 0x2ba   :  { %4583 = vmatpush3.bf16.msra.mxu1 %v4580_v19 }
 0x2bb   :  { %4585 = vmatprep.subr.bf16.mxu1 %v4584_v21 }
 0x2be   :  { %4587 = vmatpush3.bf16.msra.mxu1 %v4584_v21 }
 0x2bf   :  { %4589 = vmatprep.subr.bf16.mxu1 %v4588_v39 }
 0x2c2   :  { %4591 = vmatpush3.bf16.msra.mxu1 %v4588_v39 }
 0x2c3   :  { %4593 = vmatprep.subr.bf16.mxu1 %v4592_v26 }
 0x2c6   :  { %4595 = vmatpush3.bf16.msra.mxu1 %v4592_v26 }
 0x2c9   :  { %3733 = vmatmul.mubr.f32.vlgmr.msra.gmra.mrb[8].mxu1 %v6640_v33  ;;  %v3256_v33 = vld [vmem:[%s7050_s9 + $0x40] sm:$0xff] }
 0x2ca   :  { %3735 = vmatprep.mubr.f32.mxu1 %v6654_v13  ;;  %v4596_v12 = vpack.c.bf16 %v3257_v16, %v3256_v33  ;;  %v1987_v13 = vld [vmem:[%s7050_s9 + $0x10] sm:$0xff] }
 0x2cb   :  { %v4616_v35 = vpack.c.bf16 %v1988_v14, %v1987_v13 }
 0x2cc   :  { %4597 = vmatprep.subr.bf16.mxu1 %v4596_v12 }
 0x2cd   :  { %3736 = vmatmul.mubr.f32.gmra.mrb[10].mxu1 %v1789_v27  ;;  %4617 = vmatprep.subr.bf16.mxu0 %v4616_v35 }
 0x2ce   :  { %4599 = vmatpush3.bf16.msra.mxu1 %v4596_v12  ;;  %4619 = vmatpush3.bf16.msra.mxu0 %v4616_v35 }
 0x2cf   :  { %4601 = vmatprep.subr.bf16.mxu1 %v4600_v40  ;;  %4621 = vmatprep.subr.bf16.mxu0 %v4620_v44 }
 0x2d2   :  { %4603 = vmatpush3.bf16.msra.mxu1 %v4600_v40  ;;  %4623 = vmatpush3.bf16.msra.mxu0 %v4620_v44  ;;  %v3254_v44 = vld [vmem:[%s7052_s7] ss:$0 sm:$0xff] }
 0x2d3   :  { %4605 = vmatprep.subr.bf16.mxu1 %v4604_v47  ;;  %4625 = vmatprep.subr.bf16.mxu0 %v4624_v51 }
 0x2d6   :  { %4607 = vmatpush3.bf16.msra.mxu1 %v4604_v47  ;;  %4627 = vmatpush3.bf16.msra.mxu0 %v4624_v51 }
 0x2d7   :  { %v3582_v34 = vpop.f32.mrb[10].mxu0  ;;  %4609 = vmatprep.subr.bf16.mxu1 %v4608_v53  ;;  %4629 = vmatprep.subr.bf16.mxu0 %v6801_v56 }
 0x2d8   :  { %v1462_v28 = vpop.f32.mrb[11].mxu0 }
 0x2da   :  { %4611 = vmatpush3.bf16.msra.mxu1 %v4608_v53 }
 0x357   :  { %v3585_v29 = vpop.f32.mrb[12].mxu0 }
 0x358   :  { %v1472_v30 = vpop.f32.mrb[13].mxu0 }
 0x39c   :  { %v3734_v57 = vpop.f32.mrb[8].mxu1 }
 0x39d   :  { %v4716_v59 = vadd.f32 %v3734_v57, %v3582_v34  ;;  %v1873_v60 = vpop.f32.mrb[9].mxu1 }
 0x39e   :  { %v4717_v61 = vadd.f32 %v1873_v60, %v1462_v28 }
 0x39f   :  { %v1904_v62 = vadd.f32 %v4716_v59, %v3253_v58 }
 0x3a0   :  { %v1903_v63 = vadd.f32 %v4717_v61, %v3253_v58  ;;  %v3737_v0 = vpop.f32.mrb[10].mxu1 }
 0x3a1   :  { %v1909_v1 = vsel %vm1907_vm6, %v1904_v62, 0.0  ;;  %v4718_v2 = vadd.f32 %v3737_v0, %v3585_v29  ;;  %v1883_v3 = vpop.f32.mrb[11].mxu1  ;;  %v3275_v0 = vld [vmem:[%s7050_s9 + $0x98] sm:$0xff] }
 0x3a2   :  { %v1908_v4 = vsel %vm1907_vm6, %v1903_v63, 0.0  ;;  %v4719_v5 = vadd.f32 %v1883_v3, %v1472_v30 }
 0x3a3   :  { %v1910_v6 = vadd.f32 %v1909_v1, %v1908_v4  ;;  %v1906_v7 = vadd.f32 %v4718_v2, %v3253_v58 }
 0x3a4   :  { %v1905_v8 = vadd.f32 %v4719_v5, %v3253_v58 }
 0x3a5   :  { %v1913_v15 = vsel %vm1907_vm6, %v1906_v7, 0.0 }
 0x3a6   :  { %v1911_v9 = vsel %vm1907_vm6, %v1905_v8, 0.0 }
 0x3a7   :  { %v1912_v10 = vadd.f32 %v1911_v9, %v1910_v6  ;;  %v3276_v6 = vld [vmem:[%s7050_s9 + $0xa0] sm:$0xff] }
 0x3a9   :  { %v1914_v18 = vadd.f32 %v1913_v15, %v1912_v10  ;;  %v3278_v15 = vld [vmem:[%s7050_s9 + $0xb0] sm:$0xff] }
 0x3ab   :  { %v1915_v20 = vrot.slane %v1914_v18, 4 }
 0x3ad   :  { %v1916_v17 = vadd.f32 %v1915_v20, %v1914_v18 }
 0x3af   :  { %v1917_v19 = vrot.slane %v1916_v17, 2 }
 0x3b1   :  { %v1918_v38 = vadd.f32 %v1917_v19, %v1916_v17 }
 0x3b3   :  { %v1919_v41 = vrot.slane %v1918_v38, 1 }
 0x3b5   :  { %v1920_v21 = vadd.f32 %v1919_v41, %v1918_v38  ;;  %v3284_v38 = vld [vmem:[%s7050_s9 + $0xc0] sm:$0xff]  ;;  %v3285_v41 = vld [vmem:[%s7050_s9 + $0xc8] sm:$0xff] }
 0x3b7   :  { %v1922_v22 = vmul.f32 0.03125, %v1920_v21  ;;  %v4644_v21 = vpack.c.bf16 %v3285_v41, %v3284_v38 }
 0x3b9   :  { %v1923_v23 = vsub.f32 %v1903_v63, %v1922_v22  ;;  %v1924_v39 = vsub.f32 %v1904_v62, %v1922_v22  ;;  %v1925_v24 = vsub.f32 %v1905_v8, %v1922_v22  ;;  %v1926_v25 = vsub.f32 %v1906_v7, %v1922_v22  ;;  %v3274_v63 = vld [vmem:[%s7050_s9 + $0x90] sm:$0xff]  ;;  %v3277_v7 = vld [vmem:[%s7050_s9 + $0xa8] sm:$0xff] }
 0x3ba   :  { %v4632_v4 = vpack.c.bf16 %v3275_v0, %v3274_v63  ;;  %v4636_v10 = vpack.c.bf16 %v3277_v7, %v3276_v6  ;;  %v3286_v22 = vld [vmem:[%s7050_s9 + $0xd0] sm:$0xff]  ;;  %v3308_v63 = vld [vmem:[%s7055_s10] ss:$0 sm:$0xff] }
 0x3bb   :  { %v1927_v26 = vmul.f32 %v1923_v23, %v1923_v23  ;;  %v1928_v27 = vmul.f32 %v1924_v39, %v1924_v39  ;;  %v1929_v34 = vmul.f32 %v1925_v24, %v1925_v24  ;;  %v1930_v28 = vmul.f32 %v1926_v25, %v1926_v25 }
 0x3bd   :  { %v1931_v29 = vsel %vm1907_vm6, %v1927_v26, 0.0  ;;  %v1932_v30 = vsel %vm1907_vm6, %v1928_v27, 0.0  ;;  %v1934_v11 = vsel %vm1907_vm6, %v1929_v34, 0.0  ;;  %v1936_v33 = vsel %vm1907_vm6, %v1930_v28, 0.0  ;;  %v3289_v26 = vld [vmem:[%s7050_s9 + $0xe8] sm:$0xff] }
 0x3be   :  { %v1933_v31 = vadd.f32 %v1932_v30, %v1931_v29  ;;  %v3290_v29 = vld [vmem:[%s7050_s9 + $0xf0] sm:$0xff]  ;;  %v3291_v30 = vld [vmem:[%s7050_s9 + $0xf8] sm:$0xff] }
 0x3c0   :  { %v1935_v32 = vadd.f32 %v1934_v11, %v1933_v31  ;;  %v4656_v11 = vpack.c.bf16 %v3291_v30, %v3290_v29 }
 0x3c2   :  { %v1937_v16 = vadd.f32 %v1936_v33, %v1935_v32  ;;  %v3296_v32 = vld [vmem:[%s7050_s9 + $0x100] sm:$0xff]  ;;  %v3297_v33 = vld [vmem:[%s7050_s9 + $0x108] sm:$0xff] }
 0x3c4   :  { %v1938_v12 = vrot.slane %v1937_v16, 4 }
 0x3c6   :  { %v1939_v13 = vadd.f32 %v1938_v12, %v1937_v16  ;;  %v4660_v16 = vpack.c.bf16 %v3297_v33, %v3296_v32  ;;  %v3298_v12 = vld [vmem:[%s7050_s9 + $0x110] sm:$0xff] }
 0x3c8   :  { %v1940_v14 = vrot.slane %v1939_v13, 2 }
 0x3ca   :  { %v1941_v35 = vadd.f32 %v1940_v14, %v1939_v13  ;;  %v3299_v13 = vld [vmem:[%s7050_s9 + $0x118] sm:$0xff] }
 0x3cb   :  { %v4664_v14 = vpack.c.bf16 %v3299_v13, %v3298_v12 }
 0x3cc   :  { %v1942_v36 = vrot.slane %v1941_v35, 1 }
 0x3ce   :  { %v1943_v37 = vadd.f32 %v1942_v36, %v1941_v35  ;;  %v3300_v36 = vld [vmem:[%s7050_s9 + $0x120] sm:$0xff] }
 0x3d0   :  { %v1944_v40 = vmul.f32 0.03125, %v1943_v37  ;;  %v3301_v37 = vld [vmem:[%s7050_s9 + $0x128] sm:$0xff] }
 0x3d2   :  { %v1945_v42 = vadd.f32 1e-05, %v1944_v40 }
 0x3d4   :  { %4766 = vrsqrt.f32 %v1945_v42  ;;  %v4668_v42 = vpack.c.bf16 %v3301_v37, %v3300_v36 }
 0x3de   :  { %v4767_v43 = vpop.eup %4766 }
 0x3df   :  { %v1947_v45 = vmul.f32 %v4767_v43, %v1923_v23  ;;  %v1948_v46 = vmul.f32 %v4767_v43, %v1924_v39  ;;  %v1949_v47 = vmul.f32 %v4767_v43, %v1925_v24  ;;  %v1950_v48 = vmul.f32 %v4767_v43, %v1926_v25  ;;  %v3287_v23 = vld [vmem:[%s7050_s9 + $0xd8] sm:$0xff]  ;;  %v3288_v25 = vld [vmem:[%s7050_s9 + $0xe0] sm:$0xff] }
 0x3e0   :  { %v4648_v39 = vpack.c.bf16 %v3287_v23, %v3286_v22  ;;  %v4652_v34 = vpack.c.bf16 %v3289_v26, %v3288_v25 }
 0x3e1   :  { %v1958_v50 = vmul.f32 %v3254_v44, %v1947_v45  ;;  %v1959_v51 = vmul.f32 %v3254_v44, %v1948_v46  ;;  %v1960_v52 = vmul.f32 %v3254_v44, %v1949_v47  ;;  %v1961_v53 = vmul.f32 %v3254_v44, %v1950_v48  ;;  %v3302_v44 = vld [vmem:[%s7050_s9 + $0x130] sm:$0xff]  ;;  %v3303_v45 = vld [vmem:[%s7050_s9 + $0x138] sm:$0xff]  ;;  %v3311_v48 = vld [vmem:[%s7054_s13 + $0x20] sm:$0xff] }
 0x3e2   :  { %v4672_v46 = vpack.c.bf16 %v3303_v45, %v3302_v44 }
 0x3e3   :  { %v1969_v54 = vadd.f32 %v3255_v49, %v1958_v50  ;;  %v1970_v55 = vadd.f32 %v3255_v49, %v1959_v51  ;;  %v1971_v57 = vadd.f32 %v3255_v49, %v1960_v52  ;;  %v1972_v58 = vadd.f32 %v3255_v49, %v1961_v53  ;;  %v3312_v49 = vld [vmem:[%s7054_s13 + $0x28] sm:$0xff]  ;;  %v3313_v50 = vld [vmem:[%s7054_s13 + $0x30] sm:$0xff]  ;;  %v3314_v52 = vld [vmem:[%s7054_s13 + $0x38] sm:$0xff] }
 0x3e4   :  { %v4676_v51 = vpack.c.bf16 %v3312_v49, %v3311_v48  ;;  %v4680_v53 = vpack.c.bf16 %v3314_v52, %v3313_v50  ;;  %v3309_v48 = vld [vmem:[%s7056_s11] ss:$0 sm:$0xff] }
 0x3e5   :  { %v1973_v59 = vmax.f32 %v1969_v54, 0.0  ;;  %v1974_v60 = vmax.f32 %v1970_v55, 0.0  ;;  %v1975_v61 = vmax.f32 %v1971_v57, 0.0  ;;  %v1976_v62 = vmax.f32 %v1972_v58, 0.0  ;;  %v2630_v57 = vld [vmem:[%s7054_s13] sm:$0xff]  ;;  %v2631_v58 = vld [vmem:[%s7054_s13 + $0x8] sm:$0xff] }
 0x3e7   :  { %1977 = vst.msk [vmem:[#allocation3 + $0x4] sm:$0xff] %vm1907_vm6, %v1973_v59  ;;  %1978 = vst.msk [vmem:[#allocation3 + $0xc] sm:$0xff] %vm1907_vm6, %v1974_v60  ;;  %v6942_v60 = vpack.c.bf16 %v2631_v58, %v2630_v57 }
 0x3e8   :  { %1979 = vst.msk [vmem:[#allocation3 + $0x14] sm:$0xff] %vm1907_vm6, %v1975_v61  ;;  %1980 = vst.msk [vmem:[#allocation3 + $0x1c] sm:$0xff] %vm1907_vm6, %v1976_v62 }
 0x3ee   :  { %v1993_v1 = vld [vmem:[#allocation3 + $0x2] sm:$0xff]  ;;  %v1994_v3 = vld [vmem:[#allocation3 + $0xa] sm:$0xff] }
 0x3ef   :  { %v1981_v2 = vld [vmem:[#allocation3] sm:$0xff]  ;;  %3754 = vmatprep.mubr.msk.f32.mxu1 %vm1907_vm6, %v1993_v1  ;;  %v6833_v5 = vld [vmem:[#allocation3 + $0x8] sm:$0xff]  ;;  %v1995_v8 = vld [vmem:[#allocation3 + $0x12] sm:$0xff] }
 0x3f0   :  { %3776 = vmatprep.mubr.msk.f32.mxu0 %vm1907_vm6, %v1981_v2  ;;  %3755 = vmatmul.mubr.msk.f32.vlgmr.msra.gmra.mrb[12].mxu1 %vm1907_vm6, %v1994_v3  ;;  %v6846_v9 = vld [vmem:[#allocation3 + $0x10] sm:$0xff]  ;;  %v1996_v18 = vld [vmem:[#allocation3 + $0x1a] sm:$0xff]  ;;  %v2200_v17 = vld [vmem:[#allocation3 + $0x4] sm:$0xff] }
 0x3f1   :  { %3777 = vmatmul.mubr.msk.f32.vlgmr.msra.gmra.mrb[14].mxu0 %vm1907_vm6, %v6833_v5  ;;  %3757 = vmatprep.mubr.msk.f32.mxu1 %vm1907_vm6, %v1995_v8  ;;  %v6853_v20 = vld [vmem:[#allocation3 + $0x18] sm:$0xff]  ;;  %v2201_v24 = vld [vmem:[#allocation3 + $0xc] sm:$0xff]  ;;  %v2431_v47 = vld [vmem:[#allocation3 + $0x20] sm:$0xff] }
 0x3f2   :  { %4631 = vmatpush3.bf16.msra.mxu0 %v6801_v56  ;;  %3779 = vmatprep.mubr.msk.f32.mxu0 %vm1907_vm6, %v6846_v9  ;;  %v3279_v56 = vld [vmem:[%s7050_s9 + $0xb8] sm:$0xff]  ;;  %v2203_v28 = vld [vmem:[#allocation3 + $0x1c] sm:$0xff]  ;;  %v2314_v31 = vld [vmem:[#allocation3 + $0x6] sm:$0xff] }
 0x3f3   :  { %4633 = vmatprep.subr.bf16.mxu0 %v4632_v4  ;;  %v4640_v19 = vpack.c.bf16 %v3279_v56, %v3278_v15  ;;  %v2202_v27 = vld [vmem:[#allocation3 + $0x14] sm:$0xff]  ;;  %v2317_v43 = vld [vmem:[#allocation3 + $0x1e] sm:$0xff] }
 0x3f4   :  { %3758 = vmatmul.mubr.msk.f32.gmra.mrb[14].mxu1 %vm1907_vm6, %v1996_v18  ;;  %v2315_v35 = vld [vmem:[#allocation3 + $0xe] sm:$0xff]  ;;  %v2316_v40 = vld [vmem:[#allocation3 + $0x16] sm:$0xff] }
 0x3f5   :  { %3780 = vmatmul.mubr.msk.f32.gmra.mrb[16].mxu0 %vm1907_vm6, %v6853_v20 }
 0x3f6   :  { %4635 = vmatpush3.bf16.msra.mxu0 %v4632_v4  ;;  %3798 = vmatprep.mubr.msk.f32.mxu0 %vm1907_vm6, %v2200_v17 }
 0x3f7   :  { %4637 = vmatprep.subr.bf16.mxu0 %v4636_v10 }
 0x3fa   :  { %4639 = vmatpush3.bf16.msra.mxu0 %v4636_v10 }
 0x3fb   :  { %4641 = vmatprep.subr.bf16.mxu0 %v4640_v19 }
 0x3fe   :  { %4643 = vmatpush3.bf16.msra.mxu0 %v4640_v19 }
 0x3ff   :  { %4645 = vmatprep.subr.bf16.mxu0 %v4644_v21 }
 0x401   :  { %3799 = vmatmul.mubr.msk.f32.vlgmr.msra.gmra.mrb[14].mxu0 %vm1907_vm6, %v2201_v24 }
 0x402   :  { %3801 = vmatprep.mubr.msk.f32.mxu0 %vm1907_vm6, %v2202_v27  ;;  %4647 = vmatpush3.bf16.msra.mxu0 %v4644_v21 }
 0x403   :  { %4649 = vmatprep.subr.bf16.mxu0 %v4648_v39 }
 0x405   :  { %3802 = vmatmul.mubr.msk.f32.gmra.mrb[16].mxu0 %vm1907_vm6, %v2203_v28 }
 0x406   :  { %4651 = vmatpush3.bf16.msra.mxu0 %v4648_v39  ;;  %3820 = vmatprep.mubr.msk.f32.mxu0 %vm1907_vm6, %v2314_v31 }
 0x407   :  { %4653 = vmatprep.subr.bf16.mxu0 %v4652_v34 }
 0x40a   :  { %4655 = vmatpush3.bf16.msra.mxu0 %v4652_v34 }
 0x40b   :  { %4657 = vmatprep.subr.bf16.mxu0 %v4656_v11 }
 0x40e   :  { %4659 = vmatpush3.bf16.msra.mxu0 %v4656_v11 }
 0x40f   :  { %4661 = vmatprep.subr.bf16.mxu0 %v4660_v16 }
 0x411   :  { %3821 = vmatmul.mubr.msk.f32.vlgmr.msra.gmra.mrb[14].mxu0 %vm1907_vm6, %v2315_v35 }
 0x412   :  { %3823 = vmatprep.mubr.msk.f32.mxu0 %vm1907_vm6, %v2316_v40  ;;  %4663 = vmatpush3.bf16.msra.mxu0 %v4660_v16 }
 0x413   :  { %4665 = vmatprep.subr.bf16.mxu0 %v4664_v14 }
 0x415   :  { %3824 = vmatmul.mubr.msk.f32.gmra.mrb[16].mxu0 %vm1907_vm6, %v2317_v43 }
 0x416   :  { %4667 = vmatpush3.bf16.msra.mxu0 %v4664_v14  ;;  %3842 = vmatprep.mubr.msk.f32.mxu0 %vm1907_vm6, %v6833_v5 }
 0x417   :  { %4669 = vmatprep.subr.bf16.mxu0 %v4668_v42 }
 0x41a   :  { %4671 = vmatpush3.bf16.msra.mxu0 %v4668_v42 }
 0x41b   :  { %4673 = vmatprep.subr.bf16.mxu0 %v4672_v46 }
 0x41e   :  { %4675 = vmatpush3.bf16.msra.mxu0 %v4672_v46 }
 0x41f   :  { %4677 = vmatprep.subr.bf16.mxu0 %v4676_v51 }
 0x421   :  { %3843 = vmatmul.mubr.msk.f32.vlgmr.msra.gmra.mrb[14].mxu0 %vm1907_vm6, %v6846_v9 }
 0x422   :  { %3845 = vmatprep.mubr.msk.f32.mxu0 %vm1907_vm6, %v6853_v20  ;;  %4679 = vmatpush3.bf16.msra.mxu0 %v4676_v51 }
 0x423   :  { %4681 = vmatprep.subr.bf16.mxu0 %v4680_v53 }
 0x425   :  { %3846 = vmatmul.mubr.msk.f32.gmra.mrb[16].mxu0 %vm1907_vm6, %v2431_v47 }
 0x426   :  { %4683 = vmatpush3.bf16.msra.mxu0 %v4680_v53  ;;  %v3310_v53 = vld [vmem:[%s7057_s12] ss:$0 sm:$0xff] }
 0x427   :  { %4685 = vmatprep.subr.bf16.mxu0 %v6942_v60 }
 0x4c3   :  { %v3756_v54 = vpop.f32.mrb[12].mxu1 }
 0x4c4   :  { %v2084_v55 = vpop.f32.mrb[13].mxu1 }
 0x4c7   :  { %v3759_v59 = vpop.f32.mrb[14].mxu1 }
 0x4c8   :  { %v2094_v61 = vpop.f32.mrb[15].mxu1 }
 0x4f4   :  { %v3844_v62 = vpop.f32.mrb[14].mxu0 }
 0x4f5   :  { %v4720_v0 = vadd.f32 %v3844_v62, %v3756_v54  ;;  %v2519_v1 = vpop.f32.mrb[15].mxu0 }
 0x4f6   :  { %v4721_v2 = vadd.f32 %v2519_v1, %v2084_v55 }
 0x4f7   :  { %v2550_v3 = vadd.f32 %v4720_v0, %v3308_v63 }
 0x4f8   :  { %v2549_v4 = vadd.f32 %v4721_v2, %v3308_v63  ;;  %v3847_v5 = vpop.f32.mrb[16].mxu0 }
 0x4f9   :  { %v2555_v6 = vsel %vm2553_vm7, %v2550_v3, 0.0  ;;  %v4722_v7 = vadd.f32 %v3847_v5, %v3759_v59  ;;  %v2529_v8 = vpop.f32.mrb[17].mxu0  ;;  %v2633_v5 = vld [vmem:[%s7054_s13 + $0x18] sm:$0xff] }
 0x4fa   :  { %v2554_v9 = vsel %vm2553_vm7, %v2549_v4, 0.0  ;;  %v4723_v10 = vadd.f32 %v2529_v8, %v2094_v61 }
 0x4fb   :  { %v2556_v15 = vadd.f32 %v2555_v6, %v2554_v9  ;;  %v2552_v18 = vadd.f32 %v4722_v7, %v3308_v63  ;;  %v3323_v9 = vld [vmem:[%s7054_s13 + $0x40] sm:$0xff] }
 0x4fc   :  { %v2551_v20 = vadd.f32 %v4723_v10, %v3308_v63  ;;  %v3324_v10 = vld [vmem:[%s7054_s13 + $0x48] sm:$0xff] }
 0x4fd   :  { %v2559_v19 = vsel %vm2553_vm7, %v2552_v18, 0.0 }
 0x4fe   :  { %v2557_v56 = vsel %vm2553_vm7, %v2551_v20, 0.0 }
 0x4ff   :  { %v2558_v17 = vadd.f32 %v2557_v56, %v2556_v15  ;;  %v3325_v56 = vld [vmem:[%s7054_s13 + $0x50] sm:$0xff] }
 0x501   :  { %v2560_v38 = vadd.f32 %v2559_v19, %v2558_v17  ;;  %v3326_v17 = vld [vmem:[%s7054_s13 + $0x58] sm:$0xff] }
 0x503   :  { %v2561_v41 = vrot.slane %v2560_v38, 4 }
 0x505   :  { %v2562_v21 = vadd.f32 %v2561_v41, %v2560_v38  ;;  %v3331_v41 = vld [vmem:[%s7054_s13 + $0x60] sm:$0xff] }
 0x507   :  { %v2563_v22 = vrot.slane %v2562_v21, 2 }
 0x509   :  { %v2564_v23 = vadd.f32 %v2563_v22, %v2562_v21  ;;  %v3332_v21 = vld [vmem:[%s7054_s13 + $0x68] sm:$0xff] }
 0x50b   :  { %v2565_v39 = vrot.slane %v2564_v23, 1 }
 0x50d   :  { %v2566_v24 = vadd.f32 %v2565_v39, %v2564_v23  ;;  %v4700_v23 = vpack.c.bf16 %v3332_v21, %v3331_v41 }
 0x50f   :  { %v2567_v25 = vmul.f32 0.03125, %v2566_v24  ;;  %v3333_v24 = vld [vmem:[%s7054_s13 + $0x70] sm:$0xff] }
 0x511   :  { %v2568_v26 = vsub.f32 %v2549_v4, %v2567_v25  ;;  %v2569_v27 = vsub.f32 %v2550_v3, %v2567_v25  ;;  %v2570_v34 = vsub.f32 %v2551_v20, %v2567_v25  ;;  %v2571_v28 = vsub.f32 %v2552_v18, %v2567_v25  ;;  %v2632_v4 = vld [vmem:[%s7054_s13 + $0x10] sm:$0xff]  ;;  %v3334_v25 = vld [vmem:[%s7054_s13 + $0x78] sm:$0xff] }
 0x512   :  { %v4688_v8 = vpack.c.bf16 %v2633_v5, %v2632_v4  ;;  %v4692_v18 = vpack.c.bf16 %v3324_v10, %v3323_v9 }
 0x513   :  { %v2572_v29 = vmul.f32 %v2568_v26, %v2568_v26  ;;  %v2573_v30 = vmul.f32 %v2569_v27, %v2569_v27  ;;  %v2574_v31 = vmul.f32 %v2570_v34, %v2570_v34  ;;  %v2575_v11 = vmul.f32 %v2571_v28, %v2571_v28 }
 0x515   :  { %v2576_v32 = vsel %vm2553_vm7, %v2572_v29, 0.0  ;;  %v2577_v33 = vsel %vm2553_vm7, %v2573_v30, 0.0  ;;  %v2579_v12 = vsel %vm2553_vm7, %v2574_v31, 0.0  ;;  %v2581_v14 = vsel %vm2553_vm7, %v2575_v11, 0.0  ;;  %v3340_v29 = vld [vmem:[%s7054_s13 + $0x88] sm:$0xff] }
 0x516   :  { %v2578_v16 = vadd.f32 %v2577_v33, %v2576_v32  ;;  %v3341_v32 = vld [vmem:[%s7054_s13 + $0x90] sm:$0xff]  ;;  %v3342_v33 = vld [vmem:[%s7054_s13 + $0x98] sm:$0xff] }
 0x518   :  { %v2580_v13 = vadd.f32 %v2579_v12, %v2578_v16  ;;  %v4712_v12 = vpack.c.bf16 %v3342_v33, %v3341_v32 }
 0x51a   :  { %v2582_v35 = vadd.f32 %v2581_v14, %v2580_v13 }
 0x51c   :  { %v2583_v36 = vrot.slane %v2582_v35, 4 }
 0x51e   :  { %v2584_v37 = vadd.f32 %v2583_v36, %v2582_v35 }
 0x520   :  { %v2585_v40 = vrot.slane %v2584_v37, 2 }
 0x522   :  { %v2586_v42 = vadd.f32 %v2585_v40, %v2584_v37  ;;  %v3347_v37 = vld [vmem:[%s7058_s14] ss:$0 sm:$0xff] }
 0x524   :  { %v2587_v43 = vrot.slane %v2586_v42, 1 }
 0x526   :  { %v2588_v44 = vadd.f32 %v2587_v43, %v2586_v42 }
 0x528   :  { %v2589_v45 = vmul.f32 0.03125, %v2588_v44 }
 0x52a   :  { %v2590_v46 = vadd.f32 1e-05, %v2589_v45 }
 0x52c   :  { %4768 = vrsqrt.f32 %v2590_v46 }
 0x536   :  { %v4769_v47 = vpop.eup %4768 }
 0x537   :  { %v2592_v49 = vmul.f32 %v4769_v47, %v2568_v26  ;;  %v2593_v50 = vmul.f32 %v4769_v47, %v2569_v27  ;;  %v2594_v51 = vmul.f32 %v4769_v47, %v2570_v34  ;;  %v2595_v52 = vmul.f32 %v4769_v47, %v2571_v28  ;;  %v3339_v28 = vld [vmem:[%s7054_s13 + $0x80] sm:$0xff] }
 0x538   :  { %v4704_v27 = vpack.c.bf16 %v3334_v25, %v3333_v24  ;;  %v4708_v31 = vpack.c.bf16 %v3340_v29, %v3339_v28 }
 0x539   :  { %v2603_v54 = vmul.f32 %v3309_v48, %v2592_v49  ;;  %v2604_v55 = vmul.f32 %v3309_v48, %v2593_v50  ;;  %v2605_v57 = vmul.f32 %v3309_v48, %v2594_v51  ;;  %v2606_v58 = vmul.f32 %v3309_v48, %v2595_v52 }
 0x53b   :  { %v2614_v59 = vadd.f32 %v3310_v53, %v2603_v54  ;;  %v2615_v61 = vadd.f32 %v3310_v53, %v2604_v55  ;;  %v2616_v62 = vadd.f32 %v3310_v53, %v2605_v57  ;;  %v2617_v63 = vadd.f32 %v3310_v53, %v2606_v58 }
 0x53d   :  { %v2618_v0 = vmax.f32 %v2614_v59, 0.0  ;;  %v2619_v1 = vmax.f32 %v2615_v61, 0.0  ;;  %v2620_v2 = vmax.f32 %v2616_v62, 0.0  ;;  %v2621_v3 = vmax.f32 %v2617_v63, 0.0 }
 0x53f   :  { %2622 = vst.msk [vmem:[#allocation4 + $0x4] sm:$0xff] %vm2553_vm7, %v2618_v0  ;;  %2623 = vst.msk [vmem:[#allocation4 + $0xc] sm:$0xff] %vm2553_vm7, %v2619_v1 }
 0x540   :  { %2624 = vst.msk [vmem:[#allocation4 + $0x14] sm:$0xff] %vm2553_vm7, %v2620_v2  ;;  %2625 = vst.msk [vmem:[#allocation4 + $0x1c] sm:$0xff] %vm2553_vm7, %v2621_v3 }
 0x546   :  { %v2634_v6 = vld [vmem:[#allocation4 + $0x2] sm:$0xff]  ;;  %v2635_v7 = vld [vmem:[#allocation4 + $0xa] sm:$0xff] }
 0x547   :  { %3856 = vmatprep.mubr.msk.f32.mxu0 %vm2553_vm7, %v2634_v6  ;;  %v2636_v15 = vld [vmem:[#allocation4 + $0x12] sm:$0xff]  ;;  %v2637_v20 = vld [vmem:[#allocation4 + $0x1a] sm:$0xff]  ;;  %v2627_v38 = vld [vmem:[#allocation4 + $0x8] sm:$0xff] }
 0x548   :  { %3857 = vmatmul.mubr.msk.f32.vlgmr.msra.gmra.mrb[18].mxu0 %vm2553_vm7, %v2635_v7  ;;  %v2626_v19 = vld [vmem:[#allocation4] sm:$0xff]  ;;  %v2628_v22 = vld [vmem:[#allocation4 + $0x10] sm:$0xff]  ;;  %v2629_v39 = vld [vmem:[#allocation4 + $0x18] sm:$0xff] }
 0x549   :  { %4687 = vmatpush3.bf16.msra.mxu0 %v6942_v60  ;;  %3859 = vmatprep.mubr.msk.f32.mxu0 %vm2553_vm7, %v2636_v15  ;;  %v4696_v60 = vpack.c.bf16 %v3326_v17, %v3325_v56  ;;  %v2837_v26 = vld [vmem:[#allocation4 + $0x4] sm:$0xff]  ;;  %v2838_v34 = vld [vmem:[#allocation4 + $0xc] sm:$0xff]  ;;  %v2839_v30 = vld [vmem:[#allocation4 + $0x14] sm:$0xff] }
 0x54a   :  { %4689 = vmatprep.subr.bf16.mxu0 %v4688_v8  ;;  %v2840_v11 = vld [vmem:[#allocation4 + $0x1c] sm:$0xff]  ;;  %v2947_v16 = vld [vmem:[#allocation4 + $0x6] sm:$0xff]  ;;  %v2948_v13 = vld [vmem:[#allocation4 + $0xe] sm:$0xff] }
 0x54b   :  { %v2949_v14 = vld [vmem:[#allocation4 + $0x16] sm:$0xff]  ;;  %v2950_v35 = vld [vmem:[#allocation4 + $0x1e] sm:$0xff] }
 0x54c   :  { %3860 = vmatmul.mubr.msk.f32.gmra.mrb[20].mxu0 %vm2553_vm7, %v2637_v20  ;;  %v3060_v36 = vld [vmem:[#allocation4 + $0x20] sm:$0xff] }
 0x54d   :  { %4691 = vmatpush3.bf16.msra.mxu0 %v4688_v8  ;;  %3870 = vmatprep.mubr.msk.f32.mxu0 %vm2553_vm7, %v2626_v19 }
 0x54e   :  { %4693 = vmatprep.subr.bf16.mxu0 %v4692_v18 }
 0x550   :  { %3871 = vmatmul.mubr.msk.f32.vlgmr.msra.gmra.mrb[18].mxu0 %vm2553_vm7, %v2627_v38 }
 0x551   :  { %4695 = vmatpush3.bf16.msra.mxu0 %v4692_v18  ;;  %3873 = vmatprep.mubr.msk.f32.mxu0 %vm2553_vm7, %v2628_v22 }
 0x552   :  { %4697 = vmatprep.subr.bf16.mxu0 %v4696_v60 }
 0x554   :  { %3874 = vmatmul.mubr.msk.f32.gmra.mrb[20].mxu0 %vm2553_vm7, %v2629_v39 }
 0x555   :  { %4699 = vmatpush3.bf16.msra.mxu0 %v4696_v60  ;;  %3884 = vmatprep.mubr.msk.f32.mxu0 %vm2553_vm7, %v2837_v26 }
 0x556   :  { %4701 = vmatprep.subr.bf16.mxu0 %v4700_v23 }
 0x558   :  { %3885 = vmatmul.mubr.msk.f32.vlgmr.msra.gmra.mrb[18].mxu0 %vm2553_vm7, %v2838_v34 }
 0x559   :  { %4703 = vmatpush3.bf16.msra.mxu0 %v4700_v23  ;;  %3887 = vmatprep.mubr.msk.f32.mxu0 %vm2553_vm7, %v2839_v30 }
 0x55a   :  { %4705 = vmatprep.subr.bf16.mxu0 %v4704_v27 }
 0x55c   :  { %3888 = vmatmul.mubr.msk.f32.gmra.mrb[20].mxu0 %vm2553_vm7, %v2840_v11 }
 0x55d   :  { %4707 = vmatpush3.bf16.msra.mxu0 %v4704_v27  ;;  %3898 = vmatprep.mubr.msk.f32.mxu0 %vm2553_vm7, %v2947_v16 }
 0x55e   :  { %4709 = vmatprep.subr.bf16.mxu0 %v4708_v31 }
 0x560   :  { %3899 = vmatmul.mubr.msk.f32.vlgmr.msra.gmra.mrb[18].mxu0 %vm2553_vm7, %v2948_v13 }
 0x561   :  { %4711 = vmatpush3.bf16.msra.mxu0 %v4708_v31  ;;  %3901 = vmatprep.mubr.msk.f32.mxu0 %vm2553_vm7, %v2949_v14 }
 0x562   :  { %4713 = vmatprep.subr.bf16.mxu0 %v4712_v12 }
 0x564   :  { %3902 = vmatmul.mubr.msk.f32.gmra.mrb[20].mxu0 %vm2553_vm7, %v2950_v35 }
 0x565   :  { %4715 = vmatpush3.bf16.msra.mxu0 %v4712_v12  ;;  %3912 = vmatprep.mubr.msk.f32.mxu0 %vm2553_vm7, %v2627_v38 }
 0x568   :  { %3913 = vmatmul.mubr.msk.f32.vlgmr.msra.gmra.mrb[18].mxu0 %vm2553_vm7, %v2628_v22 }
 0x569   :  { %3915 = vmatprep.mubr.msk.f32.mxu0 %vm2553_vm7, %v2629_v39 }
 0x56c   :  { %3916 = vmatmul.mubr.msk.f32.gmra.mrb[20].mxu0 %vm2553_vm7, %v3060_v36 }
 0x63b   :  { %v3914_v40 = vpop.f32.mrb[18].mxu0 }
 0x63c   :  { %v3175_v42 = vadd.f32 %v3914_v40, %v3347_v37  ;;  %v3144_v43 = vpop.f32.mrb[19].mxu0 }
 0x63d   :  { %v3174_v44 = vadd.f32 %v3347_v37, %v3144_v43 }
 0x63e   :  { %3179 = vst [vmem:[%s7059_s15 + $0x8] sm:$0xff] %v3175_v42 }
 0x63f   :  { %3178 = vst [vmem:[%s7059_s15] sm:$0xff] %v3174_v44  ;;  %v3917_v45 = vpop.f32.mrb[20].mxu0 }
 0x640   :  { %v3177_v46 = vadd.f32 %v3917_v45, %v3347_v37  ;;  %v3154_v47 = vpop.f32.mrb[21].mxu0 }
 0x641   :  { %v3176_v48 = vadd.f32 %v3347_v37, %v3154_v47 }
 0x642   :  { %3181 = vst [vmem:[%s7059_s15 + $0x18] sm:$0xff] %v3177_v46 }
 0x643   :  { %3180 = vst [vmem:[%s7059_s15 + $0x10] sm:$0xff] %v3176_v48 }

</bundles_post_ra>
